<compile_context>
chip_gen: v7x
topology: tpu7x:2x2x1
jax: 0.10.0
libtpu: 0.0.40
codegen_flags: <defaults>
</compile_context>

<pallas_src>
import jax
import jax.numpy as jnp
from jax.experimental import pallas as pl
from jax.experimental.pallas import tpu as pltpu

# ----------------------------------------------------------------------------
# Model dimensions (from the PyTorch module) and padded kernel dimensions.
# ----------------------------------------------------------------------------
D_IN = 768
H1, H2, H3, H5 = 1000, 500, 100, 50
N_CLASSES = 3
N_BRANCHES = 3

H1P, H2P, H3P = 1024, 512, 128          # lane / MXU aligned
BBR_TOT = H1P + H2P + H3P               # 1664, packed branch-bias width


# ----------------------------------------------------------------------------
# Kernel: one grid step = one encoder branch; classifier head on the last step.
# ----------------------------------------------------------------------------
def _ensemble_kernel(
    x_ref,      # (1, Bp, 768)       bf16   (this branch's embeddings)
    w1_ref,     # (1, 768, 1024)     bf16
    w2_ref,     # (1, 1024, 512)     bf16
    w3_ref,     # (1, 512, 128)      bf16
    bbr_ref,    # (1, 1, 1664)       f32    packed [b1 | b2 | b3]
    wcls_ref,   # (3, 128, 128)      bf16   packed [wc1 | wc2 | wc3]
    bcls_ref,   # (3, 128)           f32    packed [bc1 | bc2 | bc3]
    out_ref,    # (Bp, 128)          f32    accumulator -> lane-dense logits
):
    e = pl.program_id(0)
    f32 = jnp.float32
    bf16 = jnp.bfloat16

    @pl.when(e == 0)
    def _():
        out_ref[...] = jnp.zeros_like(out_ref)

    x = x_ref[0]                                     # (Bp, 768) bf16
    b1 = bbr_ref[0, :, 0:H1P]                        # (1, 1024) f32
    b2 = bbr_ref[0, :, H1P:H1P + H2P]                # (1, 512)  f32
    b3 = bbr_ref[0, :, H1P + H2P:BBR_TOT]            # (1, 128)  f32

    h = jnp.dot(x, w1_ref[0], preferred_element_type=f32) + b1           # (Bp,1024)
    h = jnp.dot(h.astype(bf16), w2_ref[0], preferred_element_type=f32) + b2
    h = jnp.dot(h.astype(bf16), w3_ref[0], preferred_element_type=f32) + b3
    # Dropout(0.4) -> identity in eval mode.
    out_ref[...] += h                                                     # (Bp,128)

    @pl.when(e == pl.num_programs(0) - 1)
    def _():
        mean_h = out_ref[...] * (1.0 / N_BRANCHES)                        # (Bp,128)
        c = jnp.dot(mean_h.astype(bf16), wcls_ref[0],
                    preferred_element_type=f32) + bcls_ref[0:1, :]
        c = jnp.dot(c.astype(bf16), wcls_ref[1],
                    preferred_element_type=f32) + bcls_ref[1:2, :]
        # Dropout(0.4) -> identity in eval mode.
        logits = jnp.dot(c.astype(bf16), wcls_ref[2],
                         preferred_element_type=f32) + bcls_ref[2:3, :]
        out_ref[...] = logits.astype(out_ref.dtype)


@jax.jit
def _forward(x_stacked, packed_params):
    """x_stacked: (3, B, 768) float32 -> logits (B, 3) float32."""
    (w1p, w2p, w3p, bbr, wcls, bcls) = packed_params
    B = x_stacked.shape[1]
    Bp = ((B + 7) // 8) * 8                          # sublane-aligned batch
    x_bf = x_stacked.astype(jnp.bfloat16)
    if Bp != B:
        x_bf = jnp.pad(x_bf, ((0, 0), (0, Bp - B), (0, 0)))

    grid_spec = pltpu.PrefetchScalarGridSpec(
        num_scalar_prefetch=0,
        grid=(N_BRANCHES,),
        in_specs=[
            pl.BlockSpec((1, Bp, D_IN), lambda e: (e, 0, 0)),      # x
            pl.BlockSpec((1, D_IN, H1P), lambda e: (e, 0, 0)),     # w1
            pl.BlockSpec((1, H1P, H2P), lambda e: (e, 0, 0)),      # w2
            pl.BlockSpec((1, H2P, H3P), lambda e: (e, 0, 0)),      # w3
            pl.BlockSpec((1, 1, BBR_TOT), lambda e: (e, 0, 0)),    # branch biases
            pl.BlockSpec((3, H3P, H3P), lambda e: (0, 0, 0)),      # classifier Ws
            pl.BlockSpec((3, H3P), lambda e: (0, 0)),              # classifier bs
        ],
        out_specs=pl.BlockSpec((Bp, H3P), lambda e: (0, 0)),
    )

    out_padded = pl.pallas_call(
        _ensemble_kernel,
        out_shape=jax.ShapeDtypeStruct((Bp, H3P), jnp.float32),
        grid_spec=grid_spec,
        compiler_params=pltpu.CompilerParams(
            dimension_semantics=("arbitrary",),          # branch axis is a reduction
            vmem_limit_bytes=32 * 1024 * 1024,           # safe on v5e/v6e/v7x
        ),
    )(x_bf, w1p, w2p, w3p, bbr, wcls, bcls)

    return out_padded[:B, :N_CLASSES]


def mex_classifier_dense_ensemble(bert_embeds, roberta_embeds, deberta_embeds,
                                  packed_params):
    """Mirrors MexClassifierDenseEnsemble.forward (eval mode)."""
    x_stacked = jnp.stack([bert_embeds, roberta_embeds, deberta_embeds], axis=0)
    return _forward(x_stacked, packed_params)


# ----------------------------------------------------------------------------
# Parameter init (PyTorch-style uniform +-1/sqrt(fan_in)) and kernel packing.
# ----------------------------------------------------------------------------
def _linear_params(key, fan_in, fan_out, stacked=None):
    bound = 1.0 / jnp.sqrt(jnp.float32(fan_in))
    kw, kb = jax.random.split(key)
    if stacked is None:
        w = jax.random.uniform(kw, (fan_in, fan_out), jnp.float32, -bound, bound)
        b = jax.random.uniform(kb, (1, fan_out), jnp.float32, -bound, bound)
    else:
        w = jax.random.uniform(kw, (stacked, fan_in, fan_out), jnp.float32, -bound, bound)
        b = jax.random.uniform(kb, (stacked, fan_out), jnp.float32, -bound, bound)
    return w, b


def init_params(seed=0):
    key = jax.random.PRNGKey(seed)
    ks = jax.random.split(key, 6)
    w1, b1 = _linear_params(ks[0], D_IN, H1, stacked=N_BRANCHES)
    w2, b2 = _linear_params(ks[1], H1, H2, stacked=N_BRANCHES)
    w3, b3 = _linear_params(ks[2], H2, H3, stacked=N_BRANCHES)
    # Classifier head sized 100 -> 100 (see TODO note at top of file).
    wc1, bc1 = _linear_params(ks[3], H3, H3)
    wc2, bc2 = _linear_params(ks[4], H3, H5)
    wc3, bc3 = _linear_params(ks[5], H5, N_CLASSES)
    return (w1, b1, w2, b2, w3, b3, wc1, bc1, wc2, bc2, wc3, bc3)


def pack_params(params):
    """Zero-pad to lane-aligned sizes, cast weights to bf16, pack small tensors."""
    (w1, b1, w2, b2, w3, b3, wc1, bc1, wc2, bc2, wc3, bc3) = params
    bf16 = jnp.bfloat16

    def pad2(a, r, c):
        return jnp.pad(a, ((0, r - a.shape[0]), (0, c - a.shape[1])))

    def pad3(a, r, c):
        return jnp.pad(a, ((0, 0), (0, r - a.shape[1]), (0, c - a.shape[2])))

    w1p = pad3(w1, D_IN, H1P).astype(bf16)          # (3, 768, 1024)
    w2p = pad3(w2, H1P, H2P).astype(bf16)           # (3, 1024, 512)
    w3p = pad3(w3, H2P, H3P).astype(bf16)           # (3, 512, 128)

    b1p = jnp.pad(b1, ((0, 0), (0, H1P - H1)))
    b2p = jnp.pad(b2, ((0, 0), (0, H2P - H2)))
    b3p = jnp.pad(b3, ((0, 0), (0, H3P - H3)))
    bbr = jnp.concatenate([b1p, b2p, b3p], axis=1)[:, None, :]   # (3, 1, 1664) f32

    wcls = jnp.stack([pad2(wc1, H3P, H3P),
                      pad2(wc2, H3P, H3P),
                      pad2(wc3, H3P, H3P)], axis=0).astype(bf16)  # (3, 128, 128)
    bcls = jnp.stack([jnp.pad(bc1[0], (0, H3P - H3)),
                      jnp.pad(bc2[0], (0, H3P - H5)),
                      jnp.pad(bc3[0], (0, H3P - N_CLASSES))], axis=0)  # (3, 128) f32
    return (w1p, w2p, w3p, bbr, wcls, bcls)


def reference_forward(bert, roberta, deberta, params):
    """Pure-JAX reference with the same bf16 weight quantization, f32 math."""
    (w1, b1, w2, b2, w3, b3, wc1, bc1, wc2, bc2, wc3, bc3) = params
    q = lambda a: a.astype(jnp.bfloat16).astype(jnp.float32)
    hs = []
    for e, x in enumerate((bert, roberta, deberta)):
        h = q(x) @ q(w1[e]) + b1[e]
        h = h @ q(w2[e]) + b2[e]
        h = h @ q(w3[e]) + b3[e]
        hs.append(h)
    m = jnp.mean(jnp.stack(hs, axis=1), axis=1)
    c = m @ q(wc1) + bc1[0]
    c = c @ q(wc2) + bc2[0]
    return c @ q(wc3) + bc3[0]


if __name__ == "__main__":
    B = 8  # small, sublane-aligned batch
    key = jax.random.PRNGKey(0)
    kb, kr, kd = jax.random.split(key, 3)
    bert = jax.random.normal(kb, (B, D_IN), dtype=jnp.float32)
    roberta = jax.random.normal(kr, (B, D_IN), dtype=jnp.float32)
    deberta = jax.random.normal(kd, (B, D_IN), dtype=jnp.float32)

    params = init_params(seed=0)
    packed = pack_params(params)

    logits = mex_classifier_dense_ensemble(bert, roberta, deberta, packed)
    logits = jax.block_until_ready(logits)

    ref = reference_forward(bert, roberta, deberta, params)
    assert logits.shape == (B, N_CLASSES), logits.shape
    # bf16 weights + bf16 inter-layer activations in the kernel -> loose tol.
    assert jnp.allclose(logits, ref, atol=5e-3, rtol=5e-2), "mismatch vs reference"

    print("KERNEL_OK")
</pallas_src>

<mosaic_0001>
module attributes {stable_mosaic.version = 11 : i64} {
  func.func @_ensemble_kernel(%arg0: i32, %arg1: memref<1x8x768xbf16, #tpu.memory_space<vmem>>, %arg2: memref<1x768x1024xbf16, #tpu.memory_space<vmem>>, %arg3: memref<1x1024x512xbf16, #tpu.memory_space<vmem>>, %arg4: memref<1x512x128xbf16, #tpu.memory_space<vmem>>, %arg5: memref<1x1x1664xf32, #tpu.memory_space<vmem>>, %arg6: memref<3x128x128xbf16, #tpu.memory_space<vmem>>, %arg7: memref<3x128xf32, #tpu.memory_space<vmem>>, %arg8: memref<8x128xf32, #tpu.memory_space<vmem>>) attributes {dimension_semantics = [#tpu.dimension_semantics<arbitrary>], iteration_bounds = array<i64: 3>, scalar_prefetch = 0 : i64, scratch_operands = 0 : i64, tpu.core_type = #tpu.core_type<tc>, window_params = [{transform_indices = @transform_0, window_bounds = array<i64: 1, 8, 768>}, {transform_indices = @transform_1, window_bounds = array<i64: 1, 768, 1024>}, {transform_indices = @transform_2, window_bounds = array<i64: 1, 1024, 512>}, {transform_indices = @transform_3, window_bounds = array<i64: 1, 512, 128>}, {transform_indices = @transform_4, window_bounds = array<i64: 1, 1, 1664>}, {pipeline_mode = #tpu.pipeline_mode<synchronous>, transform_indices = @transform_5, window_bounds = array<i64: 3, 128, 128>}, {pipeline_mode = #tpu.pipeline_mode<synchronous>, transform_indices = @transform_6, window_bounds = array<i64: 3, 128>}, {pipeline_mode = #tpu.pipeline_mode<synchronous>, transform_indices = @transform_7, window_bounds = array<i64: 8, 128>}]} {
    %c0_i32 = arith.constant 0 : i32
    %0 = arith.cmpi eq, %arg0, %c0_i32 : i32
    %1 = arith.extui %0 : i1 to i32
    %c0_i32_0 = arith.constant 0 : i32
    %2 = arith.cmpi ne, %1, %c0_i32_0 : i32
    scf.if %2 {
      %cst_26 = arith.constant 0.000000e+00 : f32
      %34 = vector.broadcast %cst_26 : f32 to vector<8x128xf32>
      %c0_27 = arith.constant 0 : index
      %c0_28 = arith.constant 0 : index
      %35 = vector.load %arg8[%c0_27, %c0_28] : memref<8x128xf32, #tpu.memory_space<vmem>>, vector<8x128xf32>
      tpu.vector_store %arg8[%c0_27, %c0_28], %34 {strides = array<i32>} : memref<8x128xf32, #tpu.memory_space<vmem>>, vector<8x128xf32>,
    } else {
    }
    %c0 = arith.constant 0 : index
    %c0_1 = arith.constant 0 : index
    %c0_2 = arith.constant 0 : index
    %3 = vector.load %arg1[%c0, %c0_1, %c0_2] : memref<1x8x768xbf16, #tpu.memory_space<vmem>>, vector<1x8x768xbf16>
    %4 = vector.shape_cast %3 : vector<1x8x768xbf16> to vector<8x768xbf16>
    %c0_3 = arith.constant 0 : index
    %c0_4 = arith.constant 0 : index
    %c0_5 = arith.constant 0 : index
    %5 = vector.load %arg5[%c0_3, %c0_4, %c0_5] : memref<1x1x1664xf32, #tpu.memory_space<vmem>>, vector<1x1x1024xf32>
    %6 = vector.shape_cast %5 : vector<1x1x1024xf32> to vector<1x1024xf32>
    %c0_6 = arith.constant 0 : index
    %c0_7 = arith.constant 0 : index
    %c1024 = arith.constant 1024 : index
    %7 = vector.load %arg5[%c0_6, %c0_7, %c1024] : memref<1x1x1664xf32, #tpu.memory_space<vmem>>, vector<1x1x512xf32>
    %8 = vector.shape_cast %7 : vector<1x1x512xf32> to vector<1x512xf32>
    %c0_8 = arith.constant 0 : index
    %c0_9 = arith.constant 0 : index
    %c1536 = arith.constant 1536 : index
    %9 = vector.load %arg5[%c0_8, %c0_9, %c1536] : memref<1x1x1664xf32, #tpu.memory_space<vmem>>, vector<1x1x128xf32>
    %10 = vector.shape_cast %9 : vector<1x1x128xf32> to vector<1x128xf32>
    %c0_10 = arith.constant 0 : index
    %c0_11 = arith.constant 0 : index
    %c0_12 = arith.constant 0 : index
    %11 = vector.load %arg2[%c0_10, %c0_11, %c0_12] : memref<1x768x1024xbf16, #tpu.memory_space<vmem>>, vector<1x768x1024xbf16>
    %12 = vector.shape_cast %11 : vector<1x768x1024xbf16> to vector<768x1024xbf16>
    %cst = arith.constant dense<0.000000e+00> : vector<8x1024xf32>
    %13 = tpu.matmul %4, %12, %cst {dimension_numbers = #tpu.dot_dimension_numbers<[1], [0], [0], [1], [0, 0, 1, 1], [], []>} : vector<8x768xbf16>, vector<768x1024xbf16>, vector<8x1024xf32> -> vector<8x1024xf32>
    %14 = vector.broadcast %6 : vector<1x1024xf32> to vector<8x1024xf32>
    %15 = arith.addf %13, %14 : vector<8x1024xf32>
    %16 = arith.truncf %15 : vector<8x1024xf32> to vector<8x1024xbf16>
    %c0_13 = arith.constant 0 : index
    %c0_14 = arith.constant 0 : index
    %c0_15 = arith.constant 0 : index
    %17 = vector.load %arg3[%c0_13, %c0_14, %c0_15] : memref<1x1024x512xbf16, #tpu.memory_space<vmem>>, vector<1x1024x512xbf16>
    %18 = vector.shape_cast %17 : vector<1x1024x512xbf16> to vector<1024x512xbf16>
    %cst_16 = arith.constant dense<0.000000e+00> : vector<8x512xf32>
    %19 = tpu.matmul %16, %18, %cst_16 {dimension_numbers = #tpu.dot_dimension_numbers<[1], [0], [0], [1], [0, 0, 1, 1], [], []>} : vector<8x1024xbf16>, vector<1024x512xbf16>, vector<8x512xf32> -> vector<8x512xf32>
    %20 = vector.broadcast %8 : vector<1x512xf32> to vector<8x512xf32>
    %21 = arith.addf %19, %20 : vector<8x512xf32>
    %22 = arith.truncf %21 : vector<8x512xf32> to vector<8x512xbf16>
    %c0_17 = arith.constant 0 : index
    %c0_18 = arith.constant 0 : index
    %c0_19 = arith.constant 0 : index
    %23 = vector.load %arg4[%c0_17, %c0_18, %c0_19] : memref<1x512x128xbf16, #tpu.memory_space<vmem>>, vector<1x512x128xbf16>
    %24 = vector.shape_cast %23 : vector<1x512x128xbf16> to vector<512x128xbf16>
    %cst_20 = arith.constant dense<0.000000e+00> : vector<8x128xf32>
    %25 = tpu.matmul %22, %24, %cst_20 {dimension_numbers = #tpu.dot_dimension_numbers<[1], [0], [0], [1], [0, 0, 1, 1], [], []>} : vector<8x512xbf16>, vector<512x128xbf16>, vector<8x128xf32> -> vector<8x128xf32>
    %26 = vector.broadcast %10 : vector<1x128xf32> to vector<8x128xf32>
    %27 = arith.addf %25, %26 : vector<8x128xf32>
    %c0_21 = arith.constant 0 : index
    %c0_22 = arith.constant 0 : index
    %28 = vector.load %arg8[%c0_21, %c0_22] : memref<8x128xf32, #tpu.memory_space<vmem>>, vector<8x128xf32>
    %29 = arith.addf %28, %27 : vector<8x128xf32>
    %c0_23 = arith.constant 0 : index
    %c0_24 = arith.constant 0 : index
    %30 = vector.load %arg8[%c0_23, %c0_24] : memref<8x128xf32, #tpu.memory_space<vmem>>, vector<8x128xf32>
    tpu.vector_store %arg8[%c0_23, %c0_24], %29 {strides = array<i32>} : memref<8x128xf32, #tpu.memory_space<vmem>>, vector<8x128xf32>,
    %c2_i32 = arith.constant 2 : i32
    %31 = arith.cmpi eq, %arg0, %c2_i32 : i32
    %32 = arith.extui %31 : i1 to i32
    %c0_i32_25 = arith.constant 0 : i32
    %33 = arith.cmpi ne, %32, %c0_i32_25 : i32
    scf.if %33 {
      %c0_26 = arith.constant 0 : index
      %c0_27 = arith.constant 0 : index
      %34 = vector.load %arg8[%c0_26, %c0_27] : memref<8x128xf32, #tpu.memory_space<vmem>>, vector<8x128xf32>
      %cst_28 = arith.constant 0.333333343 : f32
      %35 = vector.broadcast %cst_28 : f32 to vector<8x128xf32>
      %36 = arith.mulf %34, %35 : vector<8x128xf32>
      %37 = arith.truncf %36 : vector<8x128xf32> to vector<8x128xbf16>
      %c0_29 = arith.constant 0 : index
      %c0_30 = arith.constant 0 : index
      %c0_31 = arith.constant 0 : index
      %38 = vector.load %arg6[%c0_29, %c0_30, %c0_31] : memref<3x128x128xbf16, #tpu.memory_space<vmem>>, vector<1x128x128xbf16>
      %39 = vector.shape_cast %38 : vector<1x128x128xbf16> to vector<128x128xbf16>
      %cst_32 = arith.constant dense<0.000000e+00> : vector<8x128xf32>
      %40 = tpu.matmul %37, %39, %cst_32 {dimension_numbers = #tpu.dot_dimension_numbers<[1], [0], [0], [1], [0, 0, 1, 1], [], []>} : vector<8x128xbf16>, vector<128x128xbf16>, vector<8x128xf32> -> vector<8x128xf32>
      %c0_33 = arith.constant 0 : index
      %c0_34 = arith.constant 0 : index
      %41 = vector.load %arg7[%c0_33, %c0_34] : memref<3x128xf32, #tpu.memory_space<vmem>>, vector<1x128xf32>
      %42 = vector.broadcast %41 : vector<1x128xf32> to vector<8x128xf32>
      %43 = arith.addf %40, %42 : vector<8x128xf32>
      %44 = arith.truncf %43 : vector<8x128xf32> to vector<8x128xbf16>
      %c1 = arith.constant 1 : index
      %c0_35 = arith.constant 0 : index
      %c0_36 = arith.constant 0 : index
      %45 = vector.load %arg6[%c1, %c0_35, %c0_36] : memref<3x128x128xbf16, #tpu.memory_space<vmem>>, vector<1x128x128xbf16>
      %46 = vector.shape_cast %45 : vector<1x128x128xbf16> to vector<128x128xbf16>
      %cst_37 = arith.constant dense<0.000000e+00> : vector<8x128xf32>
      %47 = tpu.matmul %44, %46, %cst_37 {dimension_numbers = #tpu.dot_dimension_numbers<[1], [0], [0], [1], [0, 0, 1, 1], [], []>} : vector<8x128xbf16>, vector<128x128xbf16>, vector<8x128xf32> -> vector<8x128xf32>
      %c1_38 = arith.constant 1 : index
      %c0_39 = arith.constant 0 : index
      %48 = vector.load %arg7[%c1_38, %c0_39] : memref<3x128xf32, #tpu.memory_space<vmem>>, vector<1x128xf32>
      %49 = vector.broadcast %48 : vector<1x128xf32> to vector<8x128xf32>
      %50 = arith.addf %47, %49 : vector<8x128xf32>
      %51 = arith.truncf %50 : vector<8x128xf32> to vector<8x128xbf16>
      %c2 = arith.constant 2 : index
      %c0_40 = arith.constant 0 : index
      %c0_41 = arith.constant 0 : index
      %52 = vector.load %arg6[%c2, %c0_40, %c0_41] : memref<3x128x128xbf16, #tpu.memory_space<vmem>>, vector<1x128x128xbf16>
      %53 = vector.shape_cast %52 : vector<1x128x128xbf16> to vector<128x128xbf16>
      %cst_42 = arith.constant dense<0.000000e+00> : vector<8x128xf32>
      %54 = tpu.matmul %51, %53, %cst_42 {dimension_numbers = #tpu.dot_dimension_numbers<[1], [0], [0], [1], [0, 0, 1, 1], [], []>} : vector<8x128xbf16>, vector<128x128xbf16>, vector<8x128xf32> -> vector<8x128xf32>
      %c2_43 = arith.constant 2 : index
      %c0_44 = arith.constant 0 : index
      %55 = vector.load %arg7[%c2_43, %c0_44] : memref<3x128xf32, #tpu.memory_space<vmem>>, vector<1x128xf32>
      %56 = vector.broadcast %55 : vector<1x128xf32> to vector<8x128xf32>
      %57 = arith.addf %54, %56 : vector<8x128xf32>
      %c0_45 = arith.constant 0 : index
      %c0_46 = arith.constant 0 : index
      %58 = vector.load %arg8[%c0_45, %c0_46] : memref<8x128xf32, #tpu.memory_space<vmem>>, vector<8x128xf32>
      tpu.vector_store %arg8[%c0_45, %c0_46], %57 {strides = array<i32>} : memref<8x128xf32, #tpu.memory_space<vmem>>, vector<8x128xf32>,
    } else {
    }
    return
  }
  func.func @transform_0(%arg0: i32) -> (i32, i32, i32) {
    %c0_i32 = arith.constant 0 : i32
    %c0_i32_0 = arith.constant 0 : i32
    %c0_i32_1 = arith.constant 0 : i32
    return %arg0, %c0_i32, %c0_i32_0 : i32, i32, i32
  }
  func.func @transform_1(%arg0: i32) -> (i32, i32, i32) {
    %c0_i32 = arith.constant 0 : i32
    %c0_i32_0 = arith.constant 0 : i32
    %c0_i32_1 = arith.constant 0 : i32
    return %arg0, %c0_i32, %c0_i32_0 : i32, i32, i32
  }
  func.func @transform_2(%arg0: i32) -> (i32, i32, i32) {
    %c0_i32 = arith.constant 0 : i32
    %c0_i32_0 = arith.constant 0 : i32
    %c0_i32_1 = arith.constant 0 : i32
    return %arg0, %c0_i32, %c0_i32_0 : i32, i32, i32
  }
  func.func @transform_3(%arg0: i32) -> (i32, i32, i32) {
    %c0_i32 = arith.constant 0 : i32
    %c0_i32_0 = arith.constant 0 : i32
    %c0_i32_1 = arith.constant 0 : i32
    return %arg0, %c0_i32, %c0_i32_0 : i32, i32, i32
  }
  func.func @transform_4(%arg0: i32) -> (i32, i32, i32) {
    %c0_i32 = arith.constant 0 : i32
    %c0_i32_0 = arith.constant 0 : i32
    %c0_i32_1 = arith.constant 0 : i32
    return %arg0, %c0_i32, %c0_i32_0 : i32, i32, i32
  }
  func.func @transform_5(%arg0: i32) -> (i32, i32, i32) {
    %c0_i32 = arith.constant 0 : i32
    %c0_i32_0 = arith.constant 0 : i32
    %c0_i32_1 = arith.constant 0 : i32
    %c0_i32_2 = arith.constant 0 : i32
    return %c0_i32, %c0_i32_0, %c0_i32_1 : i32, i32, i32
  }
  func.func @transform_6(%arg0: i32) -> (i32, i32) {
    %c0_i32 = arith.constant 0 : i32
    %c0_i32_0 = arith.constant 0 : i32
    %c0_i32_1 = arith.constant 0 : i32
    return %c0_i32, %c0_i32_0 : i32, i32
  }
  func.func @transform_7(%arg0: i32) -> (i32, i32) {
    %c0_i32 = arith.constant 0 : i32
    %c0_i32_0 = arith.constant 0 : i32
    %c0_i32_1 = arith.constant 0 : i32
    return %c0_i32, %c0_i32_0 : i32, i32
  }
}

</mosaic_0001>

<bundles_post_ra>
// kernel: _forward.1
= control target key start
LH: loop header
LB: loop body
LE: loop exit
PB: predicated region body
PF: predicated region fallthrough
CT: control target
= control target key end

     0   :  { %s8916_s0 = inlined_call_operand.vmem [shape: bf16[3,8,768], index: 0, kind: input, shape index: {}]   ;;  %s8917_s1 = inlined_call_operand.hbm [shape: bf16[3,768,1024], index: 1, kind: input, shape index: {}]   ;;  %s8918_s2 = inlined_call_operand.hbm [shape: bf16[3,1024,512], index: 2, kind: input, shape index: {}]   ;;  %s8919_s3 = inlined_call_operand.hbm [shape: bf16[3,512,128], index: 3, kind: input, shape index: {}]   ;;  %s8920_s4 = inlined_call_operand.hbm [shape: f32[3,1,1664], index: 4, kind: input, shape index: {}]   ;;  %s8921_s5 = inlined_call_operand.hbm [shape: bf16[3,128,128], index: 5, kind: input, shape index: {}]   ;;  %s8922_s6 = inlined_call_operand.hbm [shape: f32[3,128], index: 6, kind: input, shape index: {}]   ;;  %s8923_s7 = inlined_call_operand.vmem [shape: f32[8,128], index: 7, kind: output, shape index: {}]  }
   0x1   :  { %8940 = sst [smem:[#allocation20_spill]] %s8918_s2 }
   0x2   :  { %8941 = sst [smem:[#allocation21_spill]] %s8921_s5 }
   0x3   :  { %12 = vsyncpa [#allocation3], 0 }
   0x4   :  { %14 = vsyncpa [#allocation3 + $0x1], 0 }
   0x5   :  { %15 = vsyncpa [#allocation5], 0 }
   0x6   :  { %17 = vsyncpa [#allocation5 + $0x1], 0 }
   0x7   :  { %18 = vsyncpa [#allocation8], 0 }
   0x8   :  { %20 = vsyncpa [#allocation8 + $0x1], 0 }
   0x9   :  { %21 = vsyncpa [#allocation11], 0  ;;  %s7784_s24 = smov 0   ;;  %s7786_s25 = smov 0  }
   0xa   :  { %s7788_s26 = smov 0   ;;  %s7790_s27 = smov 0  }
   0xb LB: > { %8942 = sst [smem:[#allocation17_spill]] %s7723_s26  ;;  %s7803_s28 = sadd.s32 4294967295, %s7727_s27   ;;  %s7727_s27 = sphi %s7790_s27, %s8971_s27   ;;  %s7723_s26 = sphi %s7788_s26, %s8973_s26   ;;  %s7719_s25 = sphi %s7786_s25, %s8975_s25   ;;  %s7715_s24 = sphi %s7784_s24, %s8974_s24  }
   0xc   : > { %s7806_s29 = sadd.s32 1, %s7727_s27   ;;  %s60_s8 = sadd.s32 1, %s7723_s26 }
   0xd   : > { %8943 = sst [smem:[#allocation18_spill]] %s7806_s29  ;;  %s57_s30 = ssub.s32 %s7727_s27, %s7806_s29 }
   0xe   : > { %p58_p0 = scmp.eq.s32.totalorder %s57_s30, 0  ;;  %p67_p1 = scmp.ne.s32.totalorder %s7723_s26, %s7719_s25 }
   0xf   : > { %p68_p2 = scmp.eq.s32.totalorder %s7727_s27, 0  ;;  %p73_p3 = scmp.ne.s32.totalorder %s7719_s25, %s7715_s24 }
  0x10   : > { %s7816_s9 = scalar_select %p58_p0, %s7723_s26, %s60_s8  }
  0x11   : > { %p7818_p4 = por %p68_p2, %p67_p1  ;;  %p8924_p5 = scmp.eq.s32.totalorder %s7803_s28, 0 }
  0x12   : > { %8944 = sst [smem:[#allocation19_spill]] %s7816_s9  ;;  %p6034_p6 = scmp.ge.s32.totalorder %s7727_s27, 1 }
  0x13   : > { %p225_p7 = scmp.lt.s32.totalorder %s7727_s27, 4  ;;  %p7827_p8 = por %p8924_p5, %p73_p3 }
  0x14   : > { %s7729_s13 = smov [#allocation9]   ;;  %p7008_p13 = scmp.lt.s32.totalorder %s7727_s27, 3 }
  0x15   : > { %s8946_s11 = scalar_select %p7827_p8, 1, 0 }
  0x16   : > { %p7832_p10 = pnand %p6034_p6, %p225_p7  ;;  %s237_s14 = sshll.u32 %s7729_s13, 4  ;;  %s238_s14 = int_to_ptr.vmem [resolvable:$true] %s237_s14 }
  0x17   : > { %s7846_s16 = sand.u32 1, %s7723_s26   ;;  %p7851_p0 = pnand %p7008_p13, %p7818_p4 }
  0x18   : > { %s8947_s12 = scalar_select %p7832_p10, 1, 0 }
  0x19   : > { %p6986_p11 = pneg %p7832_p10  ;;  %s8950_s5 = sld [smem:[#allocation21_spill]] }
  0x1a   : > { %s8949_s18 = scalar_select %p7851_p0, 1, 0 }
  0x1b   : > { %p7840_p12 = pnand %p6986_p11, %p8924_p5 }
  0x1d   : > { %s8948_s15 = scalar_select %p7840_p12, 1, 0 }
  0x1e   : > { %p8929_p2 = pneg %p7840_p12 }
  0x1f   : > { %s7501_s21 = scalar_lea.hbm %s8950_s5, 3072 }
  0x20   : > { %p7502_p1 = scmp.ne.s32.totalorder %s8950_s5, %s7501_s21  ;;  %p7508_p4 = scmp.lt.u32.totalorder %s7501_s21, %s8950_s5 }
  0x22   : > { %p7504_p3 = pnand %p8929_p2, %p7502_p1 }
  0x24   : > { %p7505_p6 = pneg %p7504_p3 }
  0x26   : > { %p7510_p7 = pnand %p7508_p4, %p7505_p6 }
  0x28   : > { %7513 = shalt.err (!%p7510_p7)
}
  0x29   : > { %s7514_s8 = scalar_lea.vmem %s238_s14, 3072  ;;  %p7522_p5 = scmp.lt.s32.totalorder %s238_s14, %s238_s14 }
  0x2a   : > { %p7515_p11 = scmp.ne.s32.totalorder %s238_s14, %s7514_s8  ;;  %p7523_p8 = scmp.lt.s32.totalorder %s7514_s8, %s7514_s8 }
  0x2c   : > { %p7517_p13 = pnand %p7515_p11, %p8929_p2  ;;  %p7524_p10 = por %p7523_p8, %p7522_p5 }
  0x2e   : > { %p7518_p9 = pneg %p7517_p13 }
  0x30   : > { %p7525_p0 = pnand %p7524_p10, %p7518_p9 }
  0x32   : > { %7528 = shalt.err (!%p7525_p0)
}
  0x33   : > { %s8932_s10 = smov 64   ;;  %s8933_s13 = smov 4  }
  0x34   : > { %6989 = dma.hbm_to_vmem [thread:$0]  (!%p7840_p12), %s8950_s5, 3072, %s238_s14, [#allocation8], %s8932_s10, %s8932_s10, %s8933_s13  }
  0x35   : > { %s6039_s21 = sshll.u32 %s7846_s16, 11  ;;  %s6762_s22 = sshll.u32 %s7727_s27, 15 }
  0x36   : > { %s8951_s2 = sld [smem:[#allocation20_spill]]  ;;  %s295_s8 = scalar_lea.vmem [#allocation4], %s6039_s21 }
  0x37   : > { %s302_s17 = sshll.u32 %s295_s8, 4  ;;  %s8952_s9 = sand.u32 1, %s7727_s27   ;;  %s7887_s17 = int_to_ptr.vmem [resolvable:$true] %s302_s17 }
  0x38   : > { %s7891_s26 = scalar_lea.sflag [#allocation5], %s8952_s9  ;;  %p8953_p8 = scmp.ne.s32.totalorder %s8949_s18, 0 }
  0x3a   : > { %p7897_p9 = pneg %p8953_p8 }
  0x3c   : > { %s7885_s30 = scalar_lea.hbm %s8951_s2, %s6762_s22  ;;  %s7534_s21 = scalar_lea.hbm %s8951_s2, 98304 }
  0x3d   : > { %s7529_s19 = scalar_lea.hbm %s7885_s30, 32768  ;;  %p7535_p1 = scmp.lt.u32.totalorder %s7885_s30, %s8951_s2 }
  0x3e   : > { %p7530_p5 = scmp.ne.s32.totalorder %s7885_s30, %s7529_s19  ;;  %p7536_p3 = scmp.lt.u32.totalorder %s7534_s21, %s7529_s19 }
  0x3f   : > { %s8954_s14 = scalar_select %p7897_p9, 1, 0 }
  0x40   : > { %p7532_p10 = pnand %p7897_p9, %p7530_p5  ;;  %p7537_p6 = por %p7536_p3, %p7535_p1 }
  0x41   : > { %p7538_p4 = scmp.lt.u32.totalorder %s7529_s19, %s7885_s30 }
  0x42   : > { %p7533_p0 = pneg %p7532_p10 }
  0x43   : > { %p7539_p7 = por %p7538_p4, %p7537_p6 }
  0x45   : > { %p7540_p11 = pnand %p7539_p7, %p7533_p0 }
  0x47   : > { %7543 = shalt.err (!%p7540_p11)
}
  0x48   : > { %s7544_s9 = scalar_lea.vmem %s7887_s17, 32768  ;;  %s7732_s8 = smov [#allocation4]  }
  0x49   : > { %p7545_p13 = scmp.ne.s32.totalorder %s7887_s17, %s7544_s9  ;;  %s7549_s20 = sshll.u32 %s7732_s8, 4  ;;  %s7550_s20 = int_to_ptr.vmem [resolvable:$false] %s7549_s20 }
  0x4a   : > { %s7551_s22 = scalar_lea.vmem %s7550_s20, 65536  ;;  %p7552_p2 = scmp.lt.s32.totalorder %s7887_s17, %s7550_s20 }
  0x4b   : > { %p7547_p5 = pnand %p7545_p13, %p7897_p9  ;;  %p7553_p12 = scmp.lt.s32.totalorder %s7551_s22, %s7544_s9 }
  0x4d   : > { %p7548_p10 = pneg %p7547_p5  ;;  %p7554_p1 = por %p7553_p12, %p7552_p2 }
  0x4f   : > { %p7555_p3 = pnand %p7554_p1, %p7548_p10 }
  0x51   : > { %7558 = shalt.err (!%p7555_p3)
}
  0x52   : > { %s7733_s19 = smov 256   ;;  %s7734_s21 = smov 16  }
  0x53   : > { %6999 = dma.hbm_to_vmem [thread:$0]  (!%p8953_p8), %s7885_s30, 32768, %s7887_s17, %s7891_s26, %s7733_s19, %s7733_s19, %s7734_s21  }
  0x54   : > { %s7735_s23 = smov [#allocation10]   ;;  %s6963_s8 = smul.u32 3072, %s7846_s16 }
  0x55   : > { %s251_s24 = sshll.u32 %s7735_s23, 4  ;;  %s6964_s20 = smul.u32 49152, %s7727_s27  ;;  %s252_s24 = int_to_ptr.vmem [resolvable:$true] %s251_s24 }
  0x56   : > { %s7559_s10 = scalar_lea.hbm %s8922_s6, 64  ;;  %p8955_p2 = scmp.ne.s32.totalorder %s8948_s15, 0 }
  0x57   : > { %p7560_p12 = scmp.ne.s32.totalorder %s8922_s6, %s7559_s10  ;;  %p7566_p7 = scmp.lt.u32.totalorder %s7559_s10, %s8922_s6 }
  0x58   : > { %p8956_p0 = pneg %p8955_p2 }
  0x5a   : > { %p7562_p6 = pnand %p7560_p12, %p8956_p0 }
  0x5c   : > { %p7563_p4 = pneg %p7562_p6 }
  0x5e   : > { %p7568_p11 = pnand %p7566_p7, %p7563_p4 }
  0x60   : > { %7571 = shalt.err (!%p7568_p11)
}
  0x61   : > { %s7572_s17 = scalar_lea.vmem %s252_s24, 64  ;;  %p8957_p5 = pmov %p8956_p0 }
  0x62   : > { %p7573_p13 = scmp.ne.s32.totalorder %s252_s24, %s7572_s17  ;;  %p7580_p3 = scmp.lt.s32.totalorder %s252_s24, %s252_s24 }
  0x63   : > { %p7581_p8 = scmp.lt.s32.totalorder %s7572_s17, %s7572_s17 }
  0x64   : > { %p7575_p10 = pnand %p7573_p13, %p8957_p5 }
  0x65   : > { %p7582_p9 = por %p7581_p8, %p7580_p3 }
  0x66   : > { %p7576_p1 = pneg %p7575_p10 }
  0x68   : > { %p7583_p0 = pnand %p7582_p9, %p7576_p1 }
  0x6a   : > { %7586 = shalt.err (!%p7583_p0)
}
  0x6b   : > { %6992 = dma.hbm_to_vmem [thread:$0]  (!%p8955_p2), %s8922_s6, 64, %s252_s24, [#allocation11]  }
  0x6c   : > { %s7946_s10 = scalar_lea.hbm %s8917_s1, %s6964_s20  ;;  %s274_s30 = scalar_lea.vmem [#allocation2], %s6963_s8 }
  0x6d   : > { %s281_s19 = sshll.u32 %s274_s30, 4  ;;  %s271_s15 = scalar_lea.sflag [#allocation3], %s7846_s16  ;;  %s7948_s19 = int_to_ptr.vmem [resolvable:$true] %s281_s19 }
  0x6e   : > { %s7587_s21 = scalar_lea.hbm %s7946_s10, 49152  ;;  %p8958_p9 = scmp.ne.s32.totalorder %s8954_s14, 0 }
  0x6f   : > { %p7588_p8 = scmp.ne.s32.totalorder %s7946_s10, %s7587_s21  ;;  %s7592_s9 = scalar_lea.hbm %s8917_s1, 147456 }
  0x70   : > { %p7593_p2 = scmp.lt.u32.totalorder %s7946_s10, %s8917_s1  ;;  %p7594_p4 = scmp.lt.u32.totalorder %s7592_s9, %s7587_s21 }
  0x71   : > { %p7590_p12 = pnand %p7588_p8, %p8958_p9  ;;  %p7596_p11 = scmp.lt.u32.totalorder %s7587_s21, %s7946_s10 }
  0x72   : > { %p7595_p7 = por %p7594_p4, %p7593_p2 }
  0x73   : > { %p7591_p6 = pneg %p7590_p12 }
  0x74   : > { %p7597_p13 = por %p7596_p11, %p7595_p7 }
  0x76   : > { %p7598_p5 = pnand %p7597_p13, %p7591_p6 }
  0x78   : > { %7601 = shalt.err (!%p7598_p5)
}
  0x79   : > { %s7602_s8 = scalar_lea.vmem %s7948_s19, 49152  ;;  %s7736_s17 = smov [#allocation2]  }
  0x7a   : > { %p7603_p10 = scmp.ne.s32.totalorder %s7948_s19, %s7602_s8  ;;  %s7607_s2 = sshll.u32 %s7736_s17, 4  ;;  %s7608_s2 = int_to_ptr.vmem [resolvable:$false] %s7607_s2 }
  0x7b   : > { %s7609_s13 = scalar_lea.vmem %s7608_s2, 98304  ;;  %p7610_p0 = scmp.lt.s32.totalorder %s7948_s19, %s7608_s2 }
  0x7c   : > { %p7605_p1 = pnand %p7603_p10, %p8958_p9  ;;  %p7611_p8 = scmp.lt.s32.totalorder %s7609_s13, %s7602_s8 }
  0x7e   : > { %p7606_p3 = pneg %p7605_p1  ;;  %p7612_p12 = por %p7611_p8, %p7610_p0 }
  0x80   : > { %p7613_p2 = pnand %p7612_p12, %p7606_p3 }
  0x82   : > { %7616 = shalt.err (!%p7613_p2)
}
  0x83   : > { %s7737_s5 = smov 512   ;;  %s7738_s29 = smov 32  }
  0x84   : > { %p8959_p6 = scmp.ne.s32.totalorder %s8949_s18, 0  ;;  %s6042_s30 = sshll.u32 %s7846_s16, 8 }
  0x85   : > { %s6763_s21 = sshll.u32 %s7727_s27, 12  ;;  %s316_s20 = scalar_lea.vmem [#allocation6], %s6042_s30 }
  0x86   : > { %6996 = dma.hbm_to_vmem [thread:$0]  (!%p8959_p6), %s7946_s10, 49152, %s7948_s19, %s271_s15, %s7737_s5, %s7737_s5, %s7738_s29  }
  0x87   : > { %s7979_s9 = scalar_lea.hbm %s8919_s3, %s6763_s21  ;;  %s323_s22 = sshll.u32 %s316_s20, 4  ;;  %s7981_s22 = int_to_ptr.vmem [resolvable:$true] %s323_s22 }
  0x88   : > { %s6965_s8 = smul.u32 13, %s7846_s16  ;;  %s7617_s17 = scalar_lea.hbm %s7979_s9, 4096 }
  0x89   : > { %p7618_p4 = scmp.ne.s32.totalorder %s7979_s9, %s7617_s17  ;;  %s7622_s15 = scalar_lea.hbm %s8919_s3, 12288 }
  0x8a   : > { %p7623_p13 = scmp.lt.u32.totalorder %s7979_s9, %s8919_s3  ;;  %p7624_p5 = scmp.lt.u32.totalorder %s7622_s15, %s7617_s17 }
  0x8b   : > { %p7620_p7 = pnand %p7618_p4, %p8958_p9  ;;  %p7626_p1 = scmp.lt.u32.totalorder %s7617_s17, %s7979_s9 }
  0x8c   : > { %p7625_p10 = por %p7624_p5, %p7623_p13 }
  0x8d   : > { %p7621_p11 = pneg %p7620_p7 }
  0x8e   : > { %p7627_p3 = por %p7626_p1, %p7625_p10 }
  0x90   : > { %p7628_p0 = pnand %p7627_p3, %p7621_p11 }
  0x92   : > { %7631 = shalt.err (!%p7628_p0)
}
  0x93   : > { %s7632_s5 = scalar_lea.vmem %s7981_s22, 4096  ;;  %s7739_s29 = smov [#allocation6]  }
  0x94   : > { %p7633_p8 = scmp.ne.s32.totalorder %s7981_s22, %s7632_s5  ;;  %s7637_s30 = sshll.u32 %s7739_s29, 4  ;;  %s7638_s30 = int_to_ptr.vmem [resolvable:$false] %s7637_s30 }
  0x95   : > { %s7639_s21 = scalar_lea.vmem %s7638_s30, 8192  ;;  %p7640_p4 = scmp.lt.s32.totalorder %s7981_s22, %s7638_s30 }
  0x96   : > { %p7635_p12 = pnand %p7633_p8, %p8958_p9  ;;  %p7641_p7 = scmp.lt.s32.totalorder %s7639_s21, %s7632_s5 }
  0x98   : > { %p7636_p2 = pneg %p7635_p12  ;;  %p7642_p13 = por %p7641_p7, %p7640_p4 }
  0x9a   : > { %p7643_p5 = pnand %p7642_p13, %p7636_p2 }
  0x9c   : > { %7646 = shalt.err (!%p7643_p5)
}
  0x9d   : > { %s8960_s23 = smov 4   ;;  %s8961_s24 = smov 64  }
  0x9e   : > { %7002 = dma.hbm_to_vmem [thread:$0]  (!%p8959_p6), %s7979_s9, 4096, %s7981_s22, %s7891_s26, %s8961_s24, %s8961_s24, %s8960_s23  }
  0x9f   : > { %s6966_s20 = smul.u32 208, %s7727_s27  ;;  %s337_s17 = scalar_lea.vmem [#allocation7], %s6965_s8 }
  0xa0   : > { %s345_s10 = sshll.u32 %s337_s17, 4  ;;  %s8962_s13 = sand.u32 1, %s7727_s27   ;;  %s346_s10 = int_to_ptr.vmem [resolvable:$true] %s345_s10 }
  0xa1   : > { %s8015_s2 = scalar_lea.hbm %s8920_s4, %s6966_s20  ;;  %s334_s5 = scalar_lea.sflag [#allocation8], %s8962_s13 }
  0xa2   : > { %s7647_s29 = scalar_lea.hbm %s8015_s2, 208  ;;  %s7652_s9 = scalar_lea.hbm %s8920_s4, 624 }
  0xa3   : > { %p7648_p11 = scmp.ne.s32.totalorder %s8015_s2, %s7647_s29  ;;  %p7653_p3 = scmp.lt.u32.totalorder %s8015_s2, %s8920_s4 }
  0xa4   : > { %p7654_p0 = scmp.lt.u32.totalorder %s7652_s9, %s7647_s29  ;;  %p7656_p12 = scmp.lt.u32.totalorder %s7647_s29, %s8015_s2 }
  0xa5   : > { %p7650_p10 = pnand %p7648_p11, %p8958_p9 }
  0xa6   : > { %p7655_p8 = por %p7654_p0, %p7653_p3 }
  0xa7   : > { %p7651_p1 = pneg %p7650_p10 }
  0xa8   : > { %p7657_p2 = por %p7656_p12, %p7655_p8 }
  0xaa   : > { %p7658_p4 = pnand %p7657_p2, %p7651_p1 }
  0xac   : > { %7661 = shalt.err (!%p7658_p4)
}
  0xad   : > { %s7662_s27 = scalar_lea.vmem %s346_s10, 208  ;;  %s7740_s30 = smov [#allocation7]  }
  0xae   : > { %p7663_p7 = scmp.ne.s32.totalorder %s346_s10, %s7662_s27  ;;  %s7667_s21 = sshll.u32 %s7740_s30, 4  ;;  %s7668_s21 = int_to_ptr.vmem [resolvable:$false] %s7667_s21 }
  0xaf   : > { %s7669_s23 = scalar_lea.vmem %s7668_s21, 416  ;;  %p7670_p11 = scmp.lt.s32.totalorder %s346_s10, %s7668_s21 }
  0xb0   : > { %p7665_p13 = pnand %p7663_p7, %p8958_p9  ;;  %p7671_p10 = scmp.lt.s32.totalorder %s7669_s23, %s7662_s27 }
  0xb2   : > { %p7666_p5 = pneg %p7665_p13  ;;  %p7672_p6 = por %p7671_p10, %p7670_p11 }
  0xb4   : > { %p7673_p0 = pnand %p7672_p6, %p7666_p5 }
  0xb6   : > { %7676 = shalt.err (!%p7673_p0)
}
  0xb7   : > { %p8963_p3 = scmp.ne.s32.totalorder %s8949_s18, 0  ;;  %p8964_p1 = scmp.ne.s32.totalorder %s8947_s12, 0 }
  0xb8   : > { %s356_s14 = sand.u32 (!%p8964_p1), 1, %s7719_s25   ;;  %p8965_p9 = scmp.ne.s32.totalorder (!%p8964_p1), %s8946_s11, 0 }
  0xb9   : > { %7005 = dma.hbm_to_vmem [thread:$0]  (!%p8963_p3), %s8015_s2, 208, %s346_s10, %s334_s5  }
  0xba   : > { %354 = sbr.rel (%p8964_p1) target bundleno = 1985 (0x7c1), region = 48  ;;  %s357_s20 = scalar_lea.sflag (!%p8964_p1), [#allocation3], %s356_s14 }
  0xbb   : > { %s6967_s24 = smul.u32 (!%p8964_p1), 3072, %s356_s14 }
  0xbd   : > { %s8039_s17 = scalar_lea.vmem (!%p8964_p1), [#allocation2], %s6967_s24 }
  0xc1   : > { %7694 = dma.done.wait (%p8965_p9), %s357_s20, 49152  }
  0xc2   : > { %7696 = vsyncadd (%p8965_p9), %s357_s20, 4294918144  ;;  %s365_s18 = sand.u32 1, %s7803_s28   ;;  %s6047_s19 = sshll.u32 %s356_s14, 11 }
  0xc3   : > { %s366_s10 = scalar_lea.sflag [#allocation5], %s365_s18  ;;  %s8046_s15 = scalar_lea.vmem [#allocation4], %s6047_s19 }
  0xc4   : > { %7698 = dma.done.wait (%p8965_p9), %s366_s10, 36864  }
  0xc5   : > { %7700 = vsyncadd (%p8965_p9), %s366_s10, 4294930432  ;;  %s6048_s12 = sshll.u32 %s356_s14, 8  ;;  %s6968_s2 = smul.u32 13, %s356_s14 }
  0xc6   : > { %s8052_s13 = scalar_lea.vmem [#allocation6], %s6048_s12  ;;  %s384_s5 = scalar_lea.sflag [#allocation8], %s365_s18 }
  0xc7   : > { %s8054_s29 = scalar_lea.vmem [#allocation7], %s6968_s2 }
  0xc8   : > { %7702 = dma.done.wait (%p8965_p9), %s384_s5, 208  }
  0xc9   : > { %7704 = vsyncadd (%p8965_p9), %s384_s5, 4294967088  ;;  %p8966_p6 = scmp.eq.s32.totalorder %s7803_s28, 0 }
  0xcb   : > { %7706 = dma.done.wait (%p8966_p6), [#allocation8], 3072   ;;  %p8967_p8 = pmov %p8966_p6 }
  0xcc   : > { %p8968_p12 = pmov %p8966_p6 }
  0xcd   : > { %7708 = vsyncadd (%p8967_p8), [#allocation8], 4294964224 }
  0xce   : > { %7710 = dma.done.wait (%p8968_p12), [#allocation11], 64   ;;  %p8969_p2 = pmov %p8966_p6 }
  0xcf   : > { %p441_p4 = scmp.lt.s32.totalorder %s7803_s28, 2  ;;  %p8970_p7 = scmp.ne.s32.totalorder %s7803_s28, 0 }
  0xd0   : > { %7712 = vsyncadd (%p8969_p2), [#allocation11], 4294967232  ;;  %v7741_v0 = vmov (!%p8970_p7), 0.0  }
  0xd1   : > { %s442_s26 = scalar_select %p441_p4, %s7803_s28, 2 }
  0xd2   : > { %450 = sbr.rel (%p8970_p7) target bundleno = 217 (0xd9), region = 76  ;;  %451 = vst [vmem:[%s8923_s7] sm:$0xff] (!%p8970_p7), %v7741_v0 }
  0xd3   : > { %s6969_s16 = smul.u32 24, %s442_s26 }
  0xd5   : > { %s8073_s22 = scalar_lea.vmem %s8916_s0, %s6969_s16 }
  0xd9 PF: > { %v458_v1 = vld [vmem:[%s8039_s17] sm:$0xff]  ;;  %v459_v3 = vld [vmem:[%s8039_s17 + $0x8] sm:$0xff]  ;;  %p6732_p13 = scmp.ne.s32.totalorder %s7803_s28, 2 }
  0xda   : > { %v462_v2 = vld [vmem:[%s8039_s17 + $0x20] sm:$0xff]  ;;  %v463_v5 = vld [vmem:[%s8039_s17 + $0x28] sm:$0xff]  ;;  %vm7743_vm0 = vmmov (!%p6732_p13), 0  }
  0xdb   : > { %v6060_v4 = vcombine.high %v458_v1, %v462_v2  ;;  %v6059_v6 = vcombine.low %v458_v1, %v462_v2  ;;  %v466_v7 = vld [vmem:[%s8039_s17 + $0x40] sm:$0xff]  ;;  %v6062_v9 = vcombine.high %v459_v3, %v463_v5  ;;  %v6061_v10 = vcombine.low %v459_v3, %v463_v5  ;;  %v467_v12 = vld [vmem:[%s8039_s17 + $0x48] sm:$0xff] }
  0xdc   : > { %v470_v8 = vld [vmem:[%s8039_s17 + $0x60] sm:$0xff]  ;;  %v471_v13 = vld [vmem:[%s8039_s17 + $0x68] sm:$0xff] }
  0xdd   : > { %v6068_v11 = vcombine.high %v466_v7, %v470_v8  ;;  %v474_v14 = vld [vmem:[%s8039_s17 + $0x80] sm:$0xff]  ;;  %2824 = vmatprep.subr.bf16.mxu0 %v6060_v4  ;;  %v6070_v15 = vcombine.high %v467_v12, %v471_v13  ;;  %v475_v17 = vld [vmem:[%s8039_s17 + $0x88] sm:$0xff]  ;;  %2947 = vmatprep.subr.bf16.mxu1 %v6062_v9  ;;  %v6067_v19 = vcombine.low %v466_v7, %v470_v8 }
  0xde   : > { %v478_v16 = vld [vmem:[%s8039_s17 + $0xa0] sm:$0xff]  ;;  %v479_v18 = vld [vmem:[%s8039_s17 + $0xa8] sm:$0xff]  ;;  %2825 = vmatpush1.bf16.msra.mxu0 %v6059_v6  ;;  %2948 = vmatpush1.bf16.msra.mxu1 %v6061_v10  ;;  %v6069_v20 = vcombine.low %v467_v12, %v471_v13 }
  0xdf   : > { %2826 = vmatprep.subr.bf16.mxu0 %v6068_v11  ;;  %v6076_v21 = vcombine.high %v474_v14, %v478_v16  ;;  %2949 = vmatprep.subr.bf16.mxu1 %v6070_v15  ;;  %v6078_v22 = vcombine.high %v475_v17, %v479_v18  ;;  %v482_v23 = vld [vmem:[%s8039_s17 + $0xc0] sm:$0xff]  ;;  %v483_v25 = vld [vmem:[%s8039_s17 + $0xc8] sm:$0xff]  ;;  %v6075_v27 = vcombine.low %v474_v14, %v478_v16 }
  0xe0   : > { %v486_v24 = vld [vmem:[%s8039_s17 + $0xe0] sm:$0xff]  ;;  %v487_v26 = vld [vmem:[%s8039_s17 + $0xe8] sm:$0xff]  ;;  %v6077_v28 = vcombine.low %v475_v17, %v479_v18 }
  0xe1   : > { %v6084_v29 = vcombine.high %v482_v23, %v486_v24  ;;  %v6086_v30 = vcombine.high %v483_v25, %v487_v26  ;;  %v490_v31 = vld [vmem:[%s8039_s17 + $0x100] sm:$0xff]  ;;  %v491_v33 = vld [vmem:[%s8039_s17 + $0x108] sm:$0xff]  ;;  %v6083_v35 = vcombine.low %v482_v23, %v486_v24  ;;  %v6085_v36 = vcombine.low %v483_v25, %v487_v26 }
  0xe2   : > { %2827 = vmatpush1.bf16.msra.mxu0 %v6067_v19  ;;  %2950 = vmatpush1.bf16.msra.mxu1 %v6069_v20  ;;  %v494_v32 = vld [vmem:[%s8039_s17 + $0x120] sm:$0xff]  ;;  %v495_v34 = vld [vmem:[%s8039_s17 + $0x128] sm:$0xff] }
  0xe3   : > { %2828 = vmatprep.subr.bf16.mxu0 %v6076_v21  ;;  %2951 = vmatprep.subr.bf16.mxu1 %v6078_v22  ;;  %v6092_v37 = vcombine.high %v490_v31, %v494_v32  ;;  %v6094_v38 = vcombine.high %v491_v33, %v495_v34  ;;  %v498_v39 = vld [vmem:[%s8039_s17 + $0x140] sm:$0xff]  ;;  %v499_v41 = vld [vmem:[%s8039_s17 + $0x148] sm:$0xff]  ;;  %v6091_v43 = vcombine.low %v490_v31, %v494_v32 }
  0xe4   : > { %v502_v40 = vld [vmem:[%s8039_s17 + $0x160] sm:$0xff]  ;;  %v503_v42 = vld [vmem:[%s8039_s17 + $0x168] sm:$0xff]  ;;  %v6093_v44 = vcombine.low %v491_v33, %v495_v34 }
  0xe5   : > { %v6100_v45 = vcombine.high %v498_v39, %v502_v40  ;;  %v6102_v46 = vcombine.high %v499_v41, %v503_v42  ;;  %v506_v47 = vld [vmem:[%s8039_s17 + $0x180] sm:$0xff]  ;;  %v507_v49 = vld [vmem:[%s8039_s17 + $0x188] sm:$0xff]  ;;  %v6099_v51 = vcombine.low %v498_v39, %v502_v40  ;;  %v6101_v52 = vcombine.low %v499_v41, %v503_v42 }
  0xe6   : > { %2829 = vmatpush1.bf16.msra.mxu0 %v6075_v27  ;;  %2952 = vmatpush1.bf16.msra.mxu1 %v6077_v28  ;;  %v510_v48 = vld [vmem:[%s8039_s17 + $0x1a0] sm:$0xff]  ;;  %v511_v50 = vld [vmem:[%s8039_s17 + $0x1a8] sm:$0xff] }
  0xe7   : > { %2830 = vmatprep.subr.bf16.mxu0 %v6084_v29  ;;  %2953 = vmatprep.subr.bf16.mxu1 %v6086_v30  ;;  %v6108_v53 = vcombine.high %v506_v47, %v510_v48  ;;  %v8109_v54 = vld [vmem:[%s8073_s22] sm:$0xff]  ;;  %v6110_v55 = vcombine.high %v507_v49, %v511_v50  ;;  %v515_v59 = vld [vmem:[%s8039_s17 + $0x1c8] sm:$0xff]  ;;  %v6107_v61 = vcombine.low %v506_v47, %v510_v48 }
  0xe8   : > { %v514_v56 = vld [vmem:[%s8039_s17 + $0x1c0] sm:$0xff]  ;;  %v8115_v58 = vcombine.high %v8109_v54, %v8109_v54  ;;  %v519_v60 = vld [vmem:[%s8039_s17 + $0x1e8] sm:$0xff]  ;;  %v6109_v62 = vcombine.low %v507_v49, %v511_v50 }
  0xe9   : > { %v518_v57 = vld [vmem:[%s8039_s17 + $0x1e0] sm:$0xff]  ;;  %v6118_v0 = vcombine.high %v515_v59, %v519_v60  ;;  %v523_v3 = vld [vmem:[%s8039_s17 + $0x208] sm:$0xff]  ;;  %v6117_v6 = vcombine.low %v515_v59, %v519_v60 }
  0xea   : > { %2831 = vmatpush1.bf16.msra.mxu0 %v6083_v35  ;;  %2954 = vmatpush1.bf16.msra.mxu1 %v6085_v36  ;;  %v6116_v63 = vcombine.high %v514_v56, %v518_v57  ;;  %v522_v1 = vld [vmem:[%s8039_s17 + $0x200] sm:$0xff]  ;;  %v527_v4 = vld [vmem:[%s8039_s17 + $0x228] sm:$0xff]  ;;  %v6115_v5 = vcombine.low %v514_v56, %v518_v57 }
  0xeb   : > { %2832 = vmatprep.subr.bf16.mxu0 %v6092_v37  ;;  %2955 = vmatprep.subr.bf16.mxu1 %v6094_v38  ;;  %v526_v2 = vld [vmem:[%s8039_s17 + $0x220] sm:$0xff]  ;;  %v6126_v8 = vcombine.high %v523_v3, %v527_v4  ;;  %v531_v11 = vld [vmem:[%s8039_s17 + $0x248] sm:$0xff]  ;;  %v6125_v14 = vcombine.low %v523_v3, %v527_v4 }
  0xec   : > { %2856 = vmatprep.mubr.bf16.mxu0 %v8115_v58  ;;  %2979 = vmatprep.mubr.bf16.mxu1 %v8115_v58  ;;  %v6124_v7 = vcombine.high %v522_v1, %v526_v2  ;;  %v530_v9 = vld [vmem:[%s8039_s17 + $0x240] sm:$0xff]  ;;  %v535_v12 = vld [vmem:[%s8039_s17 + $0x268] sm:$0xff]  ;;  %v6123_v13 = vcombine.low %v522_v1, %v526_v2 }
  0xed   : > { %v534_v10 = vld [vmem:[%s8039_s17 + $0x260] sm:$0xff]  ;;  %v6134_v16 = vcombine.high %v531_v11, %v535_v12  ;;  %v539_v19 = vld [vmem:[%s8039_s17 + $0x288] sm:$0xff]  ;;  %v6133_v22 = vcombine.low %v531_v11, %v535_v12 }
  0xee   : > { %2833 = vmatpush1.bf16.msra.mxu0 %v6091_v43  ;;  %2956 = vmatpush1.bf16.msra.mxu1 %v6093_v44  ;;  %v6132_v15 = vcombine.high %v530_v9, %v534_v10  ;;  %v538_v17 = vld [vmem:[%s8039_s17 + $0x280] sm:$0xff]  ;;  %v543_v20 = vld [vmem:[%s8039_s17 + $0x2a8] sm:$0xff]  ;;  %v6131_v21 = vcombine.low %v530_v9, %v534_v10 }
  0xef   : > { %2834 = vmatprep.subr.bf16.mxu0 %v6100_v45  ;;  %2957 = vmatprep.subr.bf16.mxu1 %v6102_v46  ;;  %v542_v18 = vld [vmem:[%s8039_s17 + $0x2a0] sm:$0xff]  ;;  %v6142_v24 = vcombine.high %v539_v19, %v543_v20  ;;  %v547_v27 = vld [vmem:[%s8039_s17 + $0x2c8] sm:$0xff]  ;;  %v6141_v30 = vcombine.low %v539_v19, %v543_v20 }
  0xf0   : > { %v6140_v23 = vcombine.high %v538_v17, %v542_v18  ;;  %v546_v25 = vld [vmem:[%s8039_s17 + $0x2c0] sm:$0xff]  ;;  %v551_v28 = vld [vmem:[%s8039_s17 + $0x2e8] sm:$0xff]  ;;  %v6139_v29 = vcombine.low %v538_v17, %v542_v18 }
  0xf1   : > { %v550_v26 = vld [vmem:[%s8039_s17 + $0x2e0] sm:$0xff]  ;;  %v6150_v32 = vcombine.high %v547_v27, %v551_v28  ;;  %v555_v35 = vld [vmem:[%s8039_s17 + $0x308] sm:$0xff]  ;;  %v6149_v38 = vcombine.low %v547_v27, %v551_v28 }
  0xf2   : > { %2835 = vmatpush1.bf16.msra.mxu0 %v6099_v51  ;;  %2958 = vmatpush1.bf16.msra.mxu1 %v6101_v52  ;;  %v6148_v31 = vcombine.high %v546_v25, %v550_v26  ;;  %v554_v33 = vld [vmem:[%s8039_s17 + $0x300] sm:$0xff]  ;;  %v559_v36 = vld [vmem:[%s8039_s17 + $0x328] sm:$0xff]  ;;  %v6147_v37 = vcombine.low %v546_v25, %v550_v26 }
  0xf3   : > { %2836 = vmatprep.subr.bf16.mxu0 %v6108_v53  ;;  %2959 = vmatprep.subr.bf16.mxu1 %v6110_v55  ;;  %v558_v34 = vld [vmem:[%s8039_s17 + $0x320] sm:$0xff]  ;;  %v6158_v40 = vcombine.high %v555_v35, %v559_v36  ;;  %v563_v43 = vld [vmem:[%s8039_s17 + $0x348] sm:$0xff]  ;;  %v6157_v46 = vcombine.low %v555_v35, %v559_v36 }
  0xf4   : > { %v6156_v39 = vcombine.high %v554_v33, %v558_v34  ;;  %v562_v41 = vld [vmem:[%s8039_s17 + $0x340] sm:$0xff]  ;;  %v567_v44 = vld [vmem:[%s8039_s17 + $0x368] sm:$0xff]  ;;  %v6155_v45 = vcombine.low %v554_v33, %v558_v34 }
  0xf5   : > { %v566_v42 = vld [vmem:[%s8039_s17 + $0x360] sm:$0xff]  ;;  %v6166_v48 = vcombine.high %v563_v43, %v567_v44  ;;  %v571_v51 = vld [vmem:[%s8039_s17 + $0x388] sm:$0xff]  ;;  %v6165_v55 = vcombine.low %v563_v43, %v567_v44 }
  0xf6   : > { %2837 = vmatpush1.bf16.msra.mxu0 %v6107_v61  ;;  %2960 = vmatpush1.bf16.msra.mxu1 %v6109_v62  ;;  %v6164_v47 = vcombine.high %v562_v41, %v566_v42  ;;  %v570_v49 = vld [vmem:[%s8039_s17 + $0x380] sm:$0xff]  ;;  %v575_v52 = vld [vmem:[%s8039_s17 + $0x3a8] sm:$0xff]  ;;  %v6163_v53 = vcombine.low %v562_v41, %v566_v42 }
  0xf7   : > { %2838 = vmatprep.subr.bf16.mxu0 %v6116_v63  ;;  %2961 = vmatprep.subr.bf16.mxu1 %v6118_v0  ;;  %v574_v50 = vld [vmem:[%s8039_s17 + $0x3a0] sm:$0xff]  ;;  %v6174_v57 = vcombine.high %v571_v51, %v575_v52  ;;  %v579_v61 = vld [vmem:[%s8039_s17 + $0x3c8] sm:$0xff]  ;;  %v6173_v0 = vcombine.low %v571_v51, %v575_v52 }
  0xf8   : > { %v6172_v56 = vcombine.high %v570_v49, %v574_v50  ;;  %v578_v59 = vld [vmem:[%s8039_s17 + $0x3c0] sm:$0xff]  ;;  %v583_v62 = vld [vmem:[%s8039_s17 + $0x3e8] sm:$0xff]  ;;  %v6171_v63 = vcombine.low %v570_v49, %v574_v50 }
  0xf9   : > { %v582_v60 = vld [vmem:[%s8039_s17 + $0x3e0] sm:$0xff]  ;;  %v6182_v2 = vcombine.high %v579_v61, %v583_v62 }
  0xfa   : > { %2839 = vmatpush1.bf16.msra.mxu0 %v6115_v5  ;;  %2962 = vmatpush1.bf16.msra.mxu1 %v6117_v6  ;;  %v6180_v1 = vcombine.high %v578_v59, %v582_v60  ;;  %v586_v3 = vld [vmem:[%s8039_s17 + $0x400] sm:$0xff]  ;;  %v587_v5 = vld [vmem:[%s8039_s17 + $0x408] sm:$0xff] }
  0xfb   : > { %2840 = vmatprep.subr.bf16.mxu0 %v6124_v7  ;;  %2963 = vmatprep.subr.bf16.mxu1 %v6126_v8  ;;  %v590_v4 = vld [vmem:[%s8039_s17 + $0x420] sm:$0xff]  ;;  %v591_v6 = vld [vmem:[%s8039_s17 + $0x428] sm:$0xff]  ;;  %v6179_v7 = vcombine.low %v578_v59, %v582_v60  ;;  %v6181_v8 = vcombine.low %v579_v61, %v583_v62 }
  0xfc   : > { %v6188_v9 = vcombine.high %v586_v3, %v590_v4  ;;  %v6190_v10 = vcombine.high %v587_v5, %v591_v6  ;;  %v594_v11 = vld [vmem:[%s8039_s17 + $0x440] sm:$0xff]  ;;  %v6187_v17 = vcombine.low %v586_v3, %v590_v4  ;;  %v6189_v18 = vcombine.low %v587_v5, %v591_v6 }
  0xfd   : > { %v598_v12 = vld [vmem:[%s8039_s17 + $0x460] sm:$0xff] }
  0xfe   : > { %2841 = vmatpush1.bf16.msra.mxu0 %v6123_v13  ;;  %2964 = vmatpush1.bf16.msra.mxu1 %v6125_v14  ;;  %v8161_v13 = vcombine.low %v8109_v54, %v8109_v54  ;;  %v595_v14 = vld [vmem:[%s8039_s17 + $0x448] sm:$0xff]  ;;  %v6196_v19 = vcombine.high %v594_v11, %v598_v12  ;;  %v602_v20 = vld [vmem:[%s8039_s17 + $0x480] sm:$0xff]  ;;  %v6195_v25 = vcombine.low %v594_v11, %v598_v12 }
  0xff   : > { %2842 = vmatprep.subr.bf16.mxu0 %v6132_v15  ;;  %2965 = vmatprep.subr.bf16.mxu1 %v6134_v16  ;;  %v599_v15 = vld [vmem:[%s8039_s17 + $0x468] sm:$0xff]  ;;  %v610_v28 = vld [vmem:[%s8039_s17 + $0x4c0] sm:$0xff] }
 0x100   : > { %v8166_v16 = vld [vmem:[%s8073_s22 + $0x8] sm:$0xff]  ;;  %v6197_v26 = vcombine.low %v595_v14, %v599_v15  ;;  %v618_v36 = vld [vmem:[%s8039_s17 + $0x500] sm:$0xff] }
 0x101   : > { %v607_v54 = vld [vmem:[%s8039_s17 + $0x4a8] sm:$0xff]  ;;  %v626_v44 = vld [vmem:[%s8039_s17 + $0x540] sm:$0xff] }
 0x102   : > { %2843 = vmatpush1.bf16.msra.mxu0 %v6131_v21  ;;  %2966 = vmatpush1.bf16.msra.mxu1 %v6133_v22  ;;  %v606_v21 = vld [vmem:[%s8039_s17 + $0x4a0] sm:$0xff]  ;;  %v603_v22 = vld [vmem:[%s8039_s17 + $0x488] sm:$0xff] }
 0x103   : > { %2844 = vmatprep.subr.bf16.mxu0 %v6140_v23  ;;  %2967 = vmatprep.subr.bf16.mxu1 %v6142_v24  ;;  %v6198_v23 = vcombine.high %v595_v14, %v599_v15  ;;  %v8174_v24 = vcombine.high %v8166_v16, %v8166_v16  ;;  %v6204_v27 = vcombine.high %v602_v20, %v606_v21  ;;  %v634_v52 = vld [vmem:[%s8039_s17 + $0x580] sm:$0xff] }
 0x104   : > { %v6203_v33 = vcombine.low %v602_v20, %v606_v21  ;;  %v6205_v34 = vcombine.low %v603_v22, %v607_v54  ;;  %v642_v62 = vld [vmem:[%s8039_s17 + $0x5c0] sm:$0xff]  ;;  %v663_v20 = vld [vmem:[%s8039_s17 + $0x668] sm:$0xff] }
 0x105   : > { %v650_v6 = vld [vmem:[%s8039_s17 + $0x600] sm:$0xff] }
 0x106   : > { %2845 = vmatpush1.bf16.msra.mxu0 %v6139_v29  ;;  %2968 = vmatpush1.bf16.msra.mxu1 %v6141_v30  ;;  %v614_v29 = vld [vmem:[%s8039_s17 + $0x4e0] sm:$0xff]  ;;  %v611_v30 = vld [vmem:[%s8039_s17 + $0x4c8] sm:$0xff] }
 0x107   : > { %2846 = vmatprep.subr.bf16.mxu0 %v6148_v31  ;;  %2969 = vmatprep.subr.bf16.mxu1 %v6150_v32  ;;  %v6206_v31 = vcombine.high %v603_v22, %v607_v54  ;;  %v615_v32 = vld [vmem:[%s8039_s17 + $0x4e8] sm:$0xff]  ;;  %v6212_v35 = vcombine.high %v610_v28, %v614_v29  ;;  %v6211_v41 = vcombine.low %v610_v28, %v614_v29  ;;  %v658_v15 = vld [vmem:[%s8039_s17 + $0x640] sm:$0xff] }
 0x108   : > { %v6213_v42 = vcombine.low %v611_v30, %v615_v32  ;;  %v666_v54 = vld [vmem:[%s8039_s17 + $0x680] sm:$0xff]  ;;  %v671_v28 = vld [vmem:[%s8039_s17 + $0x6a8] sm:$0xff] }
 0x10a   : > { %2847 = vmatpush1.bf16.msra.mxu0 %v6147_v37  ;;  %2970 = vmatpush1.bf16.msra.mxu1 %v6149_v38  ;;  %v622_v37 = vld [vmem:[%s8039_s17 + $0x520] sm:$0xff]  ;;  %v619_v38 = vld [vmem:[%s8039_s17 + $0x508] sm:$0xff] }
 0x10b   : > { %2848 = vmatprep.subr.bf16.mxu0 %v6156_v39  ;;  %2971 = vmatprep.subr.bf16.mxu1 %v6158_v40  ;;  %v6214_v39 = vcombine.high %v611_v30, %v615_v32  ;;  %v623_v40 = vld [vmem:[%s8039_s17 + $0x528] sm:$0xff]  ;;  %v6220_v43 = vcombine.high %v618_v36, %v622_v37  ;;  %v6219_v49 = vcombine.low %v618_v36, %v622_v37  ;;  %v674_v32 = vld [vmem:[%s8039_s17 + $0x6c0] sm:$0xff] }
 0x10c   : > { %v6221_v50 = vcombine.low %v619_v38, %v623_v40  ;;  %v679_v36 = vld [vmem:[%s8039_s17 + $0x6e8] sm:$0xff] }
 0x10e   : > { %2849 = vmatpush1.bf16.msra.mxu0 %v6155_v45  ;;  %2972 = vmatpush1.bf16.msra.mxu1 %v6157_v46  ;;  %v630_v45 = vld [vmem:[%s8039_s17 + $0x560] sm:$0xff]  ;;  %v627_v46 = vld [vmem:[%s8039_s17 + $0x548] sm:$0xff] }
 0x10f   : > { %2850 = vmatprep.subr.bf16.mxu0 %v6164_v47  ;;  %2973 = vmatprep.subr.bf16.mxu1 %v6166_v48  ;;  %v6222_v47 = vcombine.high %v619_v38, %v623_v40  ;;  %v631_v48 = vld [vmem:[%s8039_s17 + $0x568] sm:$0xff]  ;;  %v6228_v51 = vcombine.high %v626_v44, %v630_v45  ;;  %v6227_v59 = vcombine.low %v626_v44, %v630_v45  ;;  %v682_v40 = vld [vmem:[%s8039_s17 + $0x700] sm:$0xff] }
 0x110   : > { %v6229_v60 = vcombine.low %v627_v46, %v631_v48  ;;  %v687_v44 = vld [vmem:[%s8039_s17 + $0x728] sm:$0xff] }
 0x112   : > { %2851 = vmatpush1.bf16.msra.mxu0 %v6163_v53  ;;  %2974 = vmatpush1.bf16.msra.mxu1 %v6165_v55  ;;  %v638_v53 = vld [vmem:[%s8039_s17 + $0x5a0] sm:$0xff]  ;;  %v635_v55 = vld [vmem:[%s8039_s17 + $0x588] sm:$0xff] }
 0x113   : > { %2852 = vmatprep.subr.bf16.mxu0 %v6172_v56  ;;  %2975 = vmatprep.subr.bf16.mxu1 %v6174_v57  ;;  %v6230_v56 = vcombine.high %v627_v46, %v631_v48  ;;  %v639_v57 = vld [vmem:[%s8039_s17 + $0x5a8] sm:$0xff]  ;;  %v6236_v61 = vcombine.high %v634_v52, %v638_v53  ;;  %v6235_v3 = vcombine.low %v634_v52, %v638_v53  ;;  %v690_v48 = vld [vmem:[%s8039_s17 + $0x740] sm:$0xff] }
 0x114   : > { %v6237_v4 = vcombine.low %v635_v55, %v639_v57  ;;  %v695_v52 = vld [vmem:[%s8039_s17 + $0x768] sm:$0xff] }
 0x116   : > { %2853 = vmatpush1.bf16.msra.mxu0 %v6171_v63  ;;  %2976 = vmatpush1.bf16.msra.mxu1 %v6173_v0  ;;  %v646_v63 = vld [vmem:[%s8039_s17 + $0x5e0] sm:$0xff]  ;;  %v643_v0 = vld [vmem:[%s8039_s17 + $0x5c8] sm:$0xff] }
 0x117   : > { %2854 = vmatprep.subr.bf16.mxu0 %v6180_v1  ;;  %2977 = vmatprep.subr.bf16.mxu1 %v6182_v2  ;;  %v6238_v1 = vcombine.high %v635_v55, %v639_v57  ;;  %v647_v2 = vld [vmem:[%s8039_s17 + $0x5e8] sm:$0xff]  ;;  %v6244_v5 = vcombine.high %v642_v62, %v646_v63  ;;  %v6243_v11 = vcombine.low %v642_v62, %v646_v63  ;;  %v698_v57 = vld [vmem:[%s8039_s17 + $0x780] sm:$0xff] }
 0x118   : > { %v6245_v12 = vcombine.low %v643_v0, %v647_v2  ;;  %v703_v62 = vld [vmem:[%s8039_s17 + $0x7a8] sm:$0xff] }
 0x11a   : > { %2855 = vmatpush1.bf16.msra.mxu0 %v6179_v7  ;;  %2978 = vmatpush1.bf16.msra.mxu1 %v6181_v8  ;;  %v654_v7 = vld [vmem:[%s8039_s17 + $0x620] sm:$0xff]  ;;  %v651_v8 = vld [vmem:[%s8039_s17 + $0x608] sm:$0xff] }
 0x11b   : > { %2865 = vmatprep.subr.bf16.mxu0 %v6188_v9  ;;  %2988 = vmatprep.subr.bf16.mxu1 %v6190_v10  ;;  %v6246_v9 = vcombine.high %v643_v0, %v647_v2  ;;  %v655_v10 = vld [vmem:[%s8039_s17 + $0x628] sm:$0xff]  ;;  %v6252_v14 = vcombine.high %v650_v6, %v654_v7  ;;  %v6251_v21 = vcombine.low %v650_v6, %v654_v7  ;;  %v706_v2 = vld [vmem:[%s8039_s17 + $0x7c0] sm:$0xff] }
 0x11c   : > { %v6253_v22 = vcombine.low %v651_v8, %v655_v10  ;;  %v711_v6 = vld [vmem:[%s8039_s17 + $0x7e8] sm:$0xff] }
 0x11d   : > { %2857 = vmatmul.mubr.bf16.vlgmr.msra.gmra.mrb[0].mxu0 %v8161_v13  ;;  %2980 = vmatmul.mubr.bf16.vlgmr.msra.gmra.mrb[0].mxu1 %v8161_v13 }
 0x11e   : > { %2866 = vmatpush1.bf16.msra.mxu0 %v6187_v17  ;;  %2989 = vmatpush1.bf16.msra.mxu1 %v6189_v18  ;;  %v662_v17 = vld [vmem:[%s8039_s17 + $0x660] sm:$0xff]  ;;  %v659_v18 = vld [vmem:[%s8039_s17 + $0x648] sm:$0xff] }
 0x11f   : > { %2867 = vmatprep.subr.bf16.mxu0 %v6196_v19  ;;  %2990 = vmatprep.subr.bf16.mxu1 %v6198_v23  ;;  %v6254_v19 = vcombine.high %v651_v8, %v655_v10  ;;  %v6260_v23 = vcombine.high %v658_v15, %v662_v17  ;;  %v6259_v29 = vcombine.low %v658_v15, %v662_v17  ;;  %v714_v10 = vld [vmem:[%s8039_s17 + $0x800] sm:$0xff]  ;;  %v719_v15 = vld [vmem:[%s8039_s17 + $0x828] sm:$0xff] }
 0x120   : > { %2897 = vmatprep.mubr.bf16.mxu0 %v8174_v24  ;;  %3020 = vmatprep.mubr.bf16.mxu1 %v8174_v24  ;;  %v6261_v30 = vcombine.low %v659_v18, %v663_v20 }
 0x122   : > { %2868 = vmatpush1.bf16.msra.mxu0 %v6195_v25  ;;  %2991 = vmatpush1.bf16.msra.mxu1 %v6197_v26  ;;  %v670_v25 = vld [vmem:[%s8039_s17 + $0x6a0] sm:$0xff]  ;;  %v667_v26 = vld [vmem:[%s8039_s17 + $0x688] sm:$0xff] }
 0x123   : > { %2869 = vmatprep.subr.bf16.mxu0 %v6204_v27  ;;  %2992 = vmatprep.subr.bf16.mxu1 %v6206_v31  ;;  %v6262_v27 = vcombine.high %v659_v18, %v663_v20  ;;  %v6268_v31 = vcombine.high %v666_v54, %v670_v25  ;;  %v6267_v37 = vcombine.low %v666_v54, %v670_v25  ;;  %v722_v18 = vld [vmem:[%s8039_s17 + $0x840] sm:$0xff]  ;;  %v8241_v25 = vld [vmem:[%s8073_s22 + $0x10] sm:$0xff] }
 0x124   : > { %v6269_v38 = vcombine.low %v667_v26, %v671_v28 }
 0x126   : > { %2870 = vmatpush1.bf16.msra.mxu0 %v6203_v33  ;;  %2993 = vmatpush1.bf16.msra.mxu1 %v6205_v34  ;;  %v678_v33 = vld [vmem:[%s8039_s17 + $0x6e0] sm:$0xff]  ;;  %v675_v34 = vld [vmem:[%s8039_s17 + $0x6c8] sm:$0xff] }
 0x127   : > { %2871 = vmatprep.subr.bf16.mxu0 %v6212_v35  ;;  %2994 = vmatprep.subr.bf16.mxu1 %v6214_v39  ;;  %v6270_v35 = vcombine.high %v667_v26, %v671_v28  ;;  %v6276_v39 = vcombine.high %v674_v32, %v678_v33  ;;  %v6275_v45 = vcombine.low %v674_v32, %v678_v33  ;;  %v731_v32 = vld [vmem:[%s8039_s17 + $0x888] sm:$0xff] }
 0x128   : > { %v6277_v46 = vcombine.low %v675_v34, %v679_v36  ;;  %v8245_v26 = vcombine.low %v8166_v16, %v8166_v16  ;;  %v8253_v16 = vcombine.high %v8241_v25, %v8241_v25 }
 0x12a   : > { %2872 = vmatpush1.bf16.msra.mxu0 %v6211_v41  ;;  %2995 = vmatpush1.bf16.msra.mxu1 %v6213_v42  ;;  %v686_v41 = vld [vmem:[%s8039_s17 + $0x720] sm:$0xff]  ;;  %v683_v42 = vld [vmem:[%s8039_s17 + $0x708] sm:$0xff] }
 0x12b   : > { %2873 = vmatprep.subr.bf16.mxu0 %v6220_v43  ;;  %2996 = vmatprep.subr.bf16.mxu1 %v6222_v47  ;;  %v6278_v43 = vcombine.high %v675_v34, %v679_v36  ;;  %v6284_v47 = vcombine.high %v682_v40, %v686_v41  ;;  %v6283_v53 = vcombine.low %v682_v40, %v686_v41  ;;  %v735_v34 = vld [vmem:[%s8039_s17 + $0x8a8] sm:$0xff] }
 0x12c   : > { %v6285_v55 = vcombine.low %v683_v42, %v687_v44  ;;  %v739_v40 = vld [vmem:[%s8039_s17 + $0x8c8] sm:$0xff]  ;;  %v6334_v41 = vcombine.high %v731_v32, %v735_v34 }
 0x12e   : > { %2874 = vmatpush1.bf16.msra.mxu0 %v6219_v49  ;;  %2997 = vmatpush1.bf16.msra.mxu1 %v6221_v50  ;;  %v694_v49 = vld [vmem:[%s8039_s17 + $0x760] sm:$0xff]  ;;  %v691_v50 = vld [vmem:[%s8039_s17 + $0x748] sm:$0xff] }
 0x12f   : > { %2875 = vmatprep.subr.bf16.mxu0 %v6228_v51  ;;  %2998 = vmatprep.subr.bf16.mxu1 %v6230_v56  ;;  %v6286_v51 = vcombine.high %v683_v42, %v687_v44  ;;  %v6292_v56 = vcombine.high %v690_v48, %v694_v49  ;;  %v6291_v63 = vcombine.low %v690_v48, %v694_v49  ;;  %v743_v42 = vld [vmem:[%s8039_s17 + $0x8e8] sm:$0xff] }
 0x130   : > { %v6293_v0 = vcombine.low %v691_v50, %v695_v52  ;;  %v6333_v44 = vcombine.low %v731_v32, %v735_v34  ;;  %v747_v48 = vld [vmem:[%s8039_s17 + $0x908] sm:$0xff]  ;;  %v6342_v49 = vcombine.high %v739_v40, %v743_v42 }
 0x131   : > { %v791_v32 = vld [vmem:[%s8039_s17 + $0xa68] sm:$0xff] }
 0x132   : > { %2876 = vmatpush1.bf16.msra.mxu0 %v6227_v59  ;;  %2999 = vmatpush1.bf16.msra.mxu1 %v6229_v60  ;;  %v702_v59 = vld [vmem:[%s8039_s17 + $0x7a0] sm:$0xff]  ;;  %v699_v60 = vld [vmem:[%s8039_s17 + $0x788] sm:$0xff] }
 0x133   : > { %2877 = vmatprep.subr.bf16.mxu0 %v6236_v61  ;;  %3000 = vmatprep.subr.bf16.mxu1 %v6238_v1  ;;  %v6294_v61 = vcombine.high %v691_v50, %v695_v52  ;;  %v6300_v1 = vcombine.high %v698_v57, %v702_v59  ;;  %v6299_v7 = vcombine.low %v698_v57, %v702_v59  ;;  %v751_v50 = vld [vmem:[%s8039_s17 + $0x928] sm:$0xff] }
 0x134   : > { %v6301_v8 = vcombine.low %v699_v60, %v703_v62  ;;  %v6341_v52 = vcombine.low %v739_v40, %v743_v42  ;;  %v755_v57 = vld [vmem:[%s8039_s17 + $0x948] sm:$0xff]  ;;  %v6350_v59 = vcombine.high %v747_v48, %v751_v50 }
 0x135   : > { %v799_v40 = vld [vmem:[%s8039_s17 + $0xaa8] sm:$0xff] }
 0x136   : > { %2878 = vmatpush1.bf16.msra.mxu0 %v6235_v3  ;;  %3001 = vmatpush1.bf16.msra.mxu1 %v6237_v4  ;;  %v710_v3 = vld [vmem:[%s8039_s17 + $0x7e0] sm:$0xff]  ;;  %v707_v4 = vld [vmem:[%s8039_s17 + $0x7c8] sm:$0xff] }
 0x137   : > { %2879 = vmatprep.subr.bf16.mxu0 %v6244_v5  ;;  %3002 = vmatprep.subr.bf16.mxu1 %v6246_v9  ;;  %v6302_v5 = vcombine.high %v699_v60, %v703_v62  ;;  %v6308_v9 = vcombine.high %v706_v2, %v710_v3  ;;  %v6307_v17 = vcombine.low %v706_v2, %v710_v3  ;;  %v759_v60 = vld [vmem:[%s8039_s17 + $0x968] sm:$0xff] }
 0x138   : > { %v6349_v62 = vcombine.low %v747_v48, %v751_v50  ;;  %v763_v2 = vld [vmem:[%s8039_s17 + $0x988] sm:$0xff]  ;;  %v6358_v3 = vcombine.high %v755_v57, %v759_v60 }
 0x139   : > { %v807_v48 = vld [vmem:[%s8039_s17 + $0xae8] sm:$0xff] }
 0x13a   : > { %2880 = vmatpush1.bf16.msra.mxu0 %v6243_v11  ;;  %3003 = vmatpush1.bf16.msra.mxu1 %v6245_v12  ;;  %v718_v11 = vld [vmem:[%s8039_s17 + $0x820] sm:$0xff]  ;;  %v715_v12 = vld [vmem:[%s8039_s17 + $0x808] sm:$0xff] }
 0x13b   : > { %2881 = vmatprep.subr.bf16.mxu0 %v6252_v14  ;;  %3004 = vmatprep.subr.bf16.mxu1 %v6254_v19  ;;  %v6310_v14 = vcombine.high %v707_v4, %v711_v6  ;;  %v6309_v19 = vcombine.low %v707_v4, %v711_v6  ;;  %v6316_v20 = vcombine.high %v714_v10, %v718_v11  ;;  %v767_v4 = vld [vmem:[%s8039_s17 + $0x9a8] sm:$0xff] }
 0x13c   : > { %v6318_v54 = vcombine.high %v715_v12, %v719_v15  ;;  %v6317_v28 = vcombine.low %v715_v12, %v719_v15  ;;  %v6357_v6 = vcombine.low %v755_v57, %v759_v60  ;;  %v775_v12 = vld [vmem:[%s8039_s17 + $0x9e8] sm:$0xff]  ;;  %v6365_v15 = vcombine.low %v763_v2, %v767_v4 }
 0x13d   : > { %v815_v57 = vld [vmem:[%s8039_s17 + $0xb28] sm:$0xff] }
 0x13e   : > { %2882 = vmatpush1.bf16.msra.mxu0 %v6251_v21  ;;  %3005 = vmatpush1.bf16.msra.mxu1 %v6253_v22  ;;  %v726_v21 = vld [vmem:[%s8039_s17 + $0x860] sm:$0xff]  ;;  %v723_v22 = vld [vmem:[%s8039_s17 + $0x848] sm:$0xff] }
 0x13f   : > { %2883 = vmatprep.subr.bf16.mxu0 %v6260_v23  ;;  %3006 = vmatprep.subr.bf16.mxu1 %v6262_v27  ;;  %v727_v23 = vld [vmem:[%s8039_s17 + $0x868] sm:$0xff]  ;;  %v6315_v27 = vcombine.low %v714_v10, %v718_v11  ;;  %v6366_v11 = vcombine.high %v763_v2, %v767_v4 }
 0x140   : > { %v6326_v33 = vcombine.high %v723_v22, %v727_v23  ;;  %v6325_v36 = vcombine.low %v723_v22, %v727_v23  ;;  %v771_v10 = vld [vmem:[%s8039_s17 + $0x9c8] sm:$0xff] }
 0x141   : > { %v783_v22 = vld [vmem:[%s8039_s17 + $0xa28] sm:$0xff] }
 0x142   : > { %2884 = vmatpush1.bf16.msra.mxu0 %v6259_v29  ;;  %3007 = vmatpush1.bf16.msra.mxu1 %v6261_v30  ;;  %v6324_v29 = vcombine.high %v722_v18, %v726_v21  ;;  %v730_v30 = vld [vmem:[%s8039_s17 + $0x880] sm:$0xff]  ;;  %v823_v2 = vld [vmem:[%s8039_s17 + $0xb68] sm:$0xff] }
 0x143   : > { %2885 = vmatprep.subr.bf16.mxu0 %v6268_v31  ;;  %3008 = vmatprep.subr.bf16.mxu1 %v6270_v35  ;;  %v734_v31 = vld [vmem:[%s8039_s17 + $0x8a0] sm:$0xff]  ;;  %v6323_v35 = vcombine.low %v722_v18, %v726_v21  ;;  %v6374_v21 = vcombine.high %v771_v10, %v775_v12 }
 0x144   : > { %v778_v18 = vld [vmem:[%s8039_s17 + $0xa00] sm:$0xff] }
 0x146   : > { %2886 = vmatpush1.bf16.msra.mxu0 %v6267_v37  ;;  %3009 = vmatpush1.bf16.msra.mxu1 %v6269_v38  ;;  %v6332_v37 = vcombine.high %v730_v30, %v734_v31  ;;  %v738_v38 = vld [vmem:[%s8039_s17 + $0x8c0] sm:$0xff] }
 0x147   : > { %2887 = vmatprep.subr.bf16.mxu0 %v6276_v39  ;;  %3010 = vmatprep.subr.bf16.mxu1 %v6278_v43  ;;  %v742_v39 = vld [vmem:[%s8039_s17 + $0x8e0] sm:$0xff]  ;;  %v6331_v43 = vcombine.low %v730_v30, %v734_v31  ;;  %v787_v30 = vld [vmem:[%s8039_s17 + $0xa48] sm:$0xff] }
 0x148   : > { %v6389_v42 = vcombine.low %v787_v30, %v791_v32 }
 0x14a   : > { %2888 = vmatpush1.bf16.msra.mxu0 %v6275_v45  ;;  %3011 = vmatpush1.bf16.msra.mxu1 %v6277_v46  ;;  %v6340_v45 = vcombine.high %v738_v38, %v742_v39  ;;  %v746_v46 = vld [vmem:[%s8039_s17 + $0x900] sm:$0xff] }
 0x14b   : > { %2889 = vmatprep.subr.bf16.mxu0 %v6284_v47  ;;  %3012 = vmatprep.subr.bf16.mxu1 %v6286_v51  ;;  %v750_v47 = vld [vmem:[%s8039_s17 + $0x920] sm:$0xff]  ;;  %v6339_v51 = vcombine.low %v738_v38, %v742_v39  ;;  %v795_v38 = vld [vmem:[%s8039_s17 + $0xa88] sm:$0xff]  ;;  %v6390_v39 = vcombine.high %v787_v30, %v791_v32  ;;  %v465_v30 = vld [vmem:[%s8039_s17 + $0x38] sm:$0xff] }
 0x14c   : > { %v6397_v50 = vcombine.low %v795_v38, %v799_v40 }
 0x14e   : > { %2890 = vmatpush1.bf16.msra.mxu0 %v6283_v53  ;;  %3013 = vmatpush1.bf16.msra.mxu1 %v6285_v55  ;;  %v6348_v53 = vcombine.high %v746_v46, %v750_v47  ;;  %v754_v55 = vld [vmem:[%s8039_s17 + $0x940] sm:$0xff] }
 0x14f   : > { %2891 = vmatprep.subr.bf16.mxu0 %v6292_v56  ;;  %3014 = vmatprep.subr.bf16.mxu1 %v6294_v61  ;;  %v758_v56 = vld [vmem:[%s8039_s17 + $0x960] sm:$0xff]  ;;  %v6347_v61 = vcombine.low %v746_v46, %v750_v47  ;;  %v803_v46 = vld [vmem:[%s8039_s17 + $0xac8] sm:$0xff]  ;;  %v6398_v47 = vcombine.high %v795_v38, %v799_v40  ;;  %v473_v38 = vld [vmem:[%s8039_s17 + $0x78] sm:$0xff] }
 0x150   : > { %v6405_v60 = vcombine.low %v803_v46, %v807_v48 }
 0x152   : > { %2892 = vmatpush1.bf16.msra.mxu0 %v6291_v63  ;;  %3015 = vmatpush1.bf16.msra.mxu1 %v6293_v0  ;;  %v6356_v63 = vcombine.high %v754_v55, %v758_v56  ;;  %v762_v0 = vld [vmem:[%s8039_s17 + $0x980] sm:$0xff] }
 0x153   : > { %2893 = vmatprep.subr.bf16.mxu0 %v6300_v1  ;;  %3016 = vmatprep.subr.bf16.mxu1 %v6302_v5  ;;  %v766_v1 = vld [vmem:[%s8039_s17 + $0x9a0] sm:$0xff]  ;;  %v6355_v5 = vcombine.low %v754_v55, %v758_v56  ;;  %v811_v55 = vld [vmem:[%s8039_s17 + $0xb08] sm:$0xff]  ;;  %v6406_v56 = vcombine.high %v803_v46, %v807_v48 }
 0x154   : > { %v6413_v4 = vcombine.low %v811_v55, %v815_v57 }
 0x156   : > { %2894 = vmatpush1.bf16.msra.mxu0 %v6299_v7  ;;  %3017 = vmatpush1.bf16.msra.mxu1 %v6301_v8  ;;  %v6364_v7 = vcombine.high %v762_v0, %v766_v1  ;;  %v770_v8 = vld [vmem:[%s8039_s17 + $0x9c0] sm:$0xff] }
 0x157   : > { %2895 = vmatprep.subr.bf16.mxu0 %v6308_v9  ;;  %3018 = vmatprep.subr.bf16.mxu1 %v6310_v14  ;;  %v774_v9 = vld [vmem:[%s8039_s17 + $0x9e0] sm:$0xff]  ;;  %v6363_v14 = vcombine.low %v762_v0, %v766_v1  ;;  %v819_v0 = vld [vmem:[%s8039_s17 + $0xb48] sm:$0xff]  ;;  %v6414_v1 = vcombine.high %v811_v55, %v815_v57  ;;  %v489_v55 = vld [vmem:[%s8039_s17 + $0xf8] sm:$0xff] }
 0x158   : > { %v6371_v23 = vcombine.low %v770_v8, %v774_v9 }
 0x15a   : > { %2896 = vmatpush1.bf16.msra.mxu0 %v6307_v17  ;;  %3019 = vmatpush1.bf16.msra.mxu1 %v6309_v19  ;;  %v6372_v17 = vcombine.high %v770_v8, %v774_v9  ;;  %v782_v19 = vld [vmem:[%s8039_s17 + $0xa20] sm:$0xff]  ;;  %v827_v8 = vld [vmem:[%s8039_s17 + $0xb88] sm:$0xff]  ;;  %v6422_v9 = vcombine.high %v819_v0, %v823_v2 }
 0x15b   : > { %2906 = vmatprep.subr.bf16.mxu0 %v6316_v20  ;;  %3029 = vmatprep.subr.bf16.mxu1 %v6318_v54  ;;  %v779_v20 = vld [vmem:[%s8039_s17 + $0xa08] sm:$0xff]  ;;  %v6373_v54 = vcombine.low %v771_v10, %v775_v12  ;;  %v6421_v12 = vcombine.low %v819_v0, %v823_v2  ;;  %v497_v0 = vld [vmem:[%s8039_s17 + $0x138] sm:$0xff] }
 0x15c   : > { %v6382_v31 = vcombine.high %v779_v20, %v783_v22  ;;  %v6381_v34 = vcombine.low %v779_v20, %v783_v22  ;;  %v831_v10 = vld [vmem:[%s8039_s17 + $0xba8] sm:$0xff] }
 0x15d   : > { %2898 = vmatmul.mubr.bf16.vlgmr.msra.gmra.mrb[0].mxu0 %v8245_v26  ;;  %3021 = vmatmul.mubr.bf16.vlgmr.msra.gmra.mrb[0].mxu1 %v8245_v26  ;;  %v839_v20 = vld [vmem:[%s8039_s17 + $0xbe8] sm:$0xff]  ;;  %v6429_v22 = vcombine.low %v827_v8, %v831_v10 }
 0x15e   : > { %2907 = vmatpush1.bf16.msra.mxu0 %v6315_v27  ;;  %3030 = vmatpush1.bf16.msra.mxu1 %v6317_v28  ;;  %v6380_v27 = vcombine.high %v778_v18, %v782_v19  ;;  %v786_v28 = vld [vmem:[%s8039_s17 + $0xa40] sm:$0xff] }
 0x15f   : > { %2908 = vmatprep.subr.bf16.mxu0 %v6324_v29  ;;  %3031 = vmatprep.subr.bf16.mxu1 %v6326_v33  ;;  %v790_v29 = vld [vmem:[%s8039_s17 + $0xa60] sm:$0xff]  ;;  %v6379_v33 = vcombine.low %v778_v18, %v782_v19  ;;  %v835_v18 = vld [vmem:[%s8039_s17 + $0xbc8] sm:$0xff]  ;;  %v6430_v19 = vcombine.high %v827_v8, %v831_v10 }
 0x160   : > { %2938 = vmatprep.mubr.bf16.mxu0 %v8253_v16  ;;  %3061 = vmatprep.mubr.bf16.mxu1 %v8253_v16  ;;  %v6437_v32 = vcombine.low %v835_v18, %v839_v20 }
 0x162   : > { %2909 = vmatpush1.bf16.msra.mxu0 %v6323_v35  ;;  %3032 = vmatpush1.bf16.msra.mxu1 %v6325_v36  ;;  %v6388_v35 = vcombine.high %v786_v28, %v790_v29  ;;  %v794_v36 = vld [vmem:[%s8039_s17 + $0xa80] sm:$0xff] }
 0x163   : > { %2910 = vmatprep.subr.bf16.mxu0 %v6332_v37  ;;  %3033 = vmatprep.subr.bf16.mxu1 %v6334_v41  ;;  %v798_v37 = vld [vmem:[%s8039_s17 + $0xaa0] sm:$0xff]  ;;  %v6387_v41 = vcombine.low %v786_v28, %v790_v29  ;;  %v461_v28 = vld [vmem:[%s8039_s17 + $0x18] sm:$0xff]  ;;  %v6438_v29 = vcombine.high %v835_v18, %v839_v20 }
 0x166   : > { %2911 = vmatpush1.bf16.msra.mxu0 %v6331_v43  ;;  %3034 = vmatpush1.bf16.msra.mxu1 %v6333_v44  ;;  %v6396_v43 = vcombine.high %v794_v36, %v798_v37  ;;  %v802_v44 = vld [vmem:[%s8039_s17 + $0xac0] sm:$0xff] }
 0x167   : > { %2912 = vmatprep.subr.bf16.mxu0 %v6340_v45  ;;  %3035 = vmatprep.subr.bf16.mxu1 %v6342_v49  ;;  %v806_v45 = vld [vmem:[%s8039_s17 + $0xae0] sm:$0xff]  ;;  %v6395_v49 = vcombine.low %v794_v36, %v798_v37  ;;  %v469_v36 = vld [vmem:[%s8039_s17 + $0x58] sm:$0xff]  ;;  %v6066_v37 = vcombine.high %v461_v28, %v465_v30 }
 0x168   : > { %v6074_v46 = vcombine.high %v469_v36, %v473_v38  ;;  %v6073_v48 = vcombine.low %v469_v36, %v473_v38 }
 0x16a   : > { %2913 = vmatpush1.bf16.msra.mxu0 %v6339_v51  ;;  %3036 = vmatpush1.bf16.msra.mxu1 %v6341_v52  ;;  %v6404_v51 = vcombine.high %v802_v44, %v806_v45  ;;  %v810_v52 = vld [vmem:[%s8039_s17 + $0xb00] sm:$0xff] }
 0x16b   : > { %2914 = vmatprep.subr.bf16.mxu0 %v6348_v53  ;;  %3037 = vmatprep.subr.bf16.mxu1 %v6350_v59  ;;  %v814_v53 = vld [vmem:[%s8039_s17 + $0xb20] sm:$0xff]  ;;  %v6403_v59 = vcombine.low %v802_v44, %v806_v45  ;;  %v480_v44 = vld [vmem:[%s8039_s17 + $0xb0] sm:$0xff]  ;;  %v477_v45 = vld [vmem:[%s8039_s17 + $0x98] sm:$0xff] }
 0x16e   : > { %2915 = vmatpush1.bf16.msra.mxu0 %v6347_v61  ;;  %3038 = vmatpush1.bf16.msra.mxu1 %v6349_v62  ;;  %v6412_v61 = vcombine.high %v810_v52, %v814_v53  ;;  %v818_v62 = vld [vmem:[%s8039_s17 + $0xb40] sm:$0xff] }
 0x16f   : > { %2916 = vmatprep.subr.bf16.mxu0 %v6356_v63  ;;  %3039 = vmatprep.subr.bf16.mxu1 %v6358_v3  ;;  %v822_v63 = vld [vmem:[%s8039_s17 + $0xb60] sm:$0xff]  ;;  %v6411_v3 = vcombine.low %v810_v52, %v814_v53  ;;  %v485_v52 = vld [vmem:[%s8039_s17 + $0xd8] sm:$0xff] }
 0x172   : > { %2917 = vmatpush1.bf16.msra.mxu0 %v6355_v5  ;;  %3040 = vmatpush1.bf16.msra.mxu1 %v6357_v6  ;;  %v6420_v5 = vcombine.high %v818_v62, %v822_v63  ;;  %v826_v6 = vld [vmem:[%s8039_s17 + $0xb80] sm:$0xff] }
 0x173   : > { %2918 = vmatprep.subr.bf16.mxu0 %v6364_v7  ;;  %3041 = vmatprep.subr.bf16.mxu1 %v6366_v11  ;;  %v830_v7 = vld [vmem:[%s8039_s17 + $0xba0] sm:$0xff]  ;;  %v6419_v11 = vcombine.low %v818_v62, %v822_v63  ;;  %v493_v62 = vld [vmem:[%s8039_s17 + $0x118] sm:$0xff]  ;;  %v6090_v63 = vcombine.high %v485_v52, %v489_v55 }
 0x176   : > { %2919 = vmatpush1.bf16.msra.mxu0 %v6363_v14  ;;  %3042 = vmatpush1.bf16.msra.mxu1 %v6365_v15  ;;  %v6428_v14 = vcombine.high %v826_v6, %v830_v7  ;;  %v834_v15 = vld [vmem:[%s8039_s17 + $0xbc0] sm:$0xff] }
 0x177   : > { %2920 = vmatprep.subr.bf16.mxu0 %v6372_v17  ;;  %3043 = vmatprep.subr.bf16.mxu1 %v6374_v21  ;;  %v838_v17 = vld [vmem:[%s8039_s17 + $0xbe0] sm:$0xff]  ;;  %v6427_v21 = vcombine.low %v826_v6, %v830_v7  ;;  %v6098_v6 = vcombine.high %v493_v62, %v497_v0  ;;  %v505_v7 = vld [vmem:[%s8039_s17 + $0x178] sm:$0xff] }
 0x17a   : > { %2921 = vmatpush1.bf16.msra.mxu0 %v6371_v23  ;;  %3044 = vmatpush1.bf16.msra.mxu1 %v6373_v54  ;;  %v6436_v23 = vcombine.high %v834_v15, %v838_v17  ;;  %v460_v54 = vld [vmem:[%s8039_s17 + $0x10] sm:$0xff] }
 0x17b   : > { %2922 = vmatprep.subr.bf16.mxu0 %v6380_v27  ;;  %3045 = vmatprep.subr.bf16.mxu1 %v6382_v31  ;;  %v464_v27 = vld [vmem:[%s8039_s17 + $0x30] sm:$0xff]  ;;  %v6435_v31 = vcombine.low %v834_v15, %v838_v17  ;;  %v513_v17 = vld [vmem:[%s8039_s17 + $0x1b8] sm:$0xff] }
 0x17c   : > { %v6063_v40 = vcombine.low %v460_v54, %v464_v27 }
 0x17e   : > { %2923 = vmatpush1.bf16.msra.mxu0 %v6379_v33  ;;  %3046 = vmatpush1.bf16.msra.mxu1 %v6381_v34  ;;  %v6064_v33 = vcombine.high %v460_v54, %v464_v27  ;;  %v468_v34 = vld [vmem:[%s8039_s17 + $0x50] sm:$0xff]  ;;  %v521_v27 = vld [vmem:[%s8039_s17 + $0x1f8] sm:$0xff] }
 0x17f   : > { %2924 = vmatprep.subr.bf16.mxu0 %v6388_v35  ;;  %3047 = vmatprep.subr.bf16.mxu1 %v6390_v39  ;;  %v472_v35 = vld [vmem:[%s8039_s17 + $0x70] sm:$0xff]  ;;  %v8321_v39 = vcombine.low %v8241_v25, %v8241_v25 }
 0x180   : > { %v6071_v25 = vcombine.low %v468_v34, %v472_v35 }
 0x182   : > { %2925 = vmatpush1.bf16.msra.mxu0 %v6387_v41  ;;  %3048 = vmatpush1.bf16.msra.mxu1 %v6389_v42  ;;  %v6065_v41 = vcombine.low %v461_v28, %v465_v30  ;;  %v6072_v42 = vcombine.high %v468_v34, %v472_v35  ;;  %v529_v35 = vld [vmem:[%s8039_s17 + $0x238] sm:$0xff] }
 0x183   : > { %2926 = vmatprep.subr.bf16.mxu0 %v6396_v43  ;;  %3049 = vmatprep.subr.bf16.mxu1 %v6398_v47  ;;  %v476_v43 = vld [vmem:[%s8039_s17 + $0x90] sm:$0xff]  ;;  %v481_v47 = vld [vmem:[%s8039_s17 + $0xb8] sm:$0xff] }
 0x184   : > { %v6082_v53 = vcombine.high %v477_v45, %v481_v47  ;;  %v6081_v57 = vcombine.low %v477_v45, %v481_v47 }
 0x186   : > { %2927 = vmatpush1.bf16.msra.mxu0 %v6395_v49  ;;  %3050 = vmatpush1.bf16.msra.mxu1 %v6397_v50  ;;  %v6080_v49 = vcombine.high %v476_v43, %v480_v44  ;;  %v484_v50 = vld [vmem:[%s8039_s17 + $0xd0] sm:$0xff] }
 0x187   : > { %2928 = vmatprep.subr.bf16.mxu0 %v6404_v51  ;;  %3051 = vmatprep.subr.bf16.mxu1 %v6406_v56  ;;  %v488_v51 = vld [vmem:[%s8039_s17 + $0xf0] sm:$0xff]  ;;  %v6079_v56 = vcombine.low %v476_v43, %v480_v44  ;;  %v537_v44 = vld [vmem:[%s8039_s17 + $0x278] sm:$0xff] }
 0x18a   : > { %2929 = vmatpush1.bf16.msra.mxu0 %v6403_v59  ;;  %3052 = vmatpush1.bf16.msra.mxu1 %v6405_v60  ;;  %v6088_v59 = vcombine.high %v484_v50, %v488_v51  ;;  %v492_v60 = vld [vmem:[%s8039_s17 + $0x110] sm:$0xff] }
 0x18b   : > { %2930 = vmatprep.subr.bf16.mxu0 %v6412_v61  ;;  %3053 = vmatprep.subr.bf16.mxu1 %v6414_v1  ;;  %v496_v61 = vld [vmem:[%s8039_s17 + $0x130] sm:$0xff]  ;;  %v6087_v1 = vcombine.low %v484_v50, %v488_v51  ;;  %v541_v50 = vld [vmem:[%s8039_s17 + $0x298] sm:$0xff] }
 0x18c   : > { %v6096_v2 = vcombine.high %v492_v60, %v496_v61  ;;  %v6095_v8 = vcombine.low %v492_v60, %v496_v61  ;;  %v545_v51 = vld [vmem:[%s8039_s17 + $0x2b8] sm:$0xff] }
 0x18d   : > { %v549_v60 = vld [vmem:[%s8039_s17 + $0x2d8] sm:$0xff] }
 0x18e   : > { %2931 = vmatpush1.bf16.msra.mxu0 %v6411_v3  ;;  %3054 = vmatpush1.bf16.msra.mxu1 %v6413_v4  ;;  %v500_v3 = vld [vmem:[%s8039_s17 + $0x150] sm:$0xff]  ;;  %v553_v61 = vld [vmem:[%s8039_s17 + $0x2f8] sm:$0xff] }
 0x18f   : > { %2932 = vmatprep.subr.bf16.mxu0 %v6420_v5  ;;  %3055 = vmatprep.subr.bf16.mxu1 %v6422_v9  ;;  %v504_v4 = vld [vmem:[%s8039_s17 + $0x170] sm:$0xff]  ;;  %v501_v5 = vld [vmem:[%s8039_s17 + $0x158] sm:$0xff]  ;;  %v6097_v9 = vcombine.low %v493_v62, %v497_v0 }
 0x190   : > { %v6104_v10 = vcombine.high %v500_v3, %v504_v4  ;;  %v6106_v15 = vcombine.high %v501_v5, %v505_v7  ;;  %v6103_v18 = vcombine.low %v500_v3, %v504_v4  ;;  %v557_v3 = vld [vmem:[%s8039_s17 + $0x318] sm:$0xff] }
 0x191   : > { %v561_v4 = vld [vmem:[%s8039_s17 + $0x338] sm:$0xff] }
 0x192   : > { %2933 = vmatpush1.bf16.msra.mxu0 %v6419_v11  ;;  %3056 = vmatpush1.bf16.msra.mxu1 %v6421_v12  ;;  %v508_v11 = vld [vmem:[%s8039_s17 + $0x190] sm:$0xff] }
 0x193   : > { %2934 = vmatprep.subr.bf16.mxu0 %v6428_v14  ;;  %3057 = vmatprep.subr.bf16.mxu1 %v6430_v19  ;;  %v512_v12 = vld [vmem:[%s8039_s17 + $0x1b0] sm:$0xff]  ;;  %v509_v14 = vld [vmem:[%s8039_s17 + $0x198] sm:$0xff]  ;;  %v6105_v19 = vcombine.low %v501_v5, %v505_v7 }
 0x194   : > { %v6112_v20 = vcombine.high %v508_v11, %v512_v12  ;;  %v6114_v54 = vcombine.high %v509_v14, %v513_v17  ;;  %v6111_v28 = vcombine.low %v508_v11, %v512_v12  ;;  %v565_v11 = vld [vmem:[%s8039_s17 + $0x358] sm:$0xff] }
 0x195   : > { %v569_v12 = vld [vmem:[%s8039_s17 + $0x378] sm:$0xff] }
 0x196   : > { %2935 = vmatpush1.bf16.msra.mxu0 %v6427_v21  ;;  %3058 = vmatpush1.bf16.msra.mxu1 %v6429_v22  ;;  %v516_v21 = vld [vmem:[%s8039_s17 + $0x1d0] sm:$0xff] }
 0x197   : > { %2936 = vmatprep.subr.bf16.mxu0 %v6436_v23  ;;  %3059 = vmatprep.subr.bf16.mxu1 %v6438_v29  ;;  %v520_v22 = vld [vmem:[%s8039_s17 + $0x1f0] sm:$0xff]  ;;  %v517_v23 = vld [vmem:[%s8039_s17 + $0x1d8] sm:$0xff]  ;;  %v6113_v29 = vcombine.low %v509_v14, %v513_v17 }
 0x198   : > { %v6120_v30 = vcombine.high %v516_v21, %v520_v22  ;;  %v6122_v34 = vcombine.high %v517_v23, %v521_v27  ;;  %v6119_v36 = vcombine.low %v516_v21, %v520_v22  ;;  %v573_v21 = vld [vmem:[%s8039_s17 + $0x398] sm:$0xff] }
 0x199   : > { %v577_v22 = vld [vmem:[%s8039_s17 + $0x3b8] sm:$0xff] }
 0x19a   : > { %2937 = vmatpush1.bf16.msra.mxu0 %v6435_v31  ;;  %3060 = vmatpush1.bf16.msra.mxu1 %v6437_v32  ;;  %v524_v31 = vld [vmem:[%s8039_s17 + $0x210] sm:$0xff] }
 0x19b   : > { %3070 = vmatprep.subr.bf16.mxu0 %v6064_v33  ;;  %3193 = vmatprep.subr.bf16.mxu1 %v6066_v37  ;;  %v528_v32 = vld [vmem:[%s8039_s17 + $0x230] sm:$0xff]  ;;  %v525_v33 = vld [vmem:[%s8039_s17 + $0x218] sm:$0xff]  ;;  %v6121_v37 = vcombine.low %v517_v23, %v521_v27 }
 0x19c   : > { %v6128_v38 = vcombine.high %v524_v31, %v528_v32  ;;  %v6130_v43 = vcombine.high %v525_v33, %v529_v35  ;;  %v6127_v45 = vcombine.low %v524_v31, %v528_v32  ;;  %v581_v31 = vld [vmem:[%s8039_s17 + $0x3d8] sm:$0xff] }
 0x19d   : > { %2939 = vmatmul.mubr.bf16.vlgmr.msra.gmra.mrb[0].mxu0 %v8321_v39  ;;  %3062 = vmatmul.mubr.bf16.vlgmr.msra.gmra.mrb[0].mxu1 %v8321_v39  ;;  %v585_v32 = vld [vmem:[%s8039_s17 + $0x3f8] sm:$0xff] }
 0x19e   : > { %3071 = vmatpush1.bf16.msra.mxu0 %v6063_v40  ;;  %3194 = vmatpush1.bf16.msra.mxu1 %v6065_v41  ;;  %v532_v40 = vld [vmem:[%s8039_s17 + $0x250] sm:$0xff] }
 0x19f   : > { %3072 = vmatprep.subr.bf16.mxu0 %v6072_v42  ;;  %3195 = vmatprep.subr.bf16.mxu1 %v6074_v46  ;;  %v536_v41 = vld [vmem:[%s8039_s17 + $0x270] sm:$0xff]  ;;  %v533_v42 = vld [vmem:[%s8039_s17 + $0x258] sm:$0xff]  ;;  %v6129_v46 = vcombine.low %v525_v33, %v529_v35 }
 0x1a0   : > { %3102 = vmatprep.mubr.bf16.mxu0 %v8115_v58  ;;  %3225 = vmatprep.mubr.bf16.mxu1 %v8115_v58  ;;  %v6089_v58 = vcombine.low %v485_v52, %v489_v55  ;;  %v6136_v47 = vcombine.high %v532_v40, %v536_v41  ;;  %v6135_v52 = vcombine.low %v532_v40, %v536_v41  ;;  %v589_v40 = vld [vmem:[%s8039_s17 + $0x418] sm:$0xff] }
 0x1a1   : > { %v593_v41 = vld [vmem:[%s8039_s17 + $0x438] sm:$0xff] }
 0x1a2   : > { %3073 = vmatpush1.bf16.msra.mxu0 %v6071_v25  ;;  %3196 = vmatpush1.bf16.msra.mxu1 %v6073_v48  ;;  %v6138_v25 = vcombine.high %v533_v42, %v537_v44  ;;  %v540_v48 = vld [vmem:[%s8039_s17 + $0x290] sm:$0xff] }
 0x1a3   : > { %3074 = vmatprep.subr.bf16.mxu0 %v6080_v49  ;;  %3197 = vmatprep.subr.bf16.mxu1 %v6082_v53  ;;  %v544_v49 = vld [vmem:[%s8039_s17 + $0x2b0] sm:$0xff]  ;;  %v6137_v53 = vcombine.low %v533_v42, %v537_v44 }
 0x1a4   : > { %v6144_v55 = vcombine.high %v540_v48, %v544_v49  ;;  %v6143_v62 = vcombine.low %v540_v48, %v544_v49  ;;  %v601_v48 = vld [vmem:[%s8039_s17 + $0x478] sm:$0xff] }
 0x1a6   : > { %3075 = vmatpush1.bf16.msra.mxu0 %v6079_v56  ;;  %3198 = vmatpush1.bf16.msra.mxu1 %v6081_v57  ;;  %v6146_v56 = vcombine.high %v541_v50, %v545_v51  ;;  %v548_v57 = vld [vmem:[%s8039_s17 + $0x2d0] sm:$0xff] }
 0x1a7   : > { %3076 = vmatprep.subr.bf16.mxu0 %v6088_v59  ;;  %3199 = vmatprep.subr.bf16.mxu1 %v6090_v63  ;;  %v552_v59 = vld [vmem:[%s8039_s17 + $0x2f0] sm:$0xff]  ;;  %v6145_v63 = vcombine.low %v541_v50, %v545_v51  ;;  %v6193_v50 = vcombine.low %v589_v40, %v593_v41 }
 0x1a8   : > { %v6152_v0 = vcombine.high %v548_v57, %v552_v59  ;;  %v6151_v5 = vcombine.low %v548_v57, %v552_v59  ;;  %v609_v57 = vld [vmem:[%s8039_s17 + $0x4b8] sm:$0xff] }
 0x1aa   : > { %3077 = vmatpush1.bf16.msra.mxu0 %v6087_v1  ;;  %3200 = vmatpush1.bf16.msra.mxu1 %v6089_v58  ;;  %v6154_v1 = vcombine.high %v549_v60, %v553_v61  ;;  %v556_v58 = vld [vmem:[%s8039_s17 + $0x310] sm:$0xff] }
 0x1ab   : > { %3078 = vmatprep.subr.bf16.mxu0 %v6096_v2  ;;  %3201 = vmatprep.subr.bf16.mxu1 %v6098_v6  ;;  %v560_v2 = vld [vmem:[%s8039_s17 + $0x330] sm:$0xff]  ;;  %v6153_v6 = vcombine.low %v549_v60, %v553_v61 }
 0x1ac   : > { %v6160_v7 = vcombine.high %v556_v58, %v560_v2  ;;  %v6159_v14 = vcombine.low %v556_v58, %v560_v2  ;;  %v617_v58 = vld [vmem:[%s8039_s17 + $0x4f8] sm:$0xff] }
 0x1ae   : > { %3079 = vmatpush1.bf16.msra.mxu0 %v6095_v8  ;;  %3202 = vmatpush1.bf16.msra.mxu1 %v6097_v9  ;;  %v6162_v8 = vcombine.high %v557_v3, %v561_v4  ;;  %v564_v9 = vld [vmem:[%s8039_s17 + $0x350] sm:$0xff] }
 0x1af   : > { %3080 = vmatprep.subr.bf16.mxu0 %v6104_v10  ;;  %3203 = vmatprep.subr.bf16.mxu1 %v6106_v15  ;;  %v568_v10 = vld [vmem:[%s8039_s17 + $0x370] sm:$0xff]  ;;  %v6161_v15 = vcombine.low %v557_v3, %v561_v4 }
 0x1b0   : > { %v6168_v17 = vcombine.high %v564_v9, %v568_v10  ;;  %v6167_v23 = vcombine.low %v564_v9, %v568_v10 }
 0x1b2   : > { %3081 = vmatpush1.bf16.msra.mxu0 %v6103_v18  ;;  %3204 = vmatpush1.bf16.msra.mxu1 %v6105_v19  ;;  %v6170_v18 = vcombine.high %v565_v11, %v569_v12  ;;  %v572_v19 = vld [vmem:[%s8039_s17 + $0x390] sm:$0xff] }
 0x1b3   : > { %3082 = vmatprep.subr.bf16.mxu0 %v6112_v20  ;;  %3205 = vmatprep.subr.bf16.mxu1 %v6114_v54  ;;  %v576_v20 = vld [vmem:[%s8039_s17 + $0x3b0] sm:$0xff]  ;;  %v6169_v54 = vcombine.low %v565_v11, %v569_v12 }
 0x1b4   : > { %v6176_v27 = vcombine.high %v572_v19, %v576_v20  ;;  %v6175_v33 = vcombine.low %v572_v19, %v576_v20  ;;  %v628_v12 = vld [vmem:[%s8039_s17 + $0x550] sm:$0xff] }
 0x1b6   : > { %3083 = vmatpush1.bf16.msra.mxu0 %v6111_v28  ;;  %3206 = vmatpush1.bf16.msra.mxu1 %v6113_v29  ;;  %v6178_v28 = vcombine.high %v573_v21, %v577_v22  ;;  %v580_v29 = vld [vmem:[%s8039_s17 + $0x3d0] sm:$0xff] }
 0x1b7   : > { %3084 = vmatprep.subr.bf16.mxu0 %v6120_v30  ;;  %3207 = vmatprep.subr.bf16.mxu1 %v6122_v34  ;;  %v584_v30 = vld [vmem:[%s8039_s17 + $0x3f0] sm:$0xff]  ;;  %v6177_v34 = vcombine.low %v573_v21, %v577_v22 }
 0x1b8   : > { %v6184_v35 = vcombine.high %v580_v29, %v584_v30  ;;  %v6183_v42 = vcombine.low %v580_v29, %v584_v30  ;;  %v636_v22 = vld [vmem:[%s8039_s17 + $0x590] sm:$0xff] }
 0x1ba   : > { %3085 = vmatpush1.bf16.msra.mxu0 %v6119_v36  ;;  %3208 = vmatpush1.bf16.msra.mxu1 %v6121_v37  ;;  %v6186_v36 = vcombine.high %v581_v31, %v585_v32  ;;  %v588_v37 = vld [vmem:[%s8039_s17 + $0x410] sm:$0xff] }
 0x1bb   : > { %3086 = vmatprep.subr.bf16.mxu0 %v6128_v38  ;;  %3209 = vmatprep.subr.bf16.mxu1 %v6130_v43  ;;  %v592_v38 = vld [vmem:[%s8039_s17 + $0x430] sm:$0xff]  ;;  %v6185_v43 = vcombine.low %v581_v31, %v585_v32 }
 0x1bc   : > { %v6192_v44 = vcombine.high %v588_v37, %v592_v38  ;;  %v6191_v49 = vcombine.low %v588_v37, %v592_v38  ;;  %v644_v32 = vld [vmem:[%s8039_s17 + $0x5d0] sm:$0xff] }
 0x1be   : > { %3087 = vmatpush1.bf16.msra.mxu0 %v6127_v45  ;;  %3210 = vmatpush1.bf16.msra.mxu1 %v6129_v46  ;;  %v6194_v45 = vcombine.high %v589_v40, %v593_v41  ;;  %v596_v46 = vld [vmem:[%s8039_s17 + $0x450] sm:$0xff] }
 0x1bf   : > { %3088 = vmatprep.subr.bf16.mxu0 %v6136_v47  ;;  %3211 = vmatprep.subr.bf16.mxu1 %v6138_v25  ;;  %v600_v47 = vld [vmem:[%s8039_s17 + $0x470] sm:$0xff]  ;;  %v597_v25 = vld [vmem:[%s8039_s17 + $0x458] sm:$0xff] }
 0x1c0   : > { %v6200_v51 = vcombine.high %v596_v46, %v600_v47  ;;  %v6199_v59 = vcombine.low %v596_v46, %v600_v47  ;;  %v6201_v60 = vcombine.low %v597_v25, %v601_v48  ;;  %v652_v41 = vld [vmem:[%s8039_s17 + $0x610] sm:$0xff] }
 0x1c2   : > { %3089 = vmatpush1.bf16.msra.mxu0 %v6135_v52  ;;  %3212 = vmatpush1.bf16.msra.mxu1 %v6137_v53  ;;  %v6202_v52 = vcombine.high %v597_v25, %v601_v48  ;;  %v604_v53 = vld [vmem:[%s8039_s17 + $0x490] sm:$0xff] }
 0x1c3   : > { %3090 = vmatprep.subr.bf16.mxu0 %v6144_v55  ;;  %3213 = vmatprep.subr.bf16.mxu1 %v6146_v56  ;;  %v608_v55 = vld [vmem:[%s8039_s17 + $0x4b0] sm:$0xff]  ;;  %v605_v56 = vld [vmem:[%s8039_s17 + $0x498] sm:$0xff] }
 0x1c4   : > { %v6208_v61 = vcombine.high %v604_v53, %v608_v55  ;;  %v6209_v2 = vcombine.low %v605_v56, %v609_v57  ;;  %v660_v48 = vld [vmem:[%s8039_s17 + $0x650] sm:$0xff] }
 0x1c6   : > { %3091 = vmatpush1.bf16.msra.mxu0 %v6143_v62  ;;  %3214 = vmatpush1.bf16.msra.mxu1 %v6145_v63  ;;  %v6210_v62 = vcombine.high %v605_v56, %v609_v57  ;;  %v612_v63 = vld [vmem:[%s8039_s17 + $0x4d0] sm:$0xff] }
 0x1c7   : > { %3092 = vmatprep.subr.bf16.mxu0 %v6152_v0  ;;  %3215 = vmatprep.subr.bf16.mxu1 %v6154_v1  ;;  %v616_v0 = vld [vmem:[%s8039_s17 + $0x4f0] sm:$0xff]  ;;  %v613_v1 = vld [vmem:[%s8039_s17 + $0x4d8] sm:$0xff] }
 0x1c8   : > { %v6216_v3 = vcombine.high %v612_v63, %v616_v0  ;;  %v6218_v4 = vcombine.high %v613_v1, %v617_v58  ;;  %v6215_v9 = vcombine.low %v612_v63, %v616_v0  ;;  %v668_v57 = vld [vmem:[%s8039_s17 + $0x690] sm:$0xff] }
 0x1ca   : > { %3093 = vmatpush1.bf16.msra.mxu0 %v6151_v5  ;;  %3216 = vmatpush1.bf16.msra.mxu1 %v6153_v6  ;;  %v620_v5 = vld [vmem:[%s8039_s17 + $0x510] sm:$0xff] }
 0x1cb   : > { %3094 = vmatprep.subr.bf16.mxu0 %v6160_v7  ;;  %3217 = vmatprep.subr.bf16.mxu1 %v6162_v8  ;;  %v624_v6 = vld [vmem:[%s8039_s17 + $0x530] sm:$0xff]  ;;  %v621_v7 = vld [vmem:[%s8039_s17 + $0x518] sm:$0xff] }
 0x1cc   : > { %v625_v8 = vld [vmem:[%s8039_s17 + $0x538] sm:$0xff]  ;;  %v6224_v10 = vcombine.high %v620_v5, %v624_v6 }
 0x1cd   : > { %v6226_v11 = vcombine.high %v621_v7, %v625_v8  ;;  %v6225_v19 = vcombine.low %v621_v7, %v625_v8  ;;  %v684_v8 = vld [vmem:[%s8039_s17 + $0x710] sm:$0xff] }
 0x1ce   : > { %3095 = vmatpush1.bf16.msra.mxu0 %v6159_v14  ;;  %3218 = vmatpush1.bf16.msra.mxu1 %v6161_v15  ;;  %v632_v14 = vld [vmem:[%s8039_s17 + $0x570] sm:$0xff]  ;;  %v629_v15 = vld [vmem:[%s8039_s17 + $0x558] sm:$0xff] }
 0x1cf   : > { %3096 = vmatprep.subr.bf16.mxu0 %v6168_v17  ;;  %3219 = vmatprep.subr.bf16.mxu1 %v6170_v18  ;;  %v633_v17 = vld [vmem:[%s8039_s17 + $0x578] sm:$0xff]  ;;  %v6223_v18 = vcombine.low %v620_v5, %v624_v6  ;;  %v6232_v20 = vcombine.high %v628_v12, %v632_v14 }
 0x1d0   : > { %v6234_v21 = vcombine.high %v629_v15, %v633_v17  ;;  %v6233_v29 = vcombine.low %v629_v15, %v633_v17  ;;  %v692_v17 = vld [vmem:[%s8039_s17 + $0x750] sm:$0xff] }
 0x1d2   : > { %3097 = vmatpush1.bf16.msra.mxu0 %v6167_v23  ;;  %3220 = vmatpush1.bf16.msra.mxu1 %v6169_v54  ;;  %v640_v23 = vld [vmem:[%s8039_s17 + $0x5b0] sm:$0xff]  ;;  %v637_v54 = vld [vmem:[%s8039_s17 + $0x598] sm:$0xff] }
 0x1d3   : > { %3098 = vmatprep.subr.bf16.mxu0 %v6176_v27  ;;  %3221 = vmatprep.subr.bf16.mxu1 %v6178_v28  ;;  %v641_v27 = vld [vmem:[%s8039_s17 + $0x5b8] sm:$0xff]  ;;  %v6231_v28 = vcombine.low %v628_v12, %v632_v14  ;;  %v6240_v30 = vcombine.high %v636_v22, %v640_v23 }
 0x1d4   : > { %v6242_v31 = vcombine.high %v637_v54, %v641_v27  ;;  %v6241_v37 = vcombine.low %v637_v54, %v641_v27  ;;  %v700_v27 = vld [vmem:[%s8039_s17 + $0x790] sm:$0xff] }
 0x1d6   : > { %3099 = vmatpush1.bf16.msra.mxu0 %v6175_v33  ;;  %3222 = vmatpush1.bf16.msra.mxu1 %v6177_v34  ;;  %v648_v33 = vld [vmem:[%s8039_s17 + $0x5f0] sm:$0xff]  ;;  %v645_v34 = vld [vmem:[%s8039_s17 + $0x5d8] sm:$0xff] }
 0x1d7   : > { %3100 = vmatprep.subr.bf16.mxu0 %v6184_v35  ;;  %3223 = vmatprep.subr.bf16.mxu1 %v6186_v36  ;;  %v649_v35 = vld [vmem:[%s8039_s17 + $0x5f8] sm:$0xff]  ;;  %v6239_v36 = vcombine.low %v636_v22, %v640_v23  ;;  %v6248_v38 = vcombine.high %v644_v32, %v648_v33 }
 0x1d8   : > { %v6250_v40 = vcombine.high %v645_v34, %v649_v35  ;;  %v6249_v46 = vcombine.low %v645_v34, %v649_v35  ;;  %v708_v35 = vld [vmem:[%s8039_s17 + $0x7d0] sm:$0xff] }
 0x1da   : > { %3101 = vmatpush1.bf16.msra.mxu0 %v6183_v42  ;;  %3224 = vmatpush1.bf16.msra.mxu1 %v6185_v43  ;;  %v656_v42 = vld [vmem:[%s8039_s17 + $0x630] sm:$0xff]  ;;  %v653_v43 = vld [vmem:[%s8039_s17 + $0x618] sm:$0xff] }
 0x1db   : > { %3111 = vmatprep.subr.bf16.mxu0 %v6192_v44  ;;  %3234 = vmatprep.subr.bf16.mxu1 %v6194_v45  ;;  %v657_v44 = vld [vmem:[%s8039_s17 + $0x638] sm:$0xff]  ;;  %v6247_v45 = vcombine.low %v644_v32, %v648_v33  ;;  %v6256_v47 = vcombine.high %v652_v41, %v656_v42 }
 0x1dc   : > { %v6258_v25 = vcombine.high %v653_v43, %v657_v44 }
 0x1dd   : > { %3103 = vmatmul.mubr.bf16.vlgmr.msra.gmra.mrb[4].mxu0 %v8161_v13  ;;  %3226 = vmatmul.mubr.bf16.vlgmr.msra.gmra.mrb[4].mxu1 %v8161_v13  ;;  %v6207_v13 = vcombine.low %v604_v53, %v608_v55  ;;  %v6257_v53 = vcombine.low %v653_v43, %v657_v44  ;;  %v716_v44 = vld [vmem:[%s8039_s17 + $0x810] sm:$0xff] }
 0x1de   : > { %3112 = vmatpush1.bf16.msra.mxu0 %v6191_v49  ;;  %3235 = vmatpush1.bf16.msra.mxu1 %v6193_v50  ;;  %v664_v49 = vld [vmem:[%s8039_s17 + $0x670] sm:$0xff]  ;;  %v661_v50 = vld [vmem:[%s8039_s17 + $0x658] sm:$0xff] }
 0x1df   : > { %3113 = vmatprep.subr.bf16.mxu0 %v6200_v51  ;;  %3236 = vmatprep.subr.bf16.mxu1 %v6202_v52  ;;  %v665_v51 = vld [vmem:[%s8039_s17 + $0x678] sm:$0xff]  ;;  %v6255_v52 = vcombine.low %v652_v41, %v656_v42  ;;  %v6264_v55 = vcombine.high %v660_v48, %v664_v49 }
 0x1e0   : > { %3143 = vmatprep.mubr.bf16.mxu0 %v8174_v24  ;;  %3266 = vmatprep.mubr.bf16.mxu1 %v8174_v24  ;;  %v6217_v24 = vcombine.low %v613_v1, %v617_v58  ;;  %v6266_v56 = vcombine.high %v661_v50, %v665_v51  ;;  %v6265_v63 = vcombine.low %v661_v50, %v665_v51  ;;  %v676_v58 = vld [vmem:[%s8039_s17 + $0x6d0] sm:$0xff] }
 0x1e1   : > { %v724_v51 = vld [vmem:[%s8039_s17 + $0x850] sm:$0xff] }
 0x1e2   : > { %3114 = vmatpush1.bf16.msra.mxu0 %v6199_v59  ;;  %3237 = vmatpush1.bf16.msra.mxu1 %v6201_v60  ;;  %v672_v59 = vld [vmem:[%s8039_s17 + $0x6b0] sm:$0xff]  ;;  %v669_v60 = vld [vmem:[%s8039_s17 + $0x698] sm:$0xff] }
 0x1e3   : > { %3115 = vmatprep.subr.bf16.mxu0 %v6208_v61  ;;  %3238 = vmatprep.subr.bf16.mxu1 %v6210_v62  ;;  %v673_v61 = vld [vmem:[%s8039_s17 + $0x6b8] sm:$0xff]  ;;  %v6263_v62 = vcombine.low %v660_v48, %v664_v49  ;;  %v6272_v0 = vcombine.high %v668_v57, %v672_v59 }
 0x1e4   : > { %v6274_v1 = vcombine.high %v669_v60, %v673_v61  ;;  %v6273_v5 = vcombine.low %v669_v60, %v673_v61  ;;  %v732_v61 = vld [vmem:[%s8039_s17 + $0x890] sm:$0xff] }
 0x1e6   : > { %3116 = vmatpush1.bf16.msra.mxu0 %v6207_v13  ;;  %3239 = vmatpush1.bf16.msra.mxu1 %v6209_v2  ;;  %v680_v13 = vld [vmem:[%s8039_s17 + $0x6f0] sm:$0xff]  ;;  %v677_v2 = vld [vmem:[%s8039_s17 + $0x6d8] sm:$0xff] }
 0x1e7   : > { %3117 = vmatprep.subr.bf16.mxu0 %v6216_v3  ;;  %3240 = vmatprep.subr.bf16.mxu1 %v6218_v4  ;;  %v681_v3 = vld [vmem:[%s8039_s17 + $0x6f8] sm:$0xff]  ;;  %v6271_v4 = vcombine.low %v668_v57, %v672_v59  ;;  %v6280_v6 = vcombine.high %v676_v58, %v680_v13 }
 0x1e8   : > { %v6282_v7 = vcombine.high %v677_v2, %v681_v3  ;;  %v6281_v12 = vcombine.low %v677_v2, %v681_v3  ;;  %v740_v3 = vld [vmem:[%s8039_s17 + $0x8d0] sm:$0xff] }
 0x1ea   : > { %3118 = vmatpush1.bf16.msra.mxu0 %v6215_v9  ;;  %3241 = vmatpush1.bf16.msra.mxu1 %v6217_v24  ;;  %v688_v9 = vld [vmem:[%s8039_s17 + $0x730] sm:$0xff]  ;;  %v685_v24 = vld [vmem:[%s8039_s17 + $0x718] sm:$0xff] }
 0x1eb   : > { %3119 = vmatprep.subr.bf16.mxu0 %v6224_v10  ;;  %3242 = vmatprep.subr.bf16.mxu1 %v6226_v11  ;;  %v689_v10 = vld [vmem:[%s8039_s17 + $0x738] sm:$0xff]  ;;  %v6279_v11 = vcombine.low %v676_v58, %v680_v13  ;;  %v6288_v14 = vcombine.high %v684_v8, %v688_v9 }
 0x1ec   : > { %v6290_v15 = vcombine.high %v685_v24, %v689_v10  ;;  %v6289_v22 = vcombine.low %v685_v24, %v689_v10  ;;  %v748_v24 = vld [vmem:[%s8039_s17 + $0x910] sm:$0xff] }
 0x1ed   : > { %v752_v10 = vld [vmem:[%s8039_s17 + $0x930] sm:$0xff] }
 0x1ee   : > { %3120 = vmatpush1.bf16.msra.mxu0 %v6223_v18  ;;  %3243 = vmatpush1.bf16.msra.mxu1 %v6225_v19  ;;  %v696_v18 = vld [vmem:[%s8039_s17 + $0x770] sm:$0xff]  ;;  %v693_v19 = vld [vmem:[%s8039_s17 + $0x758] sm:$0xff] }
 0x1ef   : > { %3121 = vmatprep.subr.bf16.mxu0 %v6232_v20  ;;  %3244 = vmatprep.subr.bf16.mxu1 %v6234_v21  ;;  %v697_v20 = vld [vmem:[%s8039_s17 + $0x778] sm:$0xff]  ;;  %v6287_v21 = vcombine.low %v684_v8, %v688_v9  ;;  %v6296_v23 = vcombine.high %v692_v17, %v696_v18 }
 0x1f0   : > { %v6298_v54 = vcombine.high %v693_v19, %v697_v20  ;;  %v6297_v32 = vcombine.low %v693_v19, %v697_v20  ;;  %v760_v19 = vld [vmem:[%s8039_s17 + $0x970] sm:$0xff]  ;;  %v757_v20 = vld [vmem:[%s8039_s17 + $0x958] sm:$0xff] }
 0x1f2   : > { %3122 = vmatpush1.bf16.msra.mxu0 %v6231_v28  ;;  %3245 = vmatpush1.bf16.msra.mxu1 %v6233_v29  ;;  %v704_v28 = vld [vmem:[%s8039_s17 + $0x7b0] sm:$0xff]  ;;  %v701_v29 = vld [vmem:[%s8039_s17 + $0x798] sm:$0xff] }
 0x1f3   : > { %3123 = vmatprep.subr.bf16.mxu0 %v6240_v30  ;;  %3246 = vmatprep.subr.bf16.mxu1 %v6242_v31  ;;  %v705_v30 = vld [vmem:[%s8039_s17 + $0x7b8] sm:$0xff]  ;;  %v6295_v31 = vcombine.low %v692_v17, %v696_v18  ;;  %v6304_v33 = vcombine.high %v700_v27, %v704_v28  ;;  %v756_v18 = vld [vmem:[%s8039_s17 + $0x950] sm:$0xff] }
 0x1f4   : > { %v6306_v34 = vcombine.high %v701_v29, %v705_v30  ;;  %v6305_v41 = vcombine.low %v701_v29, %v705_v30  ;;  %v768_v29 = vld [vmem:[%s8039_s17 + $0x9b0] sm:$0xff]  ;;  %v765_v30 = vld [vmem:[%s8039_s17 + $0x998] sm:$0xff] }
 0x1f6   : > { %3124 = vmatpush1.bf16.msra.mxu0 %v6239_v36  ;;  %3247 = vmatpush1.bf16.msra.mxu1 %v6241_v37  ;;  %v712_v36 = vld [vmem:[%s8039_s17 + $0x7f0] sm:$0xff]  ;;  %v709_v37 = vld [vmem:[%s8039_s17 + $0x7d8] sm:$0xff] }
 0x1f7   : > { %3125 = vmatprep.subr.bf16.mxu0 %v6248_v38  ;;  %3248 = vmatprep.subr.bf16.mxu1 %v6250_v40  ;;  %v713_v38 = vld [vmem:[%s8039_s17 + $0x7f8] sm:$0xff]  ;;  %v6303_v40 = vcombine.low %v700_v27, %v704_v28  ;;  %v6312_v42 = vcombine.high %v708_v35, %v712_v36  ;;  %v764_v28 = vld [vmem:[%s8039_s17 + $0x990] sm:$0xff] }
 0x1f8   : > { %v6314_v43 = vcombine.high %v709_v37, %v713_v38  ;;  %v6313_v48 = vcombine.low %v709_v37, %v713_v38  ;;  %v776_v37 = vld [vmem:[%s8039_s17 + $0x9f0] sm:$0xff]  ;;  %v773_v38 = vld [vmem:[%s8039_s17 + $0x9d8] sm:$0xff] }
 0x1fa   : > { %3126 = vmatpush1.bf16.msra.mxu0 %v6247_v45  ;;  %3249 = vmatpush1.bf16.msra.mxu1 %v6249_v46  ;;  %v720_v45 = vld [vmem:[%s8039_s17 + $0x830] sm:$0xff]  ;;  %v717_v46 = vld [vmem:[%s8039_s17 + $0x818] sm:$0xff] }
 0x1fb   : > { %3127 = vmatprep.subr.bf16.mxu0 %v6256_v47  ;;  %3250 = vmatprep.subr.bf16.mxu1 %v6258_v25  ;;  %v721_v47 = vld [vmem:[%s8039_s17 + $0x838] sm:$0xff]  ;;  %v6311_v25 = vcombine.low %v708_v35, %v712_v36  ;;  %v6320_v49 = vcombine.high %v716_v44, %v720_v45  ;;  %v772_v36 = vld [vmem:[%s8039_s17 + $0x9d0] sm:$0xff] }
 0x1fc   : > { %v6322_v50 = vcombine.high %v717_v46, %v721_v47  ;;  %v6321_v57 = vcombine.low %v717_v46, %v721_v47  ;;  %v784_v46 = vld [vmem:[%s8039_s17 + $0xa30] sm:$0xff]  ;;  %v781_v47 = vld [vmem:[%s8039_s17 + $0xa18] sm:$0xff] }
 0x1fe   : > { %3128 = vmatpush1.bf16.msra.mxu0 %v6255_v52  ;;  %3251 = vmatpush1.bf16.msra.mxu1 %v6257_v53  ;;  %v728_v52 = vld [vmem:[%s8039_s17 + $0x870] sm:$0xff]  ;;  %v725_v53 = vld [vmem:[%s8039_s17 + $0x858] sm:$0xff] }
 0x1ff   : > { %3129 = vmatprep.subr.bf16.mxu0 %v6264_v55  ;;  %3252 = vmatprep.subr.bf16.mxu1 %v6266_v56  ;;  %v729_v55 = vld [vmem:[%s8039_s17 + $0x878] sm:$0xff]  ;;  %v6319_v56 = vcombine.low %v716_v44, %v720_v45  ;;  %v6328_v59 = vcombine.high %v724_v51, %v728_v52  ;;  %v780_v45 = vld [vmem:[%s8039_s17 + $0xa10] sm:$0xff] }
 0x200   : > { %v6330_v60 = vcombine.high %v725_v53, %v729_v55  ;;  %v6329_v58 = vcombine.low %v725_v53, %v729_v55  ;;  %v792_v53 = vld [vmem:[%s8039_s17 + $0xa70] sm:$0xff]  ;;  %v789_v55 = vld [vmem:[%s8039_s17 + $0xa58] sm:$0xff] }
 0x202   : > { %3130 = vmatpush1.bf16.msra.mxu0 %v6263_v62  ;;  %3253 = vmatpush1.bf16.msra.mxu1 %v6265_v63  ;;  %v736_v62 = vld [vmem:[%s8039_s17 + $0x8b0] sm:$0xff]  ;;  %v733_v63 = vld [vmem:[%s8039_s17 + $0x898] sm:$0xff] }
 0x203   : > { %3131 = vmatprep.subr.bf16.mxu0 %v6272_v0  ;;  %3254 = vmatprep.subr.bf16.mxu1 %v6274_v1  ;;  %v737_v0 = vld [vmem:[%s8039_s17 + $0x8b8] sm:$0xff]  ;;  %v6327_v1 = vcombine.low %v724_v51, %v728_v52  ;;  %v6336_v13 = vcombine.high %v732_v61, %v736_v62  ;;  %v788_v52 = vld [vmem:[%s8039_s17 + $0xa50] sm:$0xff] }
 0x204   : > { %v6338_v2 = vcombine.high %v733_v63, %v737_v0 }
 0x206   : > { %3132 = vmatpush1.bf16.msra.mxu0 %v6271_v4  ;;  %3255 = vmatpush1.bf16.msra.mxu1 %v6273_v5  ;;  %v744_v4 = vld [vmem:[%s8039_s17 + $0x8f0] sm:$0xff]  ;;  %v741_v5 = vld [vmem:[%s8039_s17 + $0x8d8] sm:$0xff] }
 0x207   : > { %3133 = vmatprep.subr.bf16.mxu0 %v6280_v6  ;;  %3256 = vmatprep.subr.bf16.mxu1 %v6282_v7  ;;  %v745_v6 = vld [vmem:[%s8039_s17 + $0x8f8] sm:$0xff]  ;;  %v6337_v7 = vcombine.low %v733_v63, %v737_v0  ;;  %v6344_v8 = vcombine.high %v740_v3, %v744_v4  ;;  %v800_v63 = vld [vmem:[%s8039_s17 + $0xab0] sm:$0xff] }
 0x208   : > { %v6346_v9 = vcombine.high %v741_v5, %v745_v6  ;;  %v797_v0 = vld [vmem:[%s8039_s17 + $0xa98] sm:$0xff] }
 0x20a   : > { %3134 = vmatpush1.bf16.msra.mxu0 %v6279_v11  ;;  %3257 = vmatpush1.bf16.msra.mxu1 %v6281_v12  ;;  %v749_v11 = vld [vmem:[%s8039_s17 + $0x918] sm:$0xff] }
 0x20b   : > { %3135 = vmatprep.subr.bf16.mxu0 %v6288_v14  ;;  %3258 = vmatprep.subr.bf16.mxu1 %v6290_v15  ;;  %v753_v12 = vld [vmem:[%s8039_s17 + $0x938] sm:$0xff]  ;;  %v6343_v14 = vcombine.low %v740_v3, %v744_v4  ;;  %v6352_v15 = vcombine.high %v748_v24, %v752_v10  ;;  %v804_v4 = vld [vmem:[%s8039_s17 + $0xad0] sm:$0xff] }
 0x20c   : > { %v6354_v17 = vcombine.high %v749_v11, %v753_v12 }
 0x20e   : > { %3136 = vmatpush1.bf16.msra.mxu0 %v6287_v21  ;;  %3259 = vmatpush1.bf16.msra.mxu1 %v6289_v22  ;;  %v761_v21 = vld [vmem:[%s8039_s17 + $0x978] sm:$0xff]  ;;  %v6351_v22 = vcombine.low %v748_v24, %v752_v10  ;;  %v812_v10 = vld [vmem:[%s8039_s17 + $0xb10] sm:$0xff] }
 0x20f   : > { %3137 = vmatprep.subr.bf16.mxu0 %v6296_v23  ;;  %3260 = vmatprep.subr.bf16.mxu1 %v6298_v54  ;;  %v6353_v23 = vcombine.low %v749_v11, %v753_v12  ;;  %v6360_v54 = vcombine.high %v756_v18, %v760_v19  ;;  %v6362_v27 = vcombine.high %v757_v20, %v761_v21  ;;  %v816_v11 = vld [vmem:[%s8039_s17 + $0xb30] sm:$0xff]  ;;  %v813_v12 = vld [vmem:[%s8039_s17 + $0xb18] sm:$0xff] }
 0x212   : > { %3138 = vmatpush1.bf16.msra.mxu0 %v6295_v31  ;;  %3261 = vmatpush1.bf16.msra.mxu1 %v6297_v32  ;;  %v769_v31 = vld [vmem:[%s8039_s17 + $0x9b8] sm:$0xff]  ;;  %v6359_v32 = vcombine.low %v756_v18, %v760_v19  ;;  %v820_v19 = vld [vmem:[%s8039_s17 + $0xb50] sm:$0xff] }
 0x213   : > { %3139 = vmatprep.subr.bf16.mxu0 %v6304_v33  ;;  %3262 = vmatprep.subr.bf16.mxu1 %v6306_v34  ;;  %v6361_v33 = vcombine.low %v757_v20, %v761_v21  ;;  %v6368_v34 = vcombine.high %v764_v28, %v768_v29  ;;  %v6370_v35 = vcombine.high %v765_v30, %v769_v31  ;;  %v824_v20 = vld [vmem:[%s8039_s17 + $0xb70] sm:$0xff]  ;;  %v821_v21 = vld [vmem:[%s8039_s17 + $0xb58] sm:$0xff] }
 0x216   : > { %3140 = vmatpush1.bf16.msra.mxu0 %v6303_v40  ;;  %3263 = vmatpush1.bf16.msra.mxu1 %v6305_v41  ;;  %v777_v40 = vld [vmem:[%s8039_s17 + $0x9f8] sm:$0xff]  ;;  %v6367_v41 = vcombine.low %v764_v28, %v768_v29  ;;  %v828_v29 = vld [vmem:[%s8039_s17 + $0xb90] sm:$0xff] }
 0x217   : > { %3141 = vmatprep.subr.bf16.mxu0 %v6312_v42  ;;  %3264 = vmatprep.subr.bf16.mxu1 %v6314_v43  ;;  %v6369_v42 = vcombine.low %v765_v30, %v769_v31  ;;  %v6376_v43 = vcombine.high %v772_v36, %v776_v37  ;;  %v6378_v44 = vcombine.high %v773_v38, %v777_v40  ;;  %v832_v30 = vld [vmem:[%s8039_s17 + $0xbb0] sm:$0xff]  ;;  %v829_v31 = vld [vmem:[%s8039_s17 + $0xb98] sm:$0xff] }
 0x21a   : > { %3142 = vmatpush1.bf16.msra.mxu0 %v6311_v25  ;;  %3265 = vmatpush1.bf16.msra.mxu1 %v6313_v48  ;;  %v785_v25 = vld [vmem:[%s8039_s17 + $0xa38] sm:$0xff]  ;;  %v6375_v48 = vcombine.low %v772_v36, %v776_v37  ;;  %v836_v37 = vld [vmem:[%s8039_s17 + $0xbd0] sm:$0xff] }
 0x21b   : > { %3152 = vmatprep.subr.bf16.mxu0 %v6320_v49  ;;  %3275 = vmatprep.subr.bf16.mxu1 %v6322_v50  ;;  %v6377_v49 = vcombine.low %v773_v38, %v777_v40  ;;  %v6384_v50 = vcombine.high %v780_v45, %v784_v46  ;;  %v6386_v51 = vcombine.high %v781_v47, %v785_v25  ;;  %v840_v38 = vld [vmem:[%s8039_s17 + $0xbf0] sm:$0xff]  ;;  %v837_v40 = vld [vmem:[%s8039_s17 + $0xbd8] sm:$0xff] }
 0x21d   : > { %3144 = vmatmul.mubr.bf16.vlgmr.msra.gmra.mrb[4].mxu0 %v8245_v26  ;;  %3267 = vmatmul.mubr.bf16.vlgmr.msra.gmra.mrb[4].mxu1 %v8245_v26  ;;  %v6335_v26 = vcombine.low %v732_v61, %v736_v62  ;;  %v796_v62 = vld [vmem:[%s8039_s17 + $0xa90] sm:$0xff] }
 0x21e   : > { %3153 = vmatpush1.bf16.msra.mxu0 %v6319_v56  ;;  %3276 = vmatpush1.bf16.msra.mxu1 %v6321_v57  ;;  %v793_v56 = vld [vmem:[%s8039_s17 + $0xa78] sm:$0xff]  ;;  %v6383_v57 = vcombine.low %v780_v45, %v784_v46  ;;  %v6439_v46 = vcombine.low %v836_v37, %v840_v38 }
 0x21f   : > { %3154 = vmatprep.subr.bf16.mxu0 %v6328_v59  ;;  %3277 = vmatprep.subr.bf16.mxu1 %v6330_v60  ;;  %v6385_v59 = vcombine.low %v781_v47, %v785_v25  ;;  %v6392_v60 = vcombine.high %v788_v52, %v792_v53  ;;  %v6394_v61 = vcombine.high %v789_v55, %v793_v56  ;;  %v7062_v25 = vld [vmem:[%s8046_s15 + $0x4] ss:$16 sps:$4 sm:$0xff]  }
 0x220   : > { %3184 = vmatprep.mubr.bf16.mxu0 %v8253_v16  ;;  %3307 = vmatprep.mubr.bf16.mxu1 %v8253_v16  ;;  %v6345_v16 = vcombine.low %v741_v5, %v745_v6  ;;  %v808_v5 = vld [vmem:[%s8039_s17 + $0xaf0] sm:$0xff]  ;;  %v805_v6 = vld [vmem:[%s8039_s17 + $0xad8] sm:$0xff] }
 0x222   : > { %3155 = vmatpush1.bf16.msra.mxu0 %v6327_v1  ;;  %3278 = vmatpush1.bf16.msra.mxu1 %v6329_v58  ;;  %v801_v1 = vld [vmem:[%s8039_s17 + $0xab8] sm:$0xff]  ;;  %v6391_v58 = vcombine.low %v788_v52, %v792_v53  ;;  %v7066_v53 = vld [vmem:[%s8046_s15 + $0x20] ss:$16 sps:$4 sm:$0xff]  }
 0x223   : > { %3156 = vmatprep.subr.bf16.mxu0 %v6336_v13  ;;  %3279 = vmatprep.subr.bf16.mxu1 %v6338_v2  ;;  %v6393_v13 = vcombine.low %v789_v55, %v793_v56  ;;  %v6400_v2 = vcombine.high %v796_v62, %v800_v63  ;;  %v6402_v3 = vcombine.high %v797_v0, %v801_v1  ;;  %v7071_v52 = vld [vmem:[%s8046_s15 + $0x2c] ss:$16 sps:$4 sm:$0xff]   ;;  %v7069_v55 = vld [vmem:[%s8046_s15 + $0x28] ss:$16 sps:$4 sm:$0xff]   ;;  %v7074_v56 = vld [vmem:[%s8046_s15 + $0x44] ss:$16 sps:$4 sm:$0xff]  }
 0x226   : > { %3157 = vmatpush1.bf16.msra.mxu0 %v6335_v26  ;;  %3280 = vmatpush1.bf16.msra.mxu1 %v6337_v7  ;;  %v809_v26 = vld [vmem:[%s8039_s17 + $0xaf8] sm:$0xff]  ;;  %v6399_v7 = vcombine.low %v796_v62, %v800_v63  ;;  %v7078_v63 = vld [vmem:[%s8046_s15 + $0x60] ss:$16 sps:$4 sm:$0xff]  }
 0x227   : > { %3158 = vmatprep.subr.bf16.mxu0 %v6344_v8  ;;  %3281 = vmatprep.subr.bf16.mxu1 %v6346_v9  ;;  %v6401_v8 = vcombine.low %v797_v0, %v801_v1  ;;  %v6408_v9 = vcombine.high %v804_v4, %v808_v5  ;;  %v6410_v24 = vcombine.high %v805_v6, %v809_v26  ;;  %v7083_v62 = vld [vmem:[%s8046_s15 + $0x6c] ss:$16 sps:$4 sm:$0xff]   ;;  %v7081_v1 = vld [vmem:[%s8046_s15 + $0x68] ss:$16 sps:$4 sm:$0xff]  }
 0x22a   : > { %3159 = vmatpush1.bf16.msra.mxu0 %v6343_v14  ;;  %3282 = vmatpush1.bf16.msra.mxu1 %v6345_v16  ;;  %v817_v14 = vld [vmem:[%s8039_s17 + $0xb38] sm:$0xff]  ;;  %v6407_v16 = vcombine.low %v804_v4, %v808_v5  ;;  %v8545_v5 = vld [vmem:[%s8054_s29] sm:$0xff] }
 0x22b   : > { %3160 = vmatprep.subr.bf16.mxu0 %v6352_v15  ;;  %3283 = vmatprep.subr.bf16.mxu1 %v6354_v17  ;;  %v6409_v15 = vcombine.low %v805_v6, %v809_v26  ;;  %v6416_v17 = vcombine.high %v812_v10, %v816_v11  ;;  %v6418_v18 = vcombine.high %v813_v12, %v817_v14  ;;  %v7087_v4 = vld [vmem:[%s8046_s15 + $0x88] ss:$16 sps:$4 sm:$0xff]   ;;  %v7092_v6 = vld [vmem:[%s8046_s15 + $0xa4] ss:$16 sps:$4 sm:$0xff]   ;;  %v7095_v26 = vld [vmem:[%s8046_s15 + $0xac] ss:$16 sps:$4 sm:$0xff]  }
 0x22e   : > { %3161 = vmatpush1.bf16.msra.mxu0 %v6351_v22  ;;  %3284 = vmatpush1.bf16.msra.mxu1 %v6353_v23  ;;  %v825_v22 = vld [vmem:[%s8039_s17 + $0xb78] sm:$0xff]  ;;  %v6415_v23 = vcombine.low %v812_v10, %v816_v11 }
 0x22f   : > { %3162 = vmatprep.subr.bf16.mxu0 %v6360_v54  ;;  %3285 = vmatprep.subr.bf16.mxu1 %v6362_v27  ;;  %v6417_v54 = vcombine.low %v813_v12, %v817_v14  ;;  %v6424_v27 = vcombine.high %v820_v19, %v824_v20  ;;  %v6426_v28 = vcombine.high %v821_v21, %v825_v22  ;;  %v7101_v11 = vld [vmem:[%s8046_s15 + $0xcc] ss:$16 sps:$4 sm:$0xff]  }
 0x232   : > { %3163 = vmatpush1.bf16.msra.mxu0 %v6359_v32  ;;  %3286 = vmatpush1.bf16.msra.mxu1 %v6361_v33  ;;  %v833_v32 = vld [vmem:[%s8039_s17 + $0xbb8] sm:$0xff]  ;;  %v6423_v33 = vcombine.low %v820_v19, %v824_v20 }
 0x233   : > { %3164 = vmatprep.subr.bf16.mxu0 %v6368_v34  ;;  %3287 = vmatprep.subr.bf16.mxu1 %v6370_v35  ;;  %v6425_v34 = vcombine.low %v821_v21, %v825_v22  ;;  %v6432_v35 = vcombine.high %v828_v29, %v832_v30  ;;  %v6434_v36 = vcombine.high %v829_v31, %v833_v32  ;;  %v7099_v21 = vld [vmem:[%s8046_s15 + $0xc8] ss:$16 sps:$4 sm:$0xff]  }
 0x236   : > { %3165 = vmatpush1.bf16.msra.mxu0 %v6367_v41  ;;  %3288 = vmatpush1.bf16.msra.mxu1 %v6369_v42  ;;  %v841_v41 = vld [vmem:[%s8039_s17 + $0xbf8] sm:$0xff]  ;;  %v6431_v42 = vcombine.low %v828_v29, %v832_v30  ;;  %v7110_v30 = vld [vmem:[%s8046_s15 + $0x104] ss:$16 sps:$4 sm:$0xff]  }
 0x237   : > { %3166 = vmatprep.subr.bf16.mxu0 %v6376_v43  ;;  %3289 = vmatprep.subr.bf16.mxu1 %v6378_v44  ;;  %v6433_v43 = vcombine.low %v829_v31, %v833_v32  ;;  %v6440_v44 = vcombine.high %v836_v37, %v840_v38  ;;  %v6442_v45 = vcombine.high %v837_v40, %v841_v41  ;;  %v7105_v29 = vld [vmem:[%s8046_s15 + $0xe8] ss:$16 sps:$4 sm:$0xff]   ;;  %v7113_v31 = vld [vmem:[%s8046_s15 + $0x10c] ss:$16 sps:$4 sm:$0xff]   ;;  %v7108_v32 = vld [vmem:[%s8046_s15 + $0x100] ss:$16 sps:$4 sm:$0xff]  }
 0x238   : > { %v6441_v47 = vcombine.low %v837_v40, %v841_v41  ;;  %v7117_v37 = vld [vmem:[%s8046_s15 + $0x128] ss:$16 sps:$4 sm:$0xff]   ;;  %v7122_v38 = vld [vmem:[%s8046_s15 + $0x144] ss:$16 sps:$4 sm:$0xff]   ;;  %v7125_v40 = vld [vmem:[%s8046_s15 + $0x14c] ss:$16 sps:$4 sm:$0xff]  }
 0x239   : > { %v7120_v41 = vld [vmem:[%s8046_s15 + $0x140] ss:$16 sps:$4 sm:$0xff]  }
 0x23a   : > { %3167 = vmatpush1.bf16.msra.mxu0 %v6375_v48  ;;  %3290 = vmatpush1.bf16.msra.mxu1 %v6377_v49  ;;  %v7065_v48 = vld [vmem:[%s8046_s15 + $0xc] ss:$16 sps:$4 sm:$0xff]   ;;  %v7060_v49 = vld [vmem:[%s8046_s15] ss:$16 sps:$4 sm:$0xff]  }
 0x23b   : > { %3168 = vmatprep.subr.bf16.mxu0 %v6384_v50  ;;  %3291 = vmatprep.subr.bf16.mxu1 %v6386_v51  ;;  %v7063_v50 = vld [vmem:[%s8046_s15 + $0x8] ss:$16 sps:$4 sm:$0xff]   ;;  %v7068_v51 = vld [vmem:[%s8046_s15 + $0x24] ss:$16 sps:$4 sm:$0xff]  }
 0x23e   : > { %3169 = vmatpush1.bf16.msra.mxu0 %v6383_v57  ;;  %3292 = vmatpush1.bf16.msra.mxu1 %v6385_v59  ;;  %v7077_v57 = vld [vmem:[%s8046_s15 + $0x4c] ss:$16 sps:$4 sm:$0xff]   ;;  %v7072_v59 = vld [vmem:[%s8046_s15 + $0x40] ss:$16 sps:$4 sm:$0xff]  }
 0x23f   : > { %3170 = vmatprep.subr.bf16.mxu0 %v6392_v60  ;;  %3293 = vmatprep.subr.bf16.mxu1 %v6394_v61  ;;  %v843_v60 = vlaneseq  ;;  %v7080_v61 = vld [vmem:[%s8046_s15 + $0x64] ss:$16 sps:$4 sm:$0xff]  }
 0x241   : > { %v8536_v0 = vshrl.u32 %v843_v60, 7  ;;  %v7144_v60 = vld [vmem:[%s8046_s15 + $0x1c0] ss:$16 sps:$4 sm:$0xff]  }
 0x242   : > { %3171 = vmatpush1.bf16.msra.mxu0 %v6391_v58  ;;  %3294 = vmatpush1.bf16.msra.mxu1 %v6393_v13  ;;  %v7086_v58 = vld [vmem:[%s8046_s15 + $0x84] ss:$16 sps:$4 sm:$0xff]   ;;  %v7089_v13 = vld [vmem:[%s8046_s15 + $0x8c] ss:$16 sps:$4 sm:$0xff]  }
 0x243   : > { %3172 = vmatprep.subr.bf16.mxu0 %v6400_v2  ;;  %3295 = vmatprep.subr.bf16.mxu1 %v6402_v3  ;;  %v7084_v2 = vld [vmem:[%s8046_s15 + $0x80] ss:$16 sps:$4 sm:$0xff]   ;;  %v849_v3 = vsub.s32 1, %v8536_v0 }
 0x246   : > { %3173 = vmatpush1.bf16.msra.mxu0 %v6399_v7  ;;  %3296 = vmatpush1.bf16.msra.mxu1 %v6401_v8  ;;  %v850_v7 = vrot.slane %v8545_v5, %v849_v3  ;;  %v7090_v8 = vld [vmem:[%s8046_s15 + $0xa0] ss:$16 sps:$4 sm:$0xff]  }
 0x247   : > { %3174 = vmatprep.subr.bf16.mxu0 %v6408_v9  ;;  %3297 = vmatprep.subr.bf16.mxu1 %v6410_v24  ;;  %v7093_v9 = vld [vmem:[%s8046_s15 + $0xa8] ss:$16 sps:$4 sm:$0xff]   ;;  %v7098_v24 = vld [vmem:[%s8046_s15 + $0xc4] ss:$16 sps:$4 sm:$0xff]  }
 0x24a   : > { %3175 = vmatpush1.bf16.msra.mxu0 %v6407_v16  ;;  %3298 = vmatpush1.bf16.msra.mxu1 %v6409_v15 }
 0x24b   : > { %3176 = vmatprep.subr.bf16.mxu0 %v6416_v17  ;;  %3299 = vmatprep.subr.bf16.mxu1 %v6418_v18  ;;  %v7096_v18 = vld [vmem:[%s8046_s15 + $0xc0] ss:$16 sps:$4 sm:$0xff]  }
 0x24e   : > { %3177 = vmatpush1.bf16.msra.mxu0 %v6415_v23  ;;  %3300 = vmatpush1.bf16.msra.mxu1 %v6417_v54  ;;  %v7104_v54 = vld [vmem:[%s8046_s15 + $0xe4] ss:$16 sps:$4 sm:$0xff]  }
 0x24f   : > { %3178 = vmatprep.subr.bf16.mxu0 %v6424_v27  ;;  %3301 = vmatprep.subr.bf16.mxu1 %v6426_v28  ;;  %v7107_v27 = vld [vmem:[%s8046_s15 + $0xec] ss:$16 sps:$4 sm:$0xff]   ;;  %v7102_v28 = vld [vmem:[%s8046_s15 + $0xe0] ss:$16 sps:$4 sm:$0xff]  }
 0x252   : > { %3179 = vmatpush1.bf16.msra.mxu0 %v6423_v33  ;;  %3302 = vmatpush1.bf16.msra.mxu1 %v6425_v34  ;;  %v7111_v33 = vld [vmem:[%s8046_s15 + $0x108] ss:$16 sps:$4 sm:$0xff]   ;;  %v7116_v34 = vld [vmem:[%s8046_s15 + $0x124] ss:$16 sps:$4 sm:$0xff]  }
 0x253   : > { %3180 = vmatprep.subr.bf16.mxu0 %v6432_v35  ;;  %3303 = vmatprep.subr.bf16.mxu1 %v6434_v36  ;;  %v7119_v35 = vld [vmem:[%s8046_s15 + $0x12c] ss:$16 sps:$4 sm:$0xff]   ;;  %v7114_v36 = vld [vmem:[%s8046_s15 + $0x120] ss:$16 sps:$4 sm:$0xff]  }
 0x256   : > { %3181 = vmatpush1.bf16.msra.mxu0 %v6431_v42  ;;  %3304 = vmatpush1.bf16.msra.mxu1 %v6433_v43  ;;  %v7123_v42 = vld [vmem:[%s8046_s15 + $0x148] ss:$16 sps:$4 sm:$0xff]   ;;  %v7128_v43 = vld [vmem:[%s8046_s15 + $0x164] ss:$16 sps:$4 sm:$0xff]  }
 0x257   : > { %3182 = vmatprep.subr.bf16.mxu0 %v6440_v44  ;;  %3305 = vmatprep.subr.bf16.mxu1 %v6442_v45  ;;  %v7131_v44 = vld [vmem:[%s8046_s15 + $0x16c] ss:$16 sps:$4 sm:$0xff]   ;;  %v7126_v45 = vld [vmem:[%s8046_s15 + $0x160] ss:$16 sps:$4 sm:$0xff]  }
 0x25a   : > { %3183 = vmatpush1.bf16.msra.mxu0 %v6439_v46  ;;  %3306 = vmatpush1.bf16.msra.mxu1 %v6441_v47  ;;  %v7129_v46 = vld [vmem:[%s8046_s15 + $0x168] ss:$16 sps:$4 sm:$0xff]   ;;  %v7134_v47 = vld [vmem:[%s8046_s15 + $0x184] ss:$16 sps:$4 sm:$0xff]  }
 0x25b   : > { %4881 = vmatprep.subr.bf16.mxu0 %v7062_v25  ;;  %5045 = vmatprep.subr.bf16.mxu1 %v7065_v48  ;;  %v7137_v25 = vld [vmem:[%s8046_s15 + $0x18c] ss:$16 sps:$4 sm:$0xff]   ;;  %v7132_v48 = vld [vmem:[%s8046_s15 + $0x180] ss:$16 sps:$4 sm:$0xff]  }
 0x25d   : > { %3185 = vmatmul.mubr.bf16.vlgmr.msra.gmra.mrb[4].mxu0 %v8321_v39  ;;  %3308 = vmatmul.mubr.bf16.vlgmr.msra.gmra.mrb[4].mxu1 %v8321_v39  ;;  %v7075_v39 = vld [vmem:[%s8046_s15 + $0x48] ss:$16 sps:$4 sm:$0xff]  }
 0x25e   : > { %4882 = vmatpush1.bf16.msra.mxu0 %v7060_v49  ;;  %5046 = vmatpush1.bf16.msra.mxu1 %v7063_v50  ;;  %v7135_v49 = vld [vmem:[%s8046_s15 + $0x188] ss:$16 sps:$4 sm:$0xff]   ;;  %v7140_v50 = vld [vmem:[%s8046_s15 + $0x1a4] ss:$16 sps:$4 sm:$0xff]  }
 0x25f   : > { %4883 = vmatprep.subr.bf16.mxu0 %v7068_v51  ;;  %5047 = vmatprep.subr.bf16.mxu1 %v7071_v52  ;;  %v7143_v51 = vld [vmem:[%s8046_s15 + $0x1ac] ss:$16 sps:$4 sm:$0xff]   ;;  %v7138_v52 = vld [vmem:[%s8046_s15 + $0x1a0] ss:$16 sps:$4 sm:$0xff]  }
 0x262   : > { %4884 = vmatpush1.bf16.msra.mxu0 %v7066_v53  ;;  %5048 = vmatpush1.bf16.msra.mxu1 %v7069_v55  ;;  %v845_v53 = vsub.s32 0, %v8536_v0  ;;  %v7141_v55 = vld [vmem:[%s8046_s15 + $0x1a8] ss:$16 sps:$4 sm:$0xff]  }
 0x263   : > { %4885 = vmatprep.subr.bf16.mxu0 %v7074_v56  ;;  %5049 = vmatprep.subr.bf16.mxu1 %v7077_v57  ;;  %v7146_v56 = vld [vmem:[%s8046_s15 + $0x1c4] ss:$16 sps:$4 sm:$0xff]   ;;  %v7149_v57 = vld [vmem:[%s8046_s15 + $0x1cc] ss:$16 sps:$4 sm:$0xff]  }
 0x266   : > { %4886 = vmatpush1.bf16.msra.mxu0 %v7072_v59  ;;  %5050 = vmatpush1.bf16.msra.mxu1 %v7075_v39  ;;  %v857_v59 = vsub.s32 3, %v8536_v0  ;;  %v846_v39 = vrot.slane %v8545_v5, %v845_v53 }
 0x267   : > { %4887 = vmatprep.subr.bf16.mxu0 %v7080_v61  ;;  %5051 = vmatprep.subr.bf16.mxu1 %v7083_v62  ;;  %v7147_v61 = vld [vmem:[%s8046_s15 + $0x1c8] ss:$16 sps:$4 sm:$0xff]   ;;  %v7152_v62 = vld [vmem:[%s8046_s15 + $0x1e4] ss:$16 sps:$4 sm:$0xff]  }
 0x26a   : > { %4888 = vmatpush1.bf16.msra.mxu0 %v7078_v63  ;;  %5052 = vmatpush1.bf16.msra.mxu1 %v7081_v1  ;;  %v7155_v63 = vld [vmem:[%s8046_s15 + $0x1ec] ss:$16 sps:$4 sm:$0xff]   ;;  %v858_v1 = vrot.slane %v8545_v5, %v857_v59 }
 0x26b   : > { %4889 = vmatprep.subr.bf16.mxu0 %v7086_v58  ;;  %5053 = vmatprep.subr.bf16.mxu1 %v7089_v13  ;;  %v7150_v58 = vld [vmem:[%s8046_s15 + $0x1e0] ss:$16 sps:$4 sm:$0xff]  }
 0x26e   : > { %4890 = vmatpush1.bf16.msra.mxu0 %v7084_v2  ;;  %5054 = vmatpush1.bf16.msra.mxu1 %v7087_v4  ;;  %v7153_v2 = vld [vmem:[%s8046_s15 + $0x1e8] ss:$16 sps:$4 sm:$0xff]   ;;  %v7158_v4 = vld [vmem:[%s8046_s15 + $0x204] ss:$16 sps:$4 sm:$0xff]  }
 0x26f   : > { %4891 = vmatprep.subr.bf16.mxu0 %v7092_v6  ;;  %5055 = vmatprep.subr.bf16.mxu1 %v7095_v26  ;;  %v7161_v6 = vld [vmem:[%s8046_s15 + $0x20c] ss:$16 sps:$4 sm:$0xff]  }
 0x270   : > { %v8555_v10 = vpop.f32.mrb[0].mxu0  ;;  %v8558_v12 = vpop.f32.mrb[0].mxu1 }
 0x271   : > { %v2942_v14 = vpop.f32.mrb[1].mxu0  ;;  %v8560_v15 = vpop.f32.mrb[1].mxu1  ;;  %v6895_v13 = vadd.f32 %v8555_v10, %v846_v39  ;;  %v7225_v39 = vld [vmem:[%s8046_s15 + $0x368] ss:$16 sps:$4 sm:$0xff]  }
 0x272   : > { %v6896_v16 = vadd.f32 %v2942_v14, %v850_v7  ;;  %v2944_v17 = vpop.f32.mrb[2].mxu0  ;;  %4892 = vmatpush1.bf16.msra.mxu0 %v7090_v8  ;;  %v3067_v19 = vpop.f32.mrb[2].mxu1  ;;  %5056 = vmatpush1.bf16.msra.mxu1 %v7093_v9  ;;  %v6898_v26 = vadd.f32 %v8560_v15, %v858_v1  ;;  %v7156_v7 = vld [vmem:[%s8046_s15 + $0x200] ss:$16 sps:$4 sm:$0xff]   ;;  %v7159_v9 = vld [vmem:[%s8046_s15 + $0x208] ss:$16 sps:$4 sm:$0xff]  }
 0x273   : > { %v2945_v20 = vpop.f32.mrb[3].mxu0  ;;  %4893 = vmatprep.subr.bf16.mxu0 %v7098_v24  ;;  %v3068_v23 = vpop.f32.mrb[3].mxu1  ;;  %5057 = vmatprep.subr.bf16.mxu1 %v7101_v11  ;;  %v3316_v8 = vpack.c.bf16 %v6895_v13, %v6895_v13  ;;  %v7164_v24 = vld [vmem:[%s8046_s15 + $0x224] ss:$16 sps:$4 sm:$0xff]   ;;  %v7167_v11 = vld [vmem:[%s8046_s15 + $0x22c] ss:$16 sps:$4 sm:$0xff]  }
 0x274   : > { %v3317_v22 = vpack.c.bf16 %v6896_v16, %v6896_v16  ;;  %v3319_v10 = vpack.c.bf16 %v6898_v26, %v6898_v26  ;;  %v7162_v14 = vld [vmem:[%s8046_s15 + $0x220] ss:$16 sps:$4 sm:$0xff]   ;;  %v7165_v16 = vld [vmem:[%s8046_s15 + $0x228] ss:$16 sps:$4 sm:$0xff]   ;;  %v7170_v15 = vld [vmem:[%s8046_s15 + $0x244] ss:$16 sps:$4 sm:$0xff]  }
 0x275   : > { %v7173_v17 = vld [vmem:[%s8046_s15 + $0x24c] ss:$16 sps:$4 sm:$0xff]   ;;  %v7171_v19 = vld [vmem:[%s8046_s15 + $0x248] ss:$16 sps:$4 sm:$0xff]   ;;  %v7176_v20 = vld [vmem:[%s8046_s15 + $0x264] ss:$16 sps:$4 sm:$0xff]  }
 0x276   : > { %4894 = vmatpush1.bf16.msra.mxu0 %v7096_v18  ;;  %4913 = vmatprep.mubr.bf16.mxu0 %v3317_v22  ;;  %v7168_v18 = vld [vmem:[%s8046_s15 + $0x240] ss:$16 sps:$4 sm:$0xff]   ;;  %v7177_v23 = vld [vmem:[%s8046_s15 + $0x268] ss:$16 sps:$4 sm:$0xff]   ;;  %v7239_v13 = vld [vmem:[%s8046_s15 + $0x3ac] ss:$16 sps:$4 sm:$0xff]  }
 0x277   : > { %5058 = vmatpush1.bf16.msra.mxu1 %v7099_v21  ;;  %5077 = vmatprep.mubr.bf16.mxu1 %v3317_v22  ;;  %v7179_v21 = vld [vmem:[%s8046_s15 + $0x26c] ss:$16 sps:$4 sm:$0xff]   ;;  %v7174_v22 = vld [vmem:[%s8046_s15 + $0x260] ss:$16 sps:$4 sm:$0xff]   ;;  %v7231_v1 = vld [vmem:[%s8046_s15 + $0x388] ss:$16 sps:$4 sm:$0xff]  }
 0x278   : > { %4895 = vmatprep.subr.bf16.mxu0 %v7104_v54  ;;  %5059 = vmatprep.subr.bf16.mxu1 %v7107_v27  ;;  %v7182_v54 = vld [vmem:[%s8046_s15 + $0x284] ss:$16 sps:$4 sm:$0xff]   ;;  %v7185_v27 = vld [vmem:[%s8046_s15 + $0x28c] ss:$16 sps:$4 sm:$0xff]  }
 0x279   : > { %v7242_v26 = vld [vmem:[%s8046_s15 + $0x3c4] ss:$16 sps:$4 sm:$0xff]  }
 0x27a   : > { %4896 = vmatpush1.bf16.msra.mxu0 %v7102_v28  ;;  %v7180_v28 = vld [vmem:[%s8046_s15 + $0x280] ss:$16 sps:$4 sm:$0xff]  }
 0x27b   : > { %5060 = vmatpush1.bf16.msra.mxu1 %v7105_v29  ;;  %4897 = vmatprep.subr.bf16.mxu0 %v7110_v30  ;;  %v7183_v29 = vld [vmem:[%s8046_s15 + $0x288] ss:$16 sps:$4 sm:$0xff]   ;;  %v7188_v30 = vld [vmem:[%s8046_s15 + $0x2a4] ss:$16 sps:$4 sm:$0xff]  }
 0x27c   : > { %5061 = vmatprep.subr.bf16.mxu1 %v7113_v31  ;;  %v7191_v31 = vld [vmem:[%s8046_s15 + $0x2ac] ss:$16 sps:$4 sm:$0xff]  }
 0x27e   : > { %4898 = vmatpush1.bf16.msra.mxu0 %v7108_v32  ;;  %v7186_v32 = vld [vmem:[%s8046_s15 + $0x2a0] ss:$16 sps:$4 sm:$0xff]  }
 0x27f   : > { %5062 = vmatpush1.bf16.msra.mxu1 %v7111_v33  ;;  %4899 = vmatprep.subr.bf16.mxu0 %v7116_v34  ;;  %v7189_v33 = vld [vmem:[%s8046_s15 + $0x2a8] ss:$16 sps:$4 sm:$0xff]   ;;  %v7194_v34 = vld [vmem:[%s8046_s15 + $0x2c4] ss:$16 sps:$4 sm:$0xff]  }
 0x280   : > { %5063 = vmatprep.subr.bf16.mxu1 %v7119_v35  ;;  %v7197_v35 = vld [vmem:[%s8046_s15 + $0x2cc] ss:$16 sps:$4 sm:$0xff]  }
 0x282   : > { %4900 = vmatpush1.bf16.msra.mxu0 %v7114_v36  ;;  %v7192_v36 = vld [vmem:[%s8046_s15 + $0x2c0] ss:$16 sps:$4 sm:$0xff]  }
 0x283   : > { %5064 = vmatpush1.bf16.msra.mxu1 %v7117_v37  ;;  %4901 = vmatprep.subr.bf16.mxu0 %v7122_v38  ;;  %v7195_v37 = vld [vmem:[%s8046_s15 + $0x2c8] ss:$16 sps:$4 sm:$0xff]   ;;  %v7200_v38 = vld [vmem:[%s8046_s15 + $0x2e4] ss:$16 sps:$4 sm:$0xff]  }
 0x284   : > { %5065 = vmatprep.subr.bf16.mxu1 %v7125_v40  ;;  %v7203_v40 = vld [vmem:[%s8046_s15 + $0x2ec] ss:$16 sps:$4 sm:$0xff]  }
 0x286   : > { %4902 = vmatpush1.bf16.msra.mxu0 %v7120_v41  ;;  %v7198_v41 = vld [vmem:[%s8046_s15 + $0x2e0] ss:$16 sps:$4 sm:$0xff]  }
 0x287   : > { %5066 = vmatpush1.bf16.msra.mxu1 %v7123_v42  ;;  %4903 = vmatprep.subr.bf16.mxu0 %v7128_v43  ;;  %v7201_v42 = vld [vmem:[%s8046_s15 + $0x2e8] ss:$16 sps:$4 sm:$0xff]   ;;  %v7206_v43 = vld [vmem:[%s8046_s15 + $0x304] ss:$16 sps:$4 sm:$0xff]  }
 0x288   : > { %5067 = vmatprep.subr.bf16.mxu1 %v7131_v44  ;;  %v7209_v44 = vld [vmem:[%s8046_s15 + $0x30c] ss:$16 sps:$4 sm:$0xff]  }
 0x28a   : > { %4904 = vmatpush1.bf16.msra.mxu0 %v7126_v45  ;;  %v7204_v45 = vld [vmem:[%s8046_s15 + $0x300] ss:$16 sps:$4 sm:$0xff]  }
 0x28b   : > { %5068 = vmatpush1.bf16.msra.mxu1 %v7129_v46  ;;  %4905 = vmatprep.subr.bf16.mxu0 %v7134_v47  ;;  %v7207_v46 = vld [vmem:[%s8046_s15 + $0x308] ss:$16 sps:$4 sm:$0xff]   ;;  %v7212_v47 = vld [vmem:[%s8046_s15 + $0x324] ss:$16 sps:$4 sm:$0xff]  }
 0x28c   : > { %5069 = vmatprep.subr.bf16.mxu1 %v7137_v25  ;;  %v7215_v25 = vld [vmem:[%s8046_s15 + $0x32c] ss:$16 sps:$4 sm:$0xff]  }
 0x28e   : > { %4906 = vmatpush1.bf16.msra.mxu0 %v7132_v48  ;;  %v7210_v48 = vld [vmem:[%s8046_s15 + $0x320] ss:$16 sps:$4 sm:$0xff]  }
 0x28f   : > { %5070 = vmatpush1.bf16.msra.mxu1 %v7135_v49  ;;  %4907 = vmatprep.subr.bf16.mxu0 %v7140_v50  ;;  %v7213_v49 = vld [vmem:[%s8046_s15 + $0x328] ss:$16 sps:$4 sm:$0xff]   ;;  %v7218_v50 = vld [vmem:[%s8046_s15 + $0x344] ss:$16 sps:$4 sm:$0xff]  }
 0x290   : > { %5071 = vmatprep.subr.bf16.mxu1 %v7143_v51  ;;  %v7221_v51 = vld [vmem:[%s8046_s15 + $0x34c] ss:$16 sps:$4 sm:$0xff]  }
 0x292   : > { %4908 = vmatpush1.bf16.msra.mxu0 %v7138_v52  ;;  %v7216_v52 = vld [vmem:[%s8046_s15 + $0x340] ss:$16 sps:$4 sm:$0xff]  }
 0x293   : > { %5072 = vmatpush1.bf16.msra.mxu1 %v7141_v55  ;;  %4909 = vmatprep.subr.bf16.mxu0 %v7146_v56  ;;  %v7219_v55 = vld [vmem:[%s8046_s15 + $0x348] ss:$16 sps:$4 sm:$0xff]   ;;  %v7224_v56 = vld [vmem:[%s8046_s15 + $0x364] ss:$16 sps:$4 sm:$0xff]  }
 0x294   : > { %5073 = vmatprep.subr.bf16.mxu1 %v7149_v57  ;;  %v7227_v57 = vld [vmem:[%s8046_s15 + $0x36c] ss:$16 sps:$4 sm:$0xff]  }
 0x296   : > { %4910 = vmatpush1.bf16.msra.mxu0 %v7144_v60  ;;  %v7222_v60 = vld [vmem:[%s8046_s15 + $0x360] ss:$16 sps:$4 sm:$0xff]  }
 0x297   : > { %5074 = vmatpush1.bf16.msra.mxu1 %v7147_v61  ;;  %4911 = vmatprep.subr.bf16.mxu0 %v7152_v62  ;;  %v7230_v61 = vld [vmem:[%s8046_s15 + $0x384] ss:$16 sps:$4 sm:$0xff]   ;;  %v7233_v62 = vld [vmem:[%s8046_s15 + $0x38c] ss:$16 sps:$4 sm:$0xff]  }
 0x298   : > { %5075 = vmatprep.subr.bf16.mxu1 %v7155_v63  ;;  %v7228_v63 = vld [vmem:[%s8046_s15 + $0x380] ss:$16 sps:$4 sm:$0xff]  }
 0x29a   : > { %4912 = vmatpush1.bf16.msra.mxu0 %v7150_v58  ;;  %v7236_v58 = vld [vmem:[%s8046_s15 + $0x3a4] ss:$16 sps:$4 sm:$0xff]  }
 0x29b   : > { %5076 = vmatpush1.bf16.msra.mxu1 %v7153_v2  ;;  %4922 = vmatprep.subr.bf16.mxu0 %v7158_v4  ;;  %v7234_v2 = vld [vmem:[%s8046_s15 + $0x3a0] ss:$16 sps:$4 sm:$0xff]   ;;  %v853_v4 = vsub.s32 2, %v8536_v0 }
 0x29c   : > { %5086 = vmatprep.subr.bf16.mxu1 %v7161_v6  ;;  %v7237_v6 = vld [vmem:[%s8046_s15 + $0x3a8] ss:$16 sps:$4 sm:$0xff]  }
 0x29d   : > { %4914 = vmatmul.mubr.bf16.vlgmr.msra.gmra.mrb[8].mxu0 %v3316_v8 }
 0x29e   : > { %5078 = vmatmul.mubr.bf16.vlgmr.msra.gmra.mrb[8].mxu1 %v3316_v8  ;;  %4923 = vmatpush1.bf16.msra.mxu0 %v7156_v7  ;;  %v7245_v7 = vld [vmem:[%s8046_s15 + $0x3cc] ss:$16 sps:$4 sm:$0xff]   ;;  %v7240_v8 = vld [vmem:[%s8046_s15 + $0x3c0] ss:$16 sps:$4 sm:$0xff]  }
 0x29f   : > { %4954 = vmatprep.mubr.bf16.mxu0 %v3319_v10  ;;  %5087 = vmatpush1.bf16.msra.mxu1 %v7159_v9  ;;  %v854_v9 = vrot.slane %v8545_v5, %v853_v4 }
 0x2a0   : > { %5118 = vmatprep.mubr.bf16.mxu1 %v3319_v10  ;;  %4924 = vmatprep.subr.bf16.mxu0 %v7164_v24  ;;  %v7243_v24 = vld [vmem:[%s8046_s15 + $0x3c8] ss:$16 sps:$4 sm:$0xff]   ;;  %v7248_v10 = vld [vmem:[%s8046_s15 + $0x3e4] ss:$16 sps:$4 sm:$0xff]  }
 0x2a1   : > { %5088 = vmatprep.subr.bf16.mxu1 %v7167_v11  ;;  %v7251_v11 = vld [vmem:[%s8046_s15 + $0x3ec] ss:$16 sps:$4 sm:$0xff]  }
 0x2a2   : > { %4925 = vmatpush1.bf16.msra.mxu0 %v7162_v14  ;;  %v7246_v14 = vld [vmem:[%s8046_s15 + $0x3e0] ss:$16 sps:$4 sm:$0xff]  }
 0x2a3   : > { %5089 = vmatpush1.bf16.msra.mxu1 %v7165_v16  ;;  %4926 = vmatprep.subr.bf16.mxu0 %v7170_v15  ;;  %v6897_v16 = vadd.f32 %v8558_v12, %v854_v9  ;;  %v7249_v15 = vld [vmem:[%s8046_s15 + $0x3e8] ss:$16 sps:$4 sm:$0xff]   ;;  %v7263_v12 = vld [vmem:[%s8046_s15 + $0x42c] ss:$16 sps:$4 sm:$0xff]   ;;  %v7324_v9 = vld [vmem:[%s8046_s15 + $0x580] ss:$16 sps:$4 sm:$0xff]  }
 0x2a4   : > { %5090 = vmatprep.subr.bf16.mxu1 %v7173_v17  ;;  %v7254_v17 = vld [vmem:[%s8046_s15 + $0x404] ss:$16 sps:$4 sm:$0xff]  }
 0x2a6   : > { %4927 = vmatpush1.bf16.msra.mxu0 %v7168_v18  ;;  %v7257_v18 = vld [vmem:[%s8046_s15 + $0x40c] ss:$16 sps:$4 sm:$0xff]  }
 0x2a7   : > { %5091 = vmatpush1.bf16.msra.mxu1 %v7171_v19  ;;  %4928 = vmatprep.subr.bf16.mxu0 %v7176_v20  ;;  %v7252_v19 = vld [vmem:[%s8046_s15 + $0x400] ss:$16 sps:$4 sm:$0xff]   ;;  %v3318_v20 = vpack.c.bf16 %v6897_v16, %v6897_v16  ;;  %v7333_v16 = vld [vmem:[%s8046_s15 + $0x5a8] ss:$16 sps:$4 sm:$0xff]  }
 0x2a8   : > { %5092 = vmatprep.subr.bf16.mxu1 %v7179_v21  ;;  %v7255_v21 = vld [vmem:[%s8046_s15 + $0x408] ss:$16 sps:$4 sm:$0xff]  }
 0x2aa   : > { %4929 = vmatpush1.bf16.msra.mxu0 %v7174_v22  ;;  %v7260_v22 = vld [vmem:[%s8046_s15 + $0x424] ss:$16 sps:$4 sm:$0xff]  }
 0x2ab   : > { %5093 = vmatpush1.bf16.msra.mxu1 %v7177_v23  ;;  %4930 = vmatprep.subr.bf16.mxu0 %v7182_v54  ;;  %v7258_v23 = vld [vmem:[%s8046_s15 + $0x420] ss:$16 sps:$4 sm:$0xff]   ;;  %v7261_v54 = vld [vmem:[%s8046_s15 + $0x428] ss:$16 sps:$4 sm:$0xff]  }
 0x2ac   : > { %5094 = vmatprep.subr.bf16.mxu1 %v7185_v27  ;;  %v7266_v27 = vld [vmem:[%s8046_s15 + $0x444] ss:$16 sps:$4 sm:$0xff]  }
 0x2ae   : > { %4931 = vmatpush1.bf16.msra.mxu0 %v7180_v28  ;;  %v7269_v28 = vld [vmem:[%s8046_s15 + $0x44c] ss:$16 sps:$4 sm:$0xff]  }
 0x2af   : > { %5095 = vmatpush1.bf16.msra.mxu1 %v7183_v29  ;;  %4932 = vmatprep.subr.bf16.mxu0 %v7188_v30  ;;  %v7264_v29 = vld [vmem:[%s8046_s15 + $0x440] ss:$16 sps:$4 sm:$0xff]   ;;  %v7267_v30 = vld [vmem:[%s8046_s15 + $0x448] ss:$16 sps:$4 sm:$0xff]  }
 0x2b0   : > { %5096 = vmatprep.subr.bf16.mxu1 %v7191_v31  ;;  %v7272_v31 = vld [vmem:[%s8046_s15 + $0x464] ss:$16 sps:$4 sm:$0xff]  }
 0x2b2   : > { %4933 = vmatpush1.bf16.msra.mxu0 %v7186_v32  ;;  %v7275_v32 = vld [vmem:[%s8046_s15 + $0x46c] ss:$16 sps:$4 sm:$0xff]  }
 0x2b3   : > { %5097 = vmatpush1.bf16.msra.mxu1 %v7189_v33  ;;  %4934 = vmatprep.subr.bf16.mxu0 %v7194_v34  ;;  %v7270_v33 = vld [vmem:[%s8046_s15 + $0x460] ss:$16 sps:$4 sm:$0xff]   ;;  %v7273_v34 = vld [vmem:[%s8046_s15 + $0x468] ss:$16 sps:$4 sm:$0xff]  }
 0x2b4   : > { %5098 = vmatprep.subr.bf16.mxu1 %v7197_v35  ;;  %v7278_v35 = vld [vmem:[%s8046_s15 + $0x484] ss:$16 sps:$4 sm:$0xff]  }
 0x2b6   : > { %4935 = vmatpush1.bf16.msra.mxu0 %v7192_v36  ;;  %v7281_v36 = vld [vmem:[%s8046_s15 + $0x48c] ss:$16 sps:$4 sm:$0xff]  }
 0x2b7   : > { %5099 = vmatpush1.bf16.msra.mxu1 %v7195_v37  ;;  %4936 = vmatprep.subr.bf16.mxu0 %v7200_v38  ;;  %v7276_v37 = vld [vmem:[%s8046_s15 + $0x480] ss:$16 sps:$4 sm:$0xff]   ;;  %v7279_v38 = vld [vmem:[%s8046_s15 + $0x488] ss:$16 sps:$4 sm:$0xff]  }
 0x2b8   : > { %5100 = vmatprep.subr.bf16.mxu1 %v7203_v40  ;;  %v7284_v40 = vld [vmem:[%s8046_s15 + $0x4a4] ss:$16 sps:$4 sm:$0xff]  }
 0x2ba   : > { %4937 = vmatpush1.bf16.msra.mxu0 %v7198_v41  ;;  %v7287_v41 = vld [vmem:[%s8046_s15 + $0x4ac] ss:$16 sps:$4 sm:$0xff]  }
 0x2bb   : > { %5101 = vmatpush1.bf16.msra.mxu1 %v7201_v42  ;;  %4938 = vmatprep.subr.bf16.mxu0 %v7206_v43  ;;  %v7282_v42 = vld [vmem:[%s8046_s15 + $0x4a0] ss:$16 sps:$4 sm:$0xff]   ;;  %v7285_v43 = vld [vmem:[%s8046_s15 + $0x4a8] ss:$16 sps:$4 sm:$0xff]  }
 0x2bc   : > { %5102 = vmatprep.subr.bf16.mxu1 %v7209_v44  ;;  %v7290_v44 = vld [vmem:[%s8046_s15 + $0x4c4] ss:$16 sps:$4 sm:$0xff]  }
 0x2be   : > { %4939 = vmatpush1.bf16.msra.mxu0 %v7204_v45  ;;  %v7293_v45 = vld [vmem:[%s8046_s15 + $0x4cc] ss:$16 sps:$4 sm:$0xff]  }
 0x2bf   : > { %5103 = vmatpush1.bf16.msra.mxu1 %v7207_v46  ;;  %4940 = vmatprep.subr.bf16.mxu0 %v7212_v47  ;;  %v7288_v46 = vld [vmem:[%s8046_s15 + $0x4c0] ss:$16 sps:$4 sm:$0xff]   ;;  %v7291_v47 = vld [vmem:[%s8046_s15 + $0x4c8] ss:$16 sps:$4 sm:$0xff]  }
 0x2c0   : > { %5104 = vmatprep.subr.bf16.mxu1 %v7215_v25  ;;  %v7296_v25 = vld [vmem:[%s8046_s15 + $0x4e4] ss:$16 sps:$4 sm:$0xff]  }
 0x2c2   : > { %4941 = vmatpush1.bf16.msra.mxu0 %v7210_v48  ;;  %v7299_v48 = vld [vmem:[%s8046_s15 + $0x4ec] ss:$16 sps:$4 sm:$0xff]  }
 0x2c3   : > { %5105 = vmatpush1.bf16.msra.mxu1 %v7213_v49  ;;  %4942 = vmatprep.subr.bf16.mxu0 %v7218_v50  ;;  %v7294_v49 = vld [vmem:[%s8046_s15 + $0x4e0] ss:$16 sps:$4 sm:$0xff]   ;;  %v7297_v50 = vld [vmem:[%s8046_s15 + $0x4e8] ss:$16 sps:$4 sm:$0xff]  }
 0x2c4   : > { %5106 = vmatprep.subr.bf16.mxu1 %v7221_v51  ;;  %v7302_v51 = vld [vmem:[%s8046_s15 + $0x504] ss:$16 sps:$4 sm:$0xff]  }
 0x2c6   : > { %4943 = vmatpush1.bf16.msra.mxu0 %v7216_v52  ;;  %v7305_v52 = vld [vmem:[%s8046_s15 + $0x50c] ss:$16 sps:$4 sm:$0xff]  }
 0x2c7   : > { %5107 = vmatpush1.bf16.msra.mxu1 %v7219_v55  ;;  %4944 = vmatprep.subr.bf16.mxu0 %v7224_v56  ;;  %v7300_v55 = vld [vmem:[%s8046_s15 + $0x500] ss:$16 sps:$4 sm:$0xff]   ;;  %v7303_v56 = vld [vmem:[%s8046_s15 + $0x508] ss:$16 sps:$4 sm:$0xff]  }
 0x2c8   : > { %5108 = vmatprep.subr.bf16.mxu1 %v7227_v57  ;;  %v7308_v57 = vld [vmem:[%s8046_s15 + $0x524] ss:$16 sps:$4 sm:$0xff]  }
 0x2ca   : > { %4945 = vmatpush1.bf16.msra.mxu0 %v7222_v60  ;;  %v7311_v60 = vld [vmem:[%s8046_s15 + $0x52c] ss:$16 sps:$4 sm:$0xff]  }
 0x2cb   : > { %5109 = vmatpush1.bf16.msra.mxu1 %v7225_v39  ;;  %4946 = vmatprep.subr.bf16.mxu0 %v7230_v61  ;;  %v7306_v39 = vld [vmem:[%s8046_s15 + $0x520] ss:$16 sps:$4 sm:$0xff]   ;;  %v7309_v61 = vld [vmem:[%s8046_s15 + $0x528] ss:$16 sps:$4 sm:$0xff]  }
 0x2cc   : > { %5110 = vmatprep.subr.bf16.mxu1 %v7233_v62  ;;  %v7314_v62 = vld [vmem:[%s8046_s15 + $0x544] ss:$16 sps:$4 sm:$0xff]  }
 0x2ce   : > { %4947 = vmatpush1.bf16.msra.mxu0 %v7228_v63  ;;  %v7317_v63 = vld [vmem:[%s8046_s15 + $0x54c] ss:$16 sps:$4 sm:$0xff]  }
 0x2cf   : > { %5111 = vmatpush1.bf16.msra.mxu1 %v7231_v1  ;;  %4948 = vmatprep.subr.bf16.mxu0 %v7236_v58  ;;  %v7312_v1 = vld [vmem:[%s8046_s15 + $0x540] ss:$16 sps:$4 sm:$0xff]   ;;  %v7315_v58 = vld [vmem:[%s8046_s15 + $0x548] ss:$16 sps:$4 sm:$0xff]  }
 0x2d0   : > { %5112 = vmatprep.subr.bf16.mxu1 %v7239_v13  ;;  %v7320_v13 = vld [vmem:[%s8046_s15 + $0x564] ss:$16 sps:$4 sm:$0xff]  }
 0x2d2   : > { %4949 = vmatpush1.bf16.msra.mxu0 %v7234_v2  ;;  %v7323_v2 = vld [vmem:[%s8046_s15 + $0x56c] ss:$16 sps:$4 sm:$0xff]  }
 0x2d3   : > { %5113 = vmatpush1.bf16.msra.mxu1 %v7237_v6  ;;  %4950 = vmatprep.subr.bf16.mxu0 %v7242_v26  ;;  %v7318_v6 = vld [vmem:[%s8046_s15 + $0x560] ss:$16 sps:$4 sm:$0xff]   ;;  %v7321_v26 = vld [vmem:[%s8046_s15 + $0x568] ss:$16 sps:$4 sm:$0xff]  }
 0x2d4   : > { %5114 = vmatprep.subr.bf16.mxu1 %v7245_v7  ;;  %v7326_v7 = vld [vmem:[%s8046_s15 + $0x584] ss:$16 sps:$4 sm:$0xff]  }
 0x2d6   : > { %4951 = vmatpush1.bf16.msra.mxu0 %v7240_v8  ;;  %v7329_v8 = vld [vmem:[%s8046_s15 + $0x58c] ss:$16 sps:$4 sm:$0xff]  }
 0x2d7   : > { %5115 = vmatpush1.bf16.msra.mxu1 %v7243_v24  ;;  %4952 = vmatprep.subr.bf16.mxu0 %v7248_v10  ;;  %v7327_v24 = vld [vmem:[%s8046_s15 + $0x588] ss:$16 sps:$4 sm:$0xff]   ;;  %v7332_v10 = vld [vmem:[%s8046_s15 + $0x5a4] ss:$16 sps:$4 sm:$0xff]  }
 0x2d8   : > { %5116 = vmatprep.subr.bf16.mxu1 %v7251_v11  ;;  %v7335_v11 = vld [vmem:[%s8046_s15 + $0x5ac] ss:$16 sps:$4 sm:$0xff]  }
 0x2da   : > { %4953 = vmatpush1.bf16.msra.mxu0 %v7246_v14  ;;  %v7330_v14 = vld [vmem:[%s8046_s15 + $0x5a0] ss:$16 sps:$4 sm:$0xff]  }
 0x2db   : > { %5117 = vmatpush1.bf16.msra.mxu1 %v7249_v15  ;;  %4963 = vmatprep.subr.bf16.mxu0 %v7254_v17  ;;  %v7338_v15 = vld [vmem:[%s8046_s15 + $0x5c4] ss:$16 sps:$4 sm:$0xff]   ;;  %v7341_v17 = vld [vmem:[%s8046_s15 + $0x5cc] ss:$16 sps:$4 sm:$0xff]  }
 0x2dc   : > { %5127 = vmatprep.subr.bf16.mxu1 %v7257_v18  ;;  %v7336_v18 = vld [vmem:[%s8046_s15 + $0x5c0] ss:$16 sps:$4 sm:$0xff]  }
 0x2dd   : > { %4955 = vmatmul.mubr.bf16.vlgmr.msra.gmra.mrb[8].mxu0 %v3318_v20 }
 0x2de   : > { %5119 = vmatmul.mubr.bf16.vlgmr.msra.gmra.mrb[8].mxu1 %v3318_v20  ;;  %4964 = vmatpush1.bf16.msra.mxu0 %v7252_v19  ;;  %v7339_v19 = vld [vmem:[%s8046_s15 + $0x5c8] ss:$16 sps:$4 sm:$0xff]   ;;  %v7344_v20 = vld [vmem:[%s8046_s15 + $0x5e4] ss:$16 sps:$4 sm:$0xff]  }
 0x2df   : > { %5128 = vmatpush1.bf16.msra.mxu1 %v7255_v21  ;;  %4965 = vmatprep.subr.bf16.mxu0 %v7260_v22  ;;  %v7347_v21 = vld [vmem:[%s8046_s15 + $0x5ec] ss:$16 sps:$4 sm:$0xff]   ;;  %v7342_v22 = vld [vmem:[%s8046_s15 + $0x5e0] ss:$16 sps:$4 sm:$0xff]  }
 0x2e0   : > { %5129 = vmatprep.subr.bf16.mxu1 %v7263_v12  ;;  %v7345_v12 = vld [vmem:[%s8046_s15 + $0x5e8] ss:$16 sps:$4 sm:$0xff]  }
 0x2e2   : > { %4966 = vmatpush1.bf16.msra.mxu0 %v7258_v23  ;;  %v7350_v23 = vld [vmem:[%s8046_s15 + $0x604] ss:$16 sps:$4 sm:$0xff]  }
 0x2e3   : > { %5130 = vmatpush1.bf16.msra.mxu1 %v7261_v54  ;;  %4967 = vmatprep.subr.bf16.mxu0 %v7266_v27  ;;  %v7353_v54 = vld [vmem:[%s8046_s15 + $0x60c] ss:$16 sps:$4 sm:$0xff]   ;;  %v861_v27 = vsub.s32 4, %v8536_v0 }
 0x2e4   : > { %5131 = vmatprep.subr.bf16.mxu1 %v7269_v28  ;;  %v865_v28 = vsub.s32 5, %v8536_v0 }
 0x2e6   : > { %4968 = vmatpush1.bf16.msra.mxu0 %v7264_v29  ;;  %v873_v29 = vsub.s32 7, %v8536_v0 }
 0x2e7   : > { %5132 = vmatpush1.bf16.msra.mxu1 %v7267_v30  ;;  %4969 = vmatprep.subr.bf16.mxu0 %v7272_v31  ;;  %v862_v30 = vrot.slane %v8545_v5, %v861_v27  ;;  %v866_v31 = vrot.slane %v8545_v5, %v865_v28  ;;  %v7413_v27 = vld [vmem:[%s8046_s15 + $0x74c] ss:$16 sps:$4 sm:$0xff]   ;;  %v7408_v28 = vld [vmem:[%s8046_s15 + $0x740] ss:$16 sps:$4 sm:$0xff]  }
 0x2e8   : > { %5133 = vmatprep.subr.bf16.mxu1 %v7275_v32  ;;  %v874_v32 = vrot.slane %v8545_v5, %v873_v29  ;;  %v7351_v5 = vld [vmem:[%s8046_s15 + $0x608] ss:$16 sps:$4 sm:$0xff]  }
 0x2e9   : > { %v7411_v29 = vld [vmem:[%s8046_s15 + $0x748] ss:$16 sps:$4 sm:$0xff]  }
 0x2ea   : > { %4970 = vmatpush1.bf16.msra.mxu0 %v7270_v33 }
 0x2eb   : > { %5134 = vmatpush1.bf16.msra.mxu1 %v7273_v34  ;;  %4971 = vmatprep.subr.bf16.mxu0 %v7278_v35 }
 0x2ec   : > { %5135 = vmatprep.subr.bf16.mxu1 %v7281_v36 }
 0x2ee   : > { %4972 = vmatpush1.bf16.msra.mxu0 %v7276_v37 }
 0x2ef   : > { %5136 = vmatpush1.bf16.msra.mxu1 %v7279_v38  ;;  %4973 = vmatprep.subr.bf16.mxu0 %v7284_v40 }
 0x2f0   : > { %5137 = vmatprep.subr.bf16.mxu1 %v7287_v41 }
 0x2f2   : > { %4974 = vmatpush1.bf16.msra.mxu0 %v7282_v42 }
 0x2f3   : > { %5138 = vmatpush1.bf16.msra.mxu1 %v7285_v43  ;;  %4975 = vmatprep.subr.bf16.mxu0 %v7290_v44 }
 0x2f4   : > { %5139 = vmatprep.subr.bf16.mxu1 %v7293_v45 }
 0x2f6   : > { %4976 = vmatpush1.bf16.msra.mxu0 %v7288_v46  ;;  %v7348_v46 = vld [vmem:[%s8046_s15 + $0x600] ss:$16 sps:$4 sm:$0xff]  }
 0x2f7   : > { %5140 = vmatpush1.bf16.msra.mxu1 %v7291_v47  ;;  %4977 = vmatprep.subr.bf16.mxu0 %v7296_v25  ;;  %v7356_v25 = vld [vmem:[%s8046_s15 + $0x624] ss:$16 sps:$4 sm:$0xff]  }
 0x2f8   : > { %5141 = vmatprep.subr.bf16.mxu1 %v7299_v48  ;;  %v7359_v48 = vld [vmem:[%s8046_s15 + $0x62c] ss:$16 sps:$4 sm:$0xff]  }
 0x2fa   : > { %4978 = vmatpush1.bf16.msra.mxu0 %v7294_v49 }
 0x2fb   : > { %5142 = vmatpush1.bf16.msra.mxu1 %v7297_v50  ;;  %4979 = vmatprep.subr.bf16.mxu0 %v7302_v51  ;;  %v7354_v50 = vld [vmem:[%s8046_s15 + $0x620] ss:$16 sps:$4 sm:$0xff]   ;;  %v7357_v51 = vld [vmem:[%s8046_s15 + $0x628] ss:$16 sps:$4 sm:$0xff]  }
 0x2fc   : > { %5143 = vmatprep.subr.bf16.mxu1 %v7305_v52  ;;  %v7362_v52 = vld [vmem:[%s8046_s15 + $0x644] ss:$16 sps:$4 sm:$0xff]  }
 0x2fe   : > { %4980 = vmatpush1.bf16.msra.mxu0 %v7300_v55  ;;  %v7365_v55 = vld [vmem:[%s8046_s15 + $0x64c] ss:$16 sps:$4 sm:$0xff]  }
 0x2ff   : > { %5144 = vmatpush1.bf16.msra.mxu1 %v7303_v56  ;;  %4981 = vmatprep.subr.bf16.mxu0 %v7308_v57  ;;  %v7360_v56 = vld [vmem:[%s8046_s15 + $0x640] ss:$16 sps:$4 sm:$0xff]   ;;  %v7363_v57 = vld [vmem:[%s8046_s15 + $0x648] ss:$16 sps:$4 sm:$0xff]  }
 0x300   : > { %5145 = vmatprep.subr.bf16.mxu1 %v7311_v60  ;;  %v7368_v60 = vld [vmem:[%s8046_s15 + $0x664] ss:$16 sps:$4 sm:$0xff]  }
 0x302   : > { %4982 = vmatpush1.bf16.msra.mxu0 %v7306_v39  ;;  %v7371_v39 = vld [vmem:[%s8046_s15 + $0x66c] ss:$16 sps:$4 sm:$0xff]  }
 0x303   : > { %5146 = vmatpush1.bf16.msra.mxu1 %v7309_v61  ;;  %4983 = vmatprep.subr.bf16.mxu0 %v7314_v62  ;;  %v7366_v61 = vld [vmem:[%s8046_s15 + $0x660] ss:$16 sps:$4 sm:$0xff]   ;;  %v7369_v62 = vld [vmem:[%s8046_s15 + $0x668] ss:$16 sps:$4 sm:$0xff]  }
 0x304   : > { %5147 = vmatprep.subr.bf16.mxu1 %v7317_v63  ;;  %v7374_v63 = vld [vmem:[%s8046_s15 + $0x684] ss:$16 sps:$4 sm:$0xff]  }
 0x306   : > { %4984 = vmatpush1.bf16.msra.mxu0 %v7312_v1  ;;  %v7377_v1 = vld [vmem:[%s8046_s15 + $0x68c] ss:$16 sps:$4 sm:$0xff]  }
 0x307   : > { %5148 = vmatpush1.bf16.msra.mxu1 %v7315_v58  ;;  %4985 = vmatprep.subr.bf16.mxu0 %v7320_v13  ;;  %v7372_v58 = vld [vmem:[%s8046_s15 + $0x680] ss:$16 sps:$4 sm:$0xff]   ;;  %v7375_v13 = vld [vmem:[%s8046_s15 + $0x688] ss:$16 sps:$4 sm:$0xff]  }
 0x308   : > { %5149 = vmatprep.subr.bf16.mxu1 %v7323_v2  ;;  %v7380_v2 = vld [vmem:[%s8046_s15 + $0x6a4] ss:$16 sps:$4 sm:$0xff]  }
 0x30a   : > { %4986 = vmatpush1.bf16.msra.mxu0 %v7318_v6  ;;  %v7383_v6 = vld [vmem:[%s8046_s15 + $0x6ac] ss:$16 sps:$4 sm:$0xff]  }
 0x30b   : > { %5150 = vmatpush1.bf16.msra.mxu1 %v7321_v26  ;;  %4987 = vmatprep.subr.bf16.mxu0 %v7326_v7  ;;  %v7378_v26 = vld [vmem:[%s8046_s15 + $0x6a0] ss:$16 sps:$4 sm:$0xff]   ;;  %v7381_v7 = vld [vmem:[%s8046_s15 + $0x6a8] ss:$16 sps:$4 sm:$0xff]  }
 0x30c   : > { %5151 = vmatprep.subr.bf16.mxu1 %v7329_v8  ;;  %v7386_v8 = vld [vmem:[%s8046_s15 + $0x6c4] ss:$16 sps:$4 sm:$0xff]  }
 0x30e   : > { %4988 = vmatpush1.bf16.msra.mxu0 %v7324_v9  ;;  %v7389_v9 = vld [vmem:[%s8046_s15 + $0x6cc] ss:$16 sps:$4 sm:$0xff]  }
 0x30f   : > { %5152 = vmatpush1.bf16.msra.mxu1 %v7327_v24  ;;  %4989 = vmatprep.subr.bf16.mxu0 %v7332_v10  ;;  %v7384_v24 = vld [vmem:[%s8046_s15 + $0x6c0] ss:$16 sps:$4 sm:$0xff]   ;;  %v7387_v10 = vld [vmem:[%s8046_s15 + $0x6c8] ss:$16 sps:$4 sm:$0xff]  }
 0x310   : > { %5153 = vmatprep.subr.bf16.mxu1 %v7335_v11  ;;  %v7392_v11 = vld [vmem:[%s8046_s15 + $0x6e4] ss:$16 sps:$4 sm:$0xff]  }
 0x312   : > { %4990 = vmatpush1.bf16.msra.mxu0 %v7330_v14  ;;  %v7395_v14 = vld [vmem:[%s8046_s15 + $0x6ec] ss:$16 sps:$4 sm:$0xff]  }
 0x313   : > { %5154 = vmatpush1.bf16.msra.mxu1 %v7333_v16  ;;  %4991 = vmatprep.subr.bf16.mxu0 %v7338_v15  ;;  %v7390_v16 = vld [vmem:[%s8046_s15 + $0x6e0] ss:$16 sps:$4 sm:$0xff]   ;;  %v7393_v15 = vld [vmem:[%s8046_s15 + $0x6e8] ss:$16 sps:$4 sm:$0xff]  }
 0x314   : > { %5155 = vmatprep.subr.bf16.mxu1 %v7341_v17  ;;  %v7398_v17 = vld [vmem:[%s8046_s15 + $0x704] ss:$16 sps:$4 sm:$0xff]  }
 0x316   : > { %4992 = vmatpush1.bf16.msra.mxu0 %v7336_v18  ;;  %v7401_v18 = vld [vmem:[%s8046_s15 + $0x70c] ss:$16 sps:$4 sm:$0xff]  }
 0x317   : > { %5156 = vmatpush1.bf16.msra.mxu1 %v7339_v19  ;;  %4993 = vmatprep.subr.bf16.mxu0 %v7344_v20  ;;  %v7396_v19 = vld [vmem:[%s8046_s15 + $0x700] ss:$16 sps:$4 sm:$0xff]   ;;  %v7399_v20 = vld [vmem:[%s8046_s15 + $0x708] ss:$16 sps:$4 sm:$0xff]  }
 0x318   : > { %5157 = vmatprep.subr.bf16.mxu1 %v7347_v21  ;;  %v7404_v21 = vld [vmem:[%s8046_s15 + $0x724] ss:$16 sps:$4 sm:$0xff]  }
 0x31a   : > { %4994 = vmatpush1.bf16.msra.mxu0 %v7342_v22  ;;  %v7407_v22 = vld [vmem:[%s8046_s15 + $0x72c] ss:$16 sps:$4 sm:$0xff]  }
 0x31b   : > { %5158 = vmatpush1.bf16.msra.mxu1 %v7345_v12  ;;  %5004 = vmatprep.subr.bf16.mxu0 %v7350_v23  ;;  %v7402_v12 = vld [vmem:[%s8046_s15 + $0x720] ss:$16 sps:$4 sm:$0xff]   ;;  %v7405_v23 = vld [vmem:[%s8046_s15 + $0x728] ss:$16 sps:$4 sm:$0xff]  }
 0x31c   : > { %5168 = vmatprep.subr.bf16.mxu1 %v7353_v54  ;;  %v7410_v54 = vld [vmem:[%s8046_s15 + $0x744] ss:$16 sps:$4 sm:$0xff]  }
 0x330   : > { %v3186_v33 = vpop.f32.mrb[4].mxu0  ;;  %v8751_v35 = vpop.f32.mrb[4].mxu1 }
 0x331   : > { %v6899_v34 = vadd.f32 %v3186_v33, %v862_v30  ;;  %v3188_v36 = vpop.f32.mrb[5].mxu0  ;;  %v3311_v38 = vpop.f32.mrb[5].mxu1  ;;  %v7416_v30 = vld [vmem:[%s8046_s15 + $0x764] ss:$16 sps:$4 sm:$0xff]   ;;  %v7417_v33 = vld [vmem:[%s8046_s15 + $0x768] ss:$16 sps:$4 sm:$0xff]  }
 0x332   : > { %v6900_v37 = vadd.f32 %v3188_v36, %v866_v31  ;;  %v3190_v40 = vpop.f32.mrb[6].mxu0  ;;  %v6902_v41 = vadd.f32 %v3311_v38, %v874_v32  ;;  %v3313_v42 = vpop.f32.mrb[6].mxu1  ;;  %v7419_v31 = vld [vmem:[%s8046_s15 + $0x76c] ss:$16 sps:$4 sm:$0xff]   ;;  %v7414_v32 = vld [vmem:[%s8046_s15 + $0x760] ss:$16 sps:$4 sm:$0xff]  }
 0x333   : > { %v3191_v43 = vpop.f32.mrb[7].mxu0  ;;  %v3314_v45 = vpop.f32.mrb[7].mxu1  ;;  %v3320_v47 = vpack.c.bf16 %v6899_v34, %v6899_v34  ;;  %v7422_v34 = vld [vmem:[%s8046_s15 + $0x784] ss:$16 sps:$4 sm:$0xff]   ;;  %v7425_v36 = vld [vmem:[%s8046_s15 + $0x78c] ss:$16 sps:$4 sm:$0xff]  }
 0x334   : > { %v3321_v44 = vpack.c.bf16 %v6900_v37, %v6900_v37  ;;  %v3323_v49 = vpack.c.bf16 %v6902_v41, %v6902_v41  ;;  %v7420_v37 = vld [vmem:[%s8046_s15 + $0x780] ss:$16 sps:$4 sm:$0xff]   ;;  %v7423_v38 = vld [vmem:[%s8046_s15 + $0x788] ss:$16 sps:$4 sm:$0xff]   ;;  %v7428_v40 = vld [vmem:[%s8046_s15 + $0x7a4] ss:$16 sps:$4 sm:$0xff]  }
 0x335   : > { %v7431_v41 = vld [vmem:[%s8046_s15 + $0x7ac] ss:$16 sps:$4 sm:$0xff]   ;;  %v7426_v42 = vld [vmem:[%s8046_s15 + $0x7a0] ss:$16 sps:$4 sm:$0xff]   ;;  %v7429_v43 = vld [vmem:[%s8046_s15 + $0x7a8] ss:$16 sps:$4 sm:$0xff]  }
 0x336   : > { %4995 = vmatprep.mubr.bf16.mxu0 %v3321_v44  ;;  %5159 = vmatprep.mubr.bf16.mxu1 %v3321_v44  ;;  %v869_v44 = vsub.s32 6, %v8536_v0  ;;  %v7434_v45 = vld [vmem:[%s8046_s15 + $0x7c4] ss:$16 sps:$4 sm:$0xff]  }
 0x337   : > { %4996 = vmatmul.mubr.bf16.vlgmr.msra.gmra.mrb[8].mxu0 %v3320_v47  ;;  %5160 = vmatmul.mubr.bf16.vlgmr.msra.gmra.mrb[8].mxu1 %v3320_v47  ;;  %v7435_v47 = vld [vmem:[%s8046_s15 + $0x7c8] ss:$16 sps:$4 sm:$0xff]  }
 0x338   : > { %5005 = vmatpush1.bf16.msra.mxu0 %v7348_v46  ;;  %5169 = vmatpush1.bf16.msra.mxu1 %v7351_v5  ;;  %v7437_v46 = vld [vmem:[%s8046_s15 + $0x7cc] ss:$16 sps:$4 sm:$0xff]   ;;  %v7432_v5 = vld [vmem:[%s8046_s15 + $0x7c0] ss:$16 sps:$4 sm:$0xff]  }
 0x339   : > { %5036 = vmatprep.mubr.bf16.mxu0 %v3323_v49  ;;  %5200 = vmatprep.mubr.bf16.mxu1 %v3323_v49  ;;  %v7440_v49 = vld [vmem:[%s8046_s15 + $0x7e4] ss:$16 sps:$4 sm:$0xff]  }
 0x33a   : > { %5006 = vmatprep.subr.bf16.mxu0 %v7356_v25  ;;  %5170 = vmatprep.subr.bf16.mxu1 %v7359_v48  ;;  %v7476_v25 = vld [vmem:[%s8054_s29] sm:$0xff] }
 0x33b   : > { %v870_v48 = vrot.slane %v7476_v25, %v869_v44 }
 0x33c   : > { %5007 = vmatpush1.bf16.msra.mxu0 %v7354_v50  ;;  %5171 = vmatpush1.bf16.msra.mxu1 %v7357_v51  ;;  %v7443_v50 = vld [vmem:[%s8046_s15 + $0x7ec] ss:$16 sps:$4 sm:$0xff]   ;;  %v7438_v51 = vld [vmem:[%s8046_s15 + $0x7e0] ss:$16 sps:$4 sm:$0xff]  }
 0x33d   : > { %5008 = vmatprep.subr.bf16.mxu0 %v7362_v52  ;;  %5172 = vmatprep.subr.bf16.mxu1 %v7365_v55  ;;  %v7441_v52 = vld [vmem:[%s8046_s15 + $0x7e8] ss:$16 sps:$4 sm:$0xff]   ;;  %v6901_v55 = vadd.f32 %v8751_v35, %v870_v48 }
 0x33e   : > { %v7450_v35 = vld [vmem:[%s8052_s13 + $0x8] sm:$0xff]  }
 0x340   : > { %5009 = vmatpush1.bf16.msra.mxu0 %v7360_v56  ;;  %5173 = vmatpush1.bf16.msra.mxu1 %v7363_v57  ;;  %v7444_v56 = vld [vmem:[%s8052_s13 + $0x40] sm:$0xff]  }
 0x341   : > { %5010 = vmatprep.subr.bf16.mxu0 %v7368_v60  ;;  %5174 = vmatprep.subr.bf16.mxu1 %v7371_v39  ;;  %v7445_v57 = vld [vmem:[%s8052_s13 + $0xc0] sm:$0xff]  }
 0x342   : > { %v7446_v60 = vld [vmem:[%s8052_s13] sm:$0xff]  }
 0x343   : > { %v7447_v39 = vld [vmem:[%s8052_s13 + $0x80] sm:$0xff]  }
 0x344   : > { %5011 = vmatpush1.bf16.msra.mxu0 %v7366_v61  ;;  %5175 = vmatpush1.bf16.msra.mxu1 %v7369_v62  ;;  %v3322_v61 = vpack.c.bf16 %v6901_v55, %v6901_v55  ;;  %v7448_v62 = vld [vmem:[%s8052_s13 + $0x48] sm:$0xff]  }
 0x345   : > { %5012 = vmatprep.subr.bf16.mxu0 %v7374_v63  ;;  %5176 = vmatprep.subr.bf16.mxu1 %v7377_v1  ;;  %v7449_v63 = vld [vmem:[%s8052_s13 + $0xc8] sm:$0xff]  }
 0x346   : > { %v7451_v1 = vld [vmem:[%s8052_s13 + $0x88] sm:$0xff]  }
 0x348   : > { %5013 = vmatpush1.bf16.msra.mxu0 %v7372_v58  ;;  %5177 = vmatpush1.bf16.msra.mxu1 %v7375_v13  ;;  %v7452_v58 = vld [vmem:[%s8052_s13 + $0x50] sm:$0xff]  }
 0x349   : > { %5014 = vmatprep.subr.bf16.mxu0 %v7380_v2  ;;  %5178 = vmatprep.subr.bf16.mxu1 %v7383_v6  ;;  %v7453_v13 = vld [vmem:[%s8052_s13 + $0xd0] sm:$0xff]  }
 0x34a   : > { %v7454_v2 = vld [vmem:[%s8052_s13 + $0x10] sm:$0xff]  }
 0x34b   : > { %v7455_v6 = vld [vmem:[%s8052_s13 + $0x90] sm:$0xff]  }
 0x34c   : > { %5015 = vmatpush1.bf16.msra.mxu0 %v7378_v26  ;;  %5179 = vmatpush1.bf16.msra.mxu1 %v7381_v7  ;;  %v7456_v26 = vld [vmem:[%s8052_s13 + $0x58] sm:$0xff]  }
 0x34d   : > { %5016 = vmatprep.subr.bf16.mxu0 %v7386_v8  ;;  %5180 = vmatprep.subr.bf16.mxu1 %v7389_v9  ;;  %v7457_v7 = vld [vmem:[%s8052_s13 + $0xd8] sm:$0xff]  }
 0x34e   : > { %v7458_v8 = vld [vmem:[%s8052_s13 + $0x18] sm:$0xff]  }
 0x34f   : > { %v7459_v9 = vld [vmem:[%s8052_s13 + $0x98] sm:$0xff]  }
 0x350   : > { %5017 = vmatpush1.bf16.msra.mxu0 %v7384_v24  ;;  %5181 = vmatpush1.bf16.msra.mxu1 %v7387_v10  ;;  %v7460_v24 = vld [vmem:[%s8052_s13 + $0x60] sm:$0xff]  }
 0x351   : > { %5018 = vmatprep.subr.bf16.mxu0 %v7392_v11  ;;  %5182 = vmatprep.subr.bf16.mxu1 %v7395_v14  ;;  %v7461_v10 = vld [vmem:[%s8052_s13 + $0xe0] sm:$0xff]  }
 0x352   : > { %v7462_v11 = vld [vmem:[%s8052_s13 + $0x20] sm:$0xff]  }
 0x353   : > { %v7463_v14 = vld [vmem:[%s8052_s13 + $0xa0] sm:$0xff]  }
 0x354   : > { %5019 = vmatpush1.bf16.msra.mxu0 %v7390_v16  ;;  %5183 = vmatpush1.bf16.msra.mxu1 %v7393_v15  ;;  %v7464_v16 = vld [vmem:[%s8052_s13 + $0x68] sm:$0xff]  }
 0x355   : > { %5020 = vmatprep.subr.bf16.mxu0 %v7398_v17  ;;  %5184 = vmatprep.subr.bf16.mxu1 %v7401_v18  ;;  %v7465_v15 = vld [vmem:[%s8052_s13 + $0xe8] sm:$0xff]  }
 0x356   : > { %v7466_v17 = vld [vmem:[%s8052_s13 + $0x28] sm:$0xff]  }
 0x357   : > { %v7467_v18 = vld [vmem:[%s8052_s13 + $0xa8] sm:$0xff]  }
 0x358   : > { %5021 = vmatpush1.bf16.msra.mxu0 %v7396_v19  ;;  %5185 = vmatpush1.bf16.msra.mxu1 %v7399_v20  ;;  %v7468_v19 = vld [vmem:[%s8052_s13 + $0x70] sm:$0xff]  }
 0x359   : > { %5022 = vmatprep.subr.bf16.mxu0 %v7404_v21  ;;  %5186 = vmatprep.subr.bf16.mxu1 %v7407_v22  ;;  %v7469_v20 = vld [vmem:[%s8052_s13 + $0xf0] sm:$0xff]  }
 0x35a   : > { %v7470_v21 = vld [vmem:[%s8052_s13 + $0x30] sm:$0xff]  }
 0x35b   : > { %v7471_v22 = vld [vmem:[%s8052_s13 + $0xb0] sm:$0xff]  }
 0x35c   : > { %5023 = vmatpush1.bf16.msra.mxu0 %v7402_v12  ;;  %5187 = vmatpush1.bf16.msra.mxu1 %v7405_v23  ;;  %v7472_v12 = vld [vmem:[%s8052_s13 + $0x78] sm:$0xff]  }
 0x35d   : > { %5024 = vmatprep.subr.bf16.mxu0 %v7410_v54  ;;  %5188 = vmatprep.subr.bf16.mxu1 %v7413_v27  ;;  %v7473_v23 = vld [vmem:[%s8052_s13 + $0xf8] sm:$0xff]  }
 0x35e   : > { %v7474_v54 = vld [vmem:[%s8052_s13 + $0x38] sm:$0xff]  }
 0x35f   : > { %v7475_v27 = vld [vmem:[%s8052_s13 + $0xb8] sm:$0xff]  }
 0x360   : > { %5025 = vmatpush1.bf16.msra.mxu0 %v7408_v28  ;;  %5189 = vmatpush1.bf16.msra.mxu1 %v7411_v29  ;;  %v456_v28 = vld [vmem:[%s8054_s29 + $0x8] sm:$0xf] }
 0x361   : > { %5026 = vmatprep.subr.bf16.mxu0 %v7416_v30  ;;  %5190 = vmatprep.subr.bf16.mxu1 %v7419_v31  ;;  %v3584_v29 = vrot.slane %v456_v28, %v845_v53  ;;  %v3592_v30 = vrot.slane %v456_v28, %v853_v4  ;;  %v3588_v31 = vrot.slane %v456_v28, %v849_v3 }
 0x364   : > { %5027 = vmatpush1.bf16.msra.mxu0 %v7414_v32  ;;  %5191 = vmatpush1.bf16.msra.mxu1 %v7417_v33  ;;  %v3596_v32 = vrot.slane %v456_v28, %v857_v59 }
 0x365   : > { %5028 = vmatprep.subr.bf16.mxu0 %v7422_v34  ;;  %5192 = vmatprep.subr.bf16.mxu1 %v7425_v36 }
 0x368   : > { %5029 = vmatpush1.bf16.msra.mxu0 %v7420_v37  ;;  %5193 = vmatpush1.bf16.msra.mxu1 %v7423_v38 }
 0x369   : > { %5030 = vmatprep.subr.bf16.mxu0 %v7428_v40  ;;  %5194 = vmatprep.subr.bf16.mxu1 %v7431_v41 }
 0x36c   : > { %5031 = vmatpush1.bf16.msra.mxu0 %v7426_v42  ;;  %5195 = vmatpush1.bf16.msra.mxu1 %v7429_v43 }
 0x36d   : > { %5032 = vmatprep.subr.bf16.mxu0 %v7434_v45  ;;  %5196 = vmatprep.subr.bf16.mxu1 %v7437_v46 }
 0x370   : > { %5033 = vmatpush1.bf16.msra.mxu0 %v7432_v5  ;;  %5197 = vmatpush1.bf16.msra.mxu1 %v7435_v47  ;;  %v6699_v47 = vld [vmem:[%s8054_s29 + $0xc] ss:$0 sm:$0xff] }
 0x371   : > { %5034 = vmatprep.subr.bf16.mxu0 %v7440_v49  ;;  %5198 = vmatprep.subr.bf16.mxu1 %v7443_v50 }
 0x374   : > { %5035 = vmatpush1.bf16.msra.mxu0 %v7438_v51  ;;  %5199 = vmatpush1.bf16.msra.mxu1 %v7441_v52 }
 0x375   : > { %6764 = vmatprep.subr.bf16.mxu0 %v7444_v56  ;;  %6786 = vmatprep.subr.bf16.mxu1 %v7445_v57 }
 0x377   : > { %5037 = vmatmul.mubr.bf16.vlgmr.msra.gmra.mrb[8].mxu0 %v3322_v61  ;;  %5201 = vmatmul.mubr.bf16.vlgmr.msra.gmra.mrb[8].mxu1 %v3322_v61 }
 0x378   : > { %6765 = vmatpush3.bf16.msra.mxu0 %v7446_v60  ;;  %6787 = vmatpush3.bf16.msra.mxu1 %v7447_v39  ;;  %v5555_v60 = vld [vmem:[%s8923_s7] sm:$0xff] }
 0x379   : > { %6766 = vmatprep.subr.bf16.mxu0 %v7448_v62  ;;  %6788 = vmatprep.subr.bf16.mxu1 %v7449_v63  ;;  %v7477_v62 = vld [vmem:[#allocation9] sm:$0xff] (!%p6732_p13)   ;;  %v7742_v63 = vmov (!%p6732_p13), 0.0  }
 0x37c   : > { %6767 = vmatpush3.bf16.msra.mxu0 %v7450_v35  ;;  %6789 = vmatpush3.bf16.msra.mxu1 %v7451_v1  ;;  %v7478_v35 = vld [vmem:[#allocation9 + $0x8] sm:$0xff] (!%p6732_p13)   ;;  %v7479_v1 = vld [vmem:[#allocation9 + $0x10] sm:$0xff] (!%p6732_p13)  }
 0x37d   : > { %6768 = vmatprep.subr.bf16.mxu0 %v7452_v58  ;;  %6790 = vmatprep.subr.bf16.mxu1 %v7453_v13  ;;  %v7480_v58 = vld [vmem:[#allocation9 + $0x18] sm:$0xff] (!%p6732_p13)   ;;  %v7485_v13 = vld [vmem:[#allocation9 + $0x40] sm:$0xff] (!%p6732_p13)  }
 0x380   : > { %6769 = vmatpush3.bf16.msra.mxu0 %v7454_v2  ;;  %6791 = vmatpush3.bf16.msra.mxu1 %v7455_v6  ;;  %v7486_v2 = vld [vmem:[#allocation9 + $0x48] sm:$0xff] (!%p6732_p13)   ;;  %v7481_v6 = vld [vmem:[#allocation9 + $0x20] sm:$0xff] (!%p6732_p13)  }
 0x381   : > { %6770 = vmatprep.subr.bf16.mxu0 %v7456_v26  ;;  %6792 = vmatprep.subr.bf16.mxu1 %v7457_v7  ;;  %v7487_v26 = vld [vmem:[#allocation9 + $0x50] sm:$0xff] (!%p6732_p13)   ;;  %v7482_v7 = vld [vmem:[#allocation9 + $0x28] sm:$0xff] (!%p6732_p13)  }
 0x384   : > { %6771 = vmatpush3.bf16.msra.mxu0 %v7458_v8  ;;  %6793 = vmatpush3.bf16.msra.mxu1 %v7459_v9  ;;  %v7488_v8 = vld [vmem:[#allocation9 + $0x58] sm:$0xff] (!%p6732_p13)   ;;  %v7483_v9 = vld [vmem:[#allocation9 + $0x30] sm:$0xff] (!%p6732_p13)  }
 0x385   : > { %6772 = vmatprep.subr.bf16.mxu0 %v7460_v24  ;;  %6794 = vmatprep.subr.bf16.mxu1 %v7461_v10  ;;  %v7489_v10 = vld [vmem:[#allocation9 + $0x60] sm:$0xff] (!%p6732_p13)  }
 0x388   : > { %6773 = vmatpush3.bf16.msra.mxu0 %v7462_v11  ;;  %6795 = vmatpush3.bf16.msra.mxu1 %v7463_v14  ;;  %v7484_v14 = vld [vmem:[#allocation9 + $0x38] sm:$0xff] (!%p6732_p13)  }
 0x389   : > { %6774 = vmatprep.subr.bf16.mxu0 %v7464_v16  ;;  %6796 = vmatprep.subr.bf16.mxu1 %v7465_v15  ;;  %v7490_v16 = vld [vmem:[#allocation9 + $0x68] sm:$0xff] (!%p6732_p13)  }
 0x38c   : > { %6775 = vmatpush3.bf16.msra.mxu0 %v7466_v17  ;;  %6797 = vmatpush3.bf16.msra.mxu1 %v7467_v18  ;;  %v7491_v17 = vld [vmem:[#allocation9 + $0x70] sm:$0xff] (!%p6732_p13)   ;;  %v7492_v18 = vld [vmem:[#allocation9 + $0x78] sm:$0xff] (!%p6732_p13)  }
 0x38d   : > { %6776 = vmatprep.subr.bf16.mxu0 %v7468_v19  ;;  %6798 = vmatprep.subr.bf16.mxu1 %v7469_v20  ;;  %v7493_v19 = vld [vmem:[#allocation9 + $0x80] sm:$0xff] (!%p6732_p13)   ;;  %v7494_v20 = vld [vmem:[#allocation9 + $0x88] sm:$0xff] (!%p6732_p13)  }
 0x390   : > { %6777 = vmatpush3.bf16.msra.mxu0 %v7470_v21  ;;  %6799 = vmatpush3.bf16.msra.mxu1 %v7471_v22  ;;  %v7495_v21 = vld [vmem:[#allocation9 + $0x90] sm:$0xff] (!%p6732_p13)   ;;  %v7496_v22 = vld [vmem:[#allocation9 + $0x98] sm:$0xff] (!%p6732_p13)  }
 0x391   : > { %6778 = vmatprep.subr.bf16.mxu0 %v7472_v12  ;;  %6800 = vmatprep.subr.bf16.mxu1 %v7473_v23  ;;  %v7497_v12 = vld [vmem:[#allocation9 + $0xa0] sm:$0xff] (!%p6732_p13)   ;;  %v7498_v23 = vld [vmem:[#allocation9 + $0xa8] sm:$0xff] (!%p6732_p13)  }
 0x394   : > { %6779 = vmatpush3.bf16.msra.mxu0 %v7474_v54  ;;  %6801 = vmatpush3.bf16.msra.mxu1 %v7475_v27  ;;  %v7499_v54 = vld [vmem:[#allocation9 + $0xb0] sm:$0xff] (!%p6732_p13)   ;;  %v6733_v27 = vld [vmem:[#allocation10] ss:$0 sm:$0xff] (!%p6732_p13) }
 0x395   : > { %6835 = vmatprep.subr.bf16.mxu0 (!%p6732_p13), %v7742_v63  ;;  %6855 = vmatprep.subr.bf16.mxu1 (!%p6732_p13), %v7742_v63 }
 0x44a   : > { %v5038_v33 = vpop.f32.mrb[8].mxu0  ;;  %v5202_v34 = vpop.f32.mrb[8].mxu1 }
 0x44b   : > { %v6903_v36 = vadd.f32 %v5038_v33, %v3584_v29  ;;  %v6905_v37 = vadd.f32 %v5202_v34, %v3592_v30  ;;  %v5040_v38 = vpop.f32.mrb[9].mxu0  ;;  %v5204_v40 = vpop.f32.mrb[9].mxu1  ;;  %v7500_v34 = vld [vmem:[#allocation9 + $0xb8] sm:$0xff] (!%p6732_p13)  }
 0x44c   : > { %v6904_v41 = vadd.f32 %v5040_v38, %v3588_v31  ;;  %v6906_v42 = vadd.f32 %v5204_v40, %v3596_v32  ;;  %v5042_v43 = vpop.f32.mrb[10].mxu0  ;;  %v5206_v53 = vpop.f32.mrb[10].mxu1 }
 0x44d   : > { %v5043_v44 = vpop.f32.mrb[11].mxu0  ;;  %v5207_v45 = vpop.f32.mrb[11].mxu1  ;;  %v5209_v5 = vpack.c.bf16 %v6903_v36, %v6903_v36  ;;  %v5211_v3 = vpack.c.bf16 %v6905_v37, %v6905_v37  ;;  %v6742_v36 = vld [vmem:[#allocation10 + $0x1] ss:$0 sm:$0xff] (!%p6732_p13)  ;;  %v6751_v53 = vld [vmem:[#allocation10 + $0x2] ss:$0 sm:$0xff] (!%p6732_p13) }
 0x44e   : > { %v5210_v4 = vpack.c.bf16 %v6904_v41, %v6904_v41  ;;  %v5212_v46 = vpack.c.bf16 %v6906_v42, %v6906_v42 }
 0x450   : > { %5507 = vmatprep.mubr.bf16.mxu0 %v5210_v4  ;;  %5547 = vmatprep.mubr.bf16.mxu1 %v5212_v46 }
 0x451   : > { %5508 = vmatmul.mubr.bf16.vlgmr.msra.gmra.mrb[12].mxu0 %v5209_v5  ;;  %5548 = vmatmul.mubr.bf16.vlgmr.msra.gmra.mrb[12].mxu1 %v5211_v3 }
 0x452   : > { %6836 = vmatpush3.bf16.msra.mxu0 (!%p6732_p13), %v7477_v62  ;;  %6851 = vmatprep.mubr.msk.bf16.mxu0 (!%p6732_p13), %vm7743_vm0, %v7742_v63 }
 0x453   : > { %6837 = vmatprep.subr.bf16.mxu0 (!%p6732_p13), %v7742_v63  ;;  %6871 = vmatprep.mubr.msk.bf16.mxu1 (!%p6732_p13), %vm7743_vm0, %v7742_v63 }
 0x454   : > { %6856 = vmatpush3.bf16.msra.mxu1 (!%p6732_p13), %v7485_v13 }
 0x455   : > { %6857 = vmatprep.subr.bf16.mxu1 (!%p6732_p13), %v7742_v63 }
 0x456   : > { %6838 = vmatpush3.bf16.msra.mxu0 (!%p6732_p13), %v7478_v35 }
 0x457   : > { %6839 = vmatprep.subr.bf16.mxu0 (!%p6732_p13), %v7742_v63 }
 0x458   : > { %6858 = vmatpush3.bf16.msra.mxu1 (!%p6732_p13), %v7486_v2 }
 0x459   : > { %6859 = vmatprep.subr.bf16.mxu1 (!%p6732_p13), %v7742_v63 }
 0x45a   : > { %6840 = vmatpush3.bf16.msra.mxu0 (!%p6732_p13), %v7479_v1 }
 0x45b   : > { %6841 = vmatprep.subr.bf16.mxu0 (!%p6732_p13), %v7742_v63 }
 0x45c   : > { %6860 = vmatpush3.bf16.msra.mxu1 (!%p6732_p13), %v7487_v26 }
 0x45d   : > { %6861 = vmatprep.subr.bf16.mxu1 (!%p6732_p13), %v7742_v63 }
 0x45e   : > { %6842 = vmatpush3.bf16.msra.mxu0 (!%p6732_p13), %v7480_v58 }
 0x45f   : > { %6843 = vmatprep.subr.bf16.mxu0 (!%p6732_p13), %v7742_v63 }
 0x460   : > { %6862 = vmatpush3.bf16.msra.mxu1 (!%p6732_p13), %v7488_v8 }
 0x461   : > { %6863 = vmatprep.subr.bf16.mxu1 (!%p6732_p13), %v7742_v63 }
 0x462   : > { %6844 = vmatpush3.bf16.msra.mxu0 (!%p6732_p13), %v7481_v6 }
 0x463   : > { %6845 = vmatprep.subr.bf16.mxu0 (!%p6732_p13), %v7742_v63 }
 0x464   : > { %6864 = vmatpush3.bf16.msra.mxu1 (!%p6732_p13), %v7489_v10 }
 0x465   : > { %6865 = vmatprep.subr.bf16.mxu1 (!%p6732_p13), %v7742_v63 }
 0x466   : > { %6846 = vmatpush3.bf16.msra.mxu0 (!%p6732_p13), %v7482_v7 }
 0x467   : > { %6847 = vmatprep.subr.bf16.mxu0 (!%p6732_p13), %v7742_v63 }
 0x468   : > { %6866 = vmatpush3.bf16.msra.mxu1 (!%p6732_p13), %v7490_v16 }
 0x469   : > { %6867 = vmatprep.subr.bf16.mxu1 (!%p6732_p13), %v7742_v63 }
 0x46a   : > { %6848 = vmatpush3.bf16.msra.mxu0 (!%p6732_p13), %v7483_v9 }
 0x46b   : > { %6849 = vmatprep.subr.bf16.mxu0 (!%p6732_p13), %v7742_v63 }
 0x46c   : > { %6868 = vmatpush3.bf16.msra.mxu1 (!%p6732_p13), %v7491_v17 }
 0x46d   : > { %6869 = vmatprep.subr.bf16.mxu1 (!%p6732_p13), %v7742_v63 }
 0x46e   : > { %6850 = vmatpush3.bf16.msra.mxu0 (!%p6732_p13), %v7484_v14 }
 0x46f   : > { %6875 = vmatprep.subr.bf16.mxu0 (!%p6732_p13), %v7742_v63 }
 0x470   : > { %6870 = vmatpush3.bf16.msra.mxu1 (!%p6732_p13), %v7492_v18 }
 0x524   : > { %v6780_v0 = vpop.f32.mrb[12].mxu0  ;;  %v6802_v59 = vpop.f32.mrb[12].mxu1 }
 0x525   : > { %v6781_v25 = vpop.f32.mrb[13].mxu0  ;;  %v6803_v48 = vpop.f32.mrb[13].mxu1 }
 0x526   : > { %v6782_v49 = vadd.f32 %v6781_v25, %v6780_v0  ;;  %v6804_v50 = vadd.f32 %v6803_v48, %v6802_v59  ;;  %v6783_v51 = vpop.f32.mrb[14].mxu0  ;;  %v6805_v52 = vpop.f32.mrb[14].mxu1 }
 0x527   : > { %v6784_v55 = vpop.f32.mrb[15].mxu0  ;;  %v6806_v56 = vpop.f32.mrb[15].mxu1 }
 0x528   : > { %v5510_v57 = vadd.f32 %v6782_v49, %v6699_v47  ;;  %5561 = sbr.rel (%p6732_p13) target bundleno = 1985 (0x7c1), region = 80 }
 0x52a   : > { %v5550_v39 = vadd.f32 %v6804_v50, %v5510_v57 }
 0x52c   : > { %v5556_v61 = vadd.f32 %v5555_v60, %v5550_v39 }
 0x52e   : > { %5557 = vst [vmem:[%s8923_s7] sm:$0xff] %v5556_v61 }
 0x535   : > { %v5562_v24 = vld [vmem:[%s8923_s7] sm:$0xff] }
 0x536   : > { %v5563_v11 = vmul.f32 0.33333334, %v5562_v24 }
 0x538   : > { %v5564_v15 = vpack.c.bf16 %v5563_v11, %v5563_v11 }
 0x53a   : > { %6852 = vmatmul.mubr.bf16.vlgmr.msra.gmra.mrb[0].mxu0 %v5564_v15 }
 0x53b   : > { %6891 = vmatprep.mubr.msk.bf16.mxu0 %vm7743_vm0, %v7742_v63  ;;  %6876 = vmatpush3.bf16.msra.mxu0 %v7493_v19 }
 0x53c   : > { %6877 = vmatprep.subr.bf16.mxu0 %v7742_v63 }
 0x53f   : > { %6878 = vmatpush3.bf16.msra.mxu0 %v7494_v20 }
 0x540   : > { %6879 = vmatprep.subr.bf16.mxu0 %v7742_v63 }
 0x543   : > { %6880 = vmatpush3.bf16.msra.mxu0 %v7495_v21 }
 0x544   : > { %6881 = vmatprep.subr.bf16.mxu0 %v7742_v63 }
 0x547   : > { %6882 = vmatpush3.bf16.msra.mxu0 %v7496_v22 }
 0x548   : > { %6883 = vmatprep.subr.bf16.mxu0 %v7742_v63 }
 0x54b   : > { %6884 = vmatpush3.bf16.msra.mxu0 %v7497_v12 }
 0x54c   : > { %6885 = vmatprep.subr.bf16.mxu0 %v7742_v63 }
 0x54f   : > { %6886 = vmatpush3.bf16.msra.mxu0 %v7498_v23 }
 0x550   : > { %6887 = vmatprep.subr.bf16.mxu0 %v7742_v63 }
 0x553   : > { %6888 = vmatpush3.bf16.msra.mxu0 %v7499_v54 }
 0x554   : > { %6889 = vmatprep.subr.bf16.mxu0 %v7742_v63 }
 0x557   : > { %6890 = vmatpush3.bf16.msra.mxu0 %v7500_v34 }
 0x60d   : > { %v5668_v28 = vpop.f32.mrb[0].mxu0 }
 0x60e   : > { %v5669_v29 = vadd.f32 %v6733_v27, %v5668_v28  ;;  %v6853_v30 = vpop.f32.mrb[1].mxu0 }
 0x60f   : > { %v5671_v31 = vpop.f32.mrb[2].mxu0 }
 0x610   : > { %v5674_v32 = vpack.c.bf16 %v5669_v29, %v5669_v29  ;;  %v6854_v33 = vpop.f32.mrb[3].mxu0 }
 0x612   : > { %6872 = vmatmul.mubr.bf16.vlgmr.msra.gmra.mrb[0].mxu1 %v5674_v32 }
 0x6e5   : > { %v5779_v37 = vpop.f32.mrb[0].mxu1 }
 0x6e6   : > { %v5780_v38 = vadd.f32 %v6742_v36, %v5779_v37  ;;  %v6873_v40 = vpop.f32.mrb[1].mxu1 }
 0x6e7   : > { %v5782_v41 = vpop.f32.mrb[2].mxu1 }
 0x6e8   : > { %v5785_v42 = vpack.c.bf16 %v5780_v38, %v5780_v38  ;;  %v6874_v43 = vpop.f32.mrb[3].mxu1 }
 0x6ea   : > { %6892 = vmatmul.mubr.bf16.vlgmr.msra.gmra.mrb[4].mxu0 %v5785_v42 }
 0x7bd   : > { %v5890_v44 = vpop.f32.mrb[4].mxu0 }
 0x7be   : > { %v5891_v45 = vadd.f32 %v6751_v53, %v5890_v44  ;;  %v6893_v4 = vpop.f32.mrb[5].mxu0 }
 0x7bf   : > { %v5893_v46 = vpop.f32.mrb[6].mxu0 }
 0x7c0   : > { %5896 = vst [vmem:[%s8923_s7] sm:$0xff] %v5891_v45  ;;  %v6894_v5 = vpop.f32.mrb[7].mxu0 }
 0x7c1 PF: > { %s8971_s27 = sld [smem:[#allocation18_spill]]  ;;  %s8972_s18 = sld [smem:[#allocation17_spill]] }
 0x7c2   : > { %s8973_s26 = sld [smem:[#allocation19_spill]]  ;;  %s8974_s24 = smov %s7719_s25 }
 0x7c7   : > { %p24_p5 = scmp.ge.s32.totalorder %s8971_s27, 5   ;;  %s8975_s25 = smov %s8972_s18 }
 0x7c9   :  { %26 = sbr.rel (!%p24_p5) target bundleno = 11 (0xb), region = 142 }
 0x7d0   :  { %5908 = vsyncpa [#allocation3], 1 }
 0x7d1   :  { %5910 = vsyncpa [#allocation3 + $0x1], 1 }
 0x7d2   :  { %5911 = vsyncpa [#allocation5], 1 }
 0x7d3   :  { %5913 = vsyncpa [#allocation5 + $0x1], 1 }
 0x7d4   :  { %5914 = vsyncpa [#allocation8], 1 }
 0x7d5   :  { %5916 = vsyncpa [#allocation8 + $0x1], 1 }
 0x7d6   :  { %5917 = vsyncpa [#allocation11], 1 }

</bundles_post_ra>
